<compile_context>
chip_gen: v6e
topology: v6e:2x2x1
jax: 0.10.0
libtpu: 0.0.40
codegen_flags: <defaults>
</compile_context>

<pallas_src>
import functools
import math

import jax
import jax.numpy as jnp
from jax.experimental import pallas as pl
from jax.experimental.pallas import tpu as pltpu

_VMEM_LIMIT = 64 * 1024 * 1024          # safe on v5e/v6e (128 MiB phys) and v7x (64 MiB phys)


# ---------------------------- small helpers ----------------------------

def _round_up(x, m):
    return (x + m - 1) // m * m


def _sigmoid(y):
    # clamped so exp never overflows; reciprocal goes to the EUP slot.
    return pl.reciprocal(1.0 + jnp.exp(-jnp.maximum(y, -30.0)), approx=True)


def _ln_body(x, g_ref, b_ref, eps=1e-5):
    mu = jnp.mean(x, axis=-1, keepdims=True)
    var = jnp.mean((x - mu) ** 2, axis=-1, keepdims=True)
    return (x - mu) * jax.lax.rsqrt(var + eps) * g_ref[...] + b_ref[...]


def _mm_body(h, w_ref, b_ref, act):
    # bf16 operands on the MXU (weights already stored bf16), f32 accumulation, f32 epilogue.
    y = jnp.dot(h.astype(jnp.bfloat16), w_ref[...],
                preferred_element_type=jnp.float32) + b_ref[...]
    if act == "relu":
        y = jnp.maximum(y, 0.0)
    elif act == "silu":
        y = y * _sigmoid(y)
    return y


# ---------------------------- Pallas kernel bodies ----------------------------

def _mm_kernel(x_ref, w_ref, b_ref, o_ref, *, act, log_softmax=False):
    y = _mm_body(x_ref[...], w_ref, b_ref, act)
    if log_softmax:
        # TODO(synk): for realistic vocab sizes this needs N-tiling + flash-style logsumexp so the
        # (D, Vp) weight is not VMEM-resident (critical on v7x's 64 MiB).
        z = y - jnp.max(y, axis=-1, keepdims=True)
        y = z - jnp.log(jnp.sum(jnp.exp(z), axis=-1, keepdims=True))
    o_ref[...] = y.astype(o_ref.dtype)


def _mm_res_kernel(x_ref, r_ref, w_ref, b_ref, o_ref):
    # out = residual + (x @ w + b)
    o_ref[...] = (r_ref[...] + _mm_body(x_ref[...], w_ref, b_ref, "none")).astype(o_ref.dtype)


def _ln_mm_kernel(x_ref, g_ref, bl_ref, w_ref, b_ref, o_ref, *, act):
    o_ref[...] = _mm_body(_ln_body(x_ref[...], g_ref, bl_ref),
                          w_ref, b_ref, act).astype(o_ref.dtype)


def _ffn_kernel(x_ref, g_ref, bl_ref, w1_ref, b1_ref, w2_ref, b2_ref, g2_ref, b2f_ref,
                o_ref, *, act, scale, final_ln):
    x = x_ref[...]
    h = _mm_body(_ln_body(x, g_ref, bl_ref), w1_ref, b1_ref, act)
    y = x + scale * _mm_body(h, w2_ref, b2_ref, "none")
    if final_ln:
        y = _ln_body(y, g2_ref, b2f_ref)
    o_ref[...] = y.astype(o_ref.dtype)


def _ln_glu_kernel(x_ref, g_ref, bl_ref, wa_ref, ba_ref, wg_ref, bg_ref, o_ref):
    h = _ln_body(x_ref[...], g_ref, bl_ref).astype(jnp.bfloat16)   # cast once; reused by both mms
    a = _mm_body(h, wa_ref, ba_ref, "none")
    gate = _mm_body(h, wg_ref, bg_ref, "none")
    o_ref[...] = (a * _sigmoid(gate)).astype(o_ref.dtype)


def _attn_kernel(q_ref, k_ref, v_ref, m_ref, o_ref, *, scale, causal, n_head, dh):
    # One grid step per batch element; q/k/v come in lane-dense (1, T, H*dh) bf16 layout.
    Tq = q_ref.shape[1]
    Tk = k_ref.shape[1]
    q_all = q_ref[0] * scale                 # fold 1/sqrt(dh) into q: Tq*dh muls, not Tq*Tk
    k_all = k_ref[0]
    v_all = v_ref[0]
    add_mask = m_ref[0]                      # (1, Tk) additive key-padding mask (f32)
    if causal:                               # built ONCE per grid step (not per head)
        iq = jax.lax.broadcasted_iota(jnp.int32, (Tq, Tk), 0)
        ik = jax.lax.broadcasted_iota(jnp.int32, (Tq, Tk), 1)
        add_mask = add_mask + jnp.where(ik > iq, -1e30, 0.0)
    # TODO(synk): for long sequences, tile Tk with an online-softmax (m/l/acc) accumulator instead
    # of materializing the full (Tq, Tk) score matrix per head.
    outs = []
    for h in range(n_head):
        sl = slice(h * dh, (h + 1) * dh)
        s = jax.lax.dot_general(q_all[:, sl], k_all[:, sl], (((1,), (1,)), ((), ())),
                                preferred_element_type=jnp.float32)
        s = s + add_mask
        s = s - jnp.max(s, axis=-1, keepdims=True)
        p = jnp.exp(s)
        p = p * pl.reciprocal(jnp.sum(p, axis=-1, keepdims=True), approx=True)
        outs.append(jnp.dot(p.astype(jnp.bfloat16), v_all[:, sl],
                            preferred_element_type=jnp.float32))
    # single lane-dense store of all heads
    o_ref[0] = jnp.concatenate(outs, axis=-1).astype(o_ref.dtype)


def _conv_module_kernel(gp_ref, r_ref, dw_ref, s_ref, sh_ref, w2_ref, b2_ref, o_ref, *, K, T):
    # depthwise conv (zero-padded halo already in gp_ref) + folded bias+BN + SiLU + pw-conv2 + res.
    # TODO(synk): tile over T with a (K-1)/2-row halo for long sequences (VMEM on v7x).
    dw = dw_ref[...]                                             # (K, D) f32
    acc = gp_ref[0, 0:T, :] * dw[0:1, :]                         # init from tap 0
    for k in range(1, K):
        acc = acc + gp_ref[0, k:k + T, :] * dw[k:k + 1, :]
    y = acc * s_ref[...] + sh_ref[...]                           # conv bias + BatchNorm folded
    y = y * _sigmoid(y)                                          # SiLU
    y2 = jnp.dot(y.astype(jnp.bfloat16), w2_ref[...],
                 preferred_element_type=jnp.float32) + b2_ref[...]
    o_ref[0] = (r_ref[0] + y2).astype(o_ref.dtype)


# ---------------------------- pallas_call launchers ----------------------------

def _row_plan(M):
    # One full block for small M (block dims equal to full array dims are always legal);
    # 256-row tiles otherwise (matches the 256x256 MXU on v6e/v7x; partial last block is masked).
    if M <= 256:
        return M, 1
    return 256, pl.cdiv(M, 256)


def _const_index_map(ndim):
    def im(i):
        return (0,) * ndim
    return im


def _launch_rows(kernel, row_args, const_args, out_cols, out_dtype=jnp.float32):
    """Row-tiled launch: row_args are (M, C_i) blocked over rows; const_args stay whole.
    No pre-pad / post-slice: exact out_shape, partial last block masked by Pallas."""
    M = row_args[0].shape[0]
    tm, ngrid = _row_plan(M)
    in_specs = ([pl.BlockSpec((tm, a.shape[1]), lambda i: (i, 0)) for a in row_args] +
                [pl.BlockSpec(c.shape, _const_index_map(c.ndim)) for c in const_args])
    return pl.pallas_call(
        kernel,
        grid=(ngrid,),
        in_specs=in_specs,
        out_specs=pl.BlockSpec((tm, out_cols), lambda i: (i, 0)),
        out_shape=jax.ShapeDtypeStruct((M, out_cols), out_dtype),
        compiler_params=pltpu.CompilerParams(dimension_semantics=("parallel",),
                                             vmem_limit_bytes=_VMEM_LIMIT),
    )(*row_args, *const_args)


def pallas_linear(x, w, b, act="none", log_softmax=False, out_dtype=jnp.float32):
    return _launch_rows(functools.partial(_mm_kernel, act=act, log_softmax=log_softmax),
                        [x], [w, b], out_cols=w.shape[1], out_dtype=out_dtype)


def pallas_linear_residual(x, res, w, b):
    return _launch_rows(_mm_res_kernel, [x, res], [w, b], out_cols=w.shape[1])


def pallas_ln_linear(x, g, bl, w, b, act="none", out_dtype=jnp.float32):
    return _launch_rows(functools.partial(_ln_mm_kernel, act=act),
                        [x], [g, bl, w, b], out_cols=w.shape[1], out_dtype=out_dtype)


def pallas_ffn(x, p, *, act, scale, final_ln=None):
    D = x.shape[1]
    if final_ln is None:
        g2 = jnp.ones((1, D), jnp.float32)
        b2f = jnp.zeros((1, D), jnp.float32)
        use_final = False
    else:
        g2, b2f = final_ln
        use_final = True
    return _launch_rows(
        functools.partial(_ffn_kernel, act=act, scale=scale, final_ln=use_final),
        [x], [p["ln_g"], p["ln_b"], p["w1"], p["b1"], p["w2"], p["b2"], g2, b2f],
        out_cols=D)


def pallas_ln_glu(x, g, bl, wa, ba, wg, bg):
    return _launch_rows(_ln_glu_kernel, [x], [g, bl, wa, ba, wg, bg], out_cols=wa.shape[1])


def pallas_attention(q, k, v, key_mask, scale, causal, n_head):
    """q/k/v: (B, T, D) bf16 (lane-dense, head-interleaved); key_mask: (B, 1, Tk) additive f32."""
    B, Tq, D = q.shape
    Tk = k.shape[1]
    dh = D // n_head
    return pl.pallas_call(
        functools.partial(_attn_kernel, scale=scale, causal=causal, n_head=n_head, dh=dh),
        grid=(B,),
        in_specs=[
            pl.BlockSpec((1, Tq, D), lambda b: (b, 0, 0)),
            pl.BlockSpec((1, Tk, D), lambda b: (b, 0, 0)),
            pl.BlockSpec((1, Tk, D), lambda b: (b, 0, 0)),
            pl.BlockSpec((1, 1, Tk), lambda b: (b, 0, 0)),
        ],
        out_specs=pl.BlockSpec((1, Tq, D), lambda b: (b, 0, 0)),
        out_shape=jax.ShapeDtypeStruct((B, Tq, D), jnp.bfloat16),
        compiler_params=pltpu.CompilerParams(dimension_semantics=("parallel",),
                                             vmem_limit_bytes=_VMEM_LIMIT),
    )(q, k, v, key_mask)


def pallas_conv_module(g_btd, x_res, p):
    """GLU output g_btd (B,T,D) -> dwconv + (bias+BN folded) + SiLU + pw2 + residual(x_res)."""
    B, T, Dm = g_btd.shape
    K = p["dw_w"].shape[0]
    pad = (K - 1) // 2
    gp = jnp.pad(g_btd, ((0, 0), (pad, pad), (0, 0)))
    bn_scale = p["bn_g"] * jax.lax.rsqrt(p["bn_v"] + 1e-5)                 # (1, D)
    bn_shift = p["bn_b"] - p["bn_m"] * bn_scale + p["dw_b"] * bn_scale     # conv bias folded in
    return pl.pallas_call(
        functools.partial(_conv_module_kernel, K=K, T=T),
        grid=(B,),
        in_specs=[
            pl.BlockSpec((1, T + 2 * pad, Dm), lambda b: (b, 0, 0)),
            pl.BlockSpec((1, T, Dm), lambda b: (b, 0, 0)),
            pl.BlockSpec((K, Dm), lambda b: (0, 0)),
            pl.BlockSpec((1, Dm), lambda b: (0, 0)),
            pl.BlockSpec((1, Dm), lambda b: (0, 0)),
            pl.BlockSpec((Dm, Dm), lambda b: (0, 0)),
            pl.BlockSpec((1, Dm), lambda b: (0, 0)),
        ],
        out_specs=pl.BlockSpec((1, T, Dm), lambda b: (b, 0, 0)),
        out_shape=jax.ShapeDtypeStruct((B, T, Dm), jnp.float32),
        compiler_params=pltpu.CompilerParams(dimension_semantics=("parallel",),
                                             vmem_limit_bytes=_VMEM_LIMIT),
    )(gp, x_res, p["dw_w"], bn_scale, bn_shift, p["pw2_w"], p["pw2_b"])


# ---------------------------- model glue (plain JAX) ----------------------------

def sinusoidal_pe(max_len, d_model):
    pos = jnp.arange(max_len, dtype=jnp.float32)[:, None]
    div = jnp.exp(jnp.arange(0, d_model, 2, dtype=jnp.float32) * (-math.log(10000.0) / d_model))
    pe = jnp.zeros((max_len, d_model), jnp.float32)
    pe = pe.at[:, 0::2].set(jnp.sin(pos * div))
    pe = pe.at[:, 1::2].set(jnp.cos(pos * div))
    return pe


def frame_signal(x_btc, K, stride):
    """Strided-slice framing (no gather). x:(B,T,C) -> (B,T_out,K*C), columns ordered k*C+c."""
    B, T, C = x_btc.shape
    T_out = (T - K) // stride + 1
    taps = [x_btc[:, k:k + stride * (T_out - 1) + 1:stride, :] for k in range(K)]
    return jnp.stack(taps, axis=2).reshape(B, T_out, K * C)


def attention_block(x, kv, p, n_head, key_mask, *, causal, cross):
    """Pre-LN multi-head attention with residual.  Self-attn fuses LN into the fused QKV projection;
    q/k/v stay in (B,T,D) layout (no XLA transposes) and are streamed in bf16."""
    B, Tq, D = x.shape
    dh = D // n_head
    x2 = x.reshape(B * Tq, D)
    if not cross:
        qkv = pallas_ln_linear(x2, p["ln_g"], p["ln_b"], p["w_qkv"], p["b_qkv"],
                               out_dtype=jnp.bfloat16)
        q, k, v = jnp.split(qkv, 3, axis=-1)
        Tk = Tq
    else:
        Tk = kv.shape[1]
        q = pallas_ln_linear(x2, p["ln_g"], p["ln_b"], p["w_q"], p["b_q"],
                             out_dtype=jnp.bfloat16)
        kvp = pallas_linear(kv.reshape(B * Tk, D), p["w_kv"], p["b_kv"], out_dtype=jnp.bfloat16)
        k, v = jnp.split(kvp, 2, axis=-1)
    q = q.reshape(B, Tq, D)
    k = k.reshape(B, Tk, D)
    v = v.reshape(B, Tk, D)
    attn = pallas_attention(q, k, v, key_mask, 1.0 / math.sqrt(dh), causal, n_head)
    out = pallas_linear_residual(attn.reshape(B * Tq, D), x2, p["w_o"], p["b_o"])
    return out.reshape(B, Tq, D)


def conformer_layer(x, key_mask, p, n_head):
    """torchaudio ConformerLayer (convolution_first=False, use_group_norm=False, eval mode)."""
    B, T, D = x.shape
    x = pallas_ffn(x.reshape(B * T, D), p["ffn1"], act="silu", scale=0.5).reshape(B, T, D)
    x = attention_block(x, x, p["attn"], n_head, key_mask, causal=False, cross=False)
    g = pallas_ln_glu(x.reshape(B * T, D), p["conv_ln_g"], p["conv_ln_b"],
                      p["pw1_wa"], p["pw1_ba"], p["pw1_wg"], p["pw1_bg"]).reshape(B, T, D)
    x = pallas_conv_module(g, x, p)
    x = pallas_ffn(x.reshape(B * T, D), p["ffn2"], act="silu", scale=0.5,
                   final_ln=(p["fln_g"], p["fln_b"])).reshape(B, T, D)
    return x


def decoder_layer(x, memory, p, n_head, tgt_key_mask, mem_key_mask):
    """nn.TransformerDecoderLayer, norm_first=True, batch_first=True, activation=relu, eval."""
    B, T, D = x.shape
    x = attention_block(x, x, p["sa"], n_head, tgt_key_mask, causal=True, cross=False)
    x = attention_block(x, memory, p["ca"], n_head, mem_key_mask, causal=False, cross=True)
    x = pallas_ffn(x.reshape(B * T, D), p["ffn"], act="relu", scale=1.0).reshape(B, T, D)
    return x


def full_conformer_forward(params, src, lengths, trg, cfg):
    D, V, H = cfg["d_model"], cfg["dec_voc_size"], cfg["n_head"]
    B = src.shape[0]

    # encoder front-end: Conv1dSubampling (two k=3,s=2 convs as framed matmuls) + positional enc
    p_cs = params["conv_sub"]
    x_btc = jnp.transpose(src, (0, 2, 1))                        # (B, T, Cin)
    f1 = frame_signal(x_btc, 3, 2)
    T1 = f1.shape[1]
    y1 = pallas_linear(f1.reshape(B * T1, -1), p_cs["w1"], p_cs["b1"]).reshape(B, T1, D)
    f2 = frame_signal(y1, 3, 2)
    Tp = f2.shape[1]
    x = pallas_linear(f2.reshape(B * Tp, -1), p_cs["w2"], p_cs["b2"]).reshape(B, Tp, D)
    x = x + params["pe"][None, :Tp, :]

    # matches the reference: length = clamp(lengths / 4, max=T') cast to int
    length = jnp.minimum(lengths.astype(jnp.float32) / 4.0, float(Tp)).astype(jnp.int32)
    enc_key_mask = jnp.where(jnp.arange(Tp)[None, :] >= length[:, None],
                             -1e30, 0.0).astype(jnp.float32)[:, None, :]

    # target side: masks, embedding, positional_encoder_2
    Tt = trg.shape[1]
    tgt_key_mask = jnp.where(trg == cfg["trg_pad_idx"], -1e30, 0.0).astype(jnp.float32)[:, None, :]
    # reference passes no memory_key_padding_mask -> all-zero additive mask
    mem_key_mask = jnp.zeros((B, 1, Tp), jnp.float32)
    t = params["emb"][trg] + params["pe"][None, :Tt, :]

    enc = x
    dec_outs, enc_outs = [], []
    for i in range(cfg["n_enc_exits"]):
        for lp in params["conformer"][i]:                        # one Conformer = n_enc_layers layers
            enc = conformer_layer(enc, enc_key_mask, lp, H)
        d = t
        for _ in range(cfg["n_dec_layers"]):                     # deep-copied layers share init params
            d = decoder_layer(d, enc, params["dec"][i], H, tgt_key_mask, mem_key_mask)
        # shared decoder final LayerNorm fused into the vocab projection; vocab dim is 128-padded.
        od = pallas_ln_linear(d.reshape(B * Tt, D), params["final_ln_g"], params["final_ln_b"],
                              params["lin2"][i]["w"], params["lin2"][i]["b"])[:, :V]
        dec_outs.append(od.reshape(B, Tt, V))
        oe = pallas_linear(enc.reshape(B * Tp, D), params["lin1"][i]["w"], params["lin1"][i]["b"],
                           log_softmax=True)[:, :V]
        enc_outs.append(oe.reshape(B, Tp, V))
    return jnp.stack(dec_outs, 0), jnp.stack(enc_outs, 0)


# ---------------------------- deterministic parameter init ----------------------------

def init_params(key, cfg):
    keys = iter(jax.random.split(key, 4096))

    def nrm(shape, s=0.1):
        return s * jax.random.normal(next(keys), shape, jnp.float32)

    def wmat(shape, s=0.1):
        # weight matrices are stored in bf16 (streamed straight to the MXU, half the DMA bytes)
        return nrm(shape, s).astype(jnp.bfloat16)

    D, F, V = cfg["d_model"], cfg["d_ff"], cfg["dec_voc_size"]
    K, Cin = cfg["depthwise_kernel_size"], cfg["features_length"]
    Vp = _round_up(V, 128)
    ones = lambda: jnp.ones((1, D), jnp.float32)
    zeros = lambda: jnp.zeros((1, D), jnp.float32)

    def self_attn():
        return {"ln_g": ones(), "ln_b": zeros(),
                "w_qkv": wmat((D, 3 * D)), "b_qkv": nrm((1, 3 * D), 0.01),
                "w_o": wmat((D, D)), "b_o": nrm((1, D), 0.01)}

    def cross_attn():
        return {"ln_g": ones(), "ln_b": zeros(),
                "w_q": wmat((D, D)), "b_q": nrm((1, D), 0.01),
                "w_kv": wmat((D, 2 * D)), "b_kv": nrm((1, 2 * D), 0.01),
                "w_o": wmat((D, D)), "b_o": nrm((1, D), 0.01)}

    def ffn():
        return {"ln_g": ones(), "ln_b": zeros(),
                "w1": wmat((D, F)), "b1": nrm((1, F), 0.01),
                "w2": wmat((F, D)), "b2": nrm((1, D), 0.01)}

    def conf_layer():
        return {"ffn1": ffn(), "ffn2": ffn(), "attn": self_attn(),
                "conv_ln_g": ones(), "conv_ln_b": zeros(),
                "pw1_wa": wmat((D, D)), "pw1_ba": nrm((1, D), 0.01),
                "pw1_wg": wmat((D, D)), "pw1_bg": nrm((1, D), 0.01),
                "dw_w": nrm((K, D)), "dw_b": nrm((1, D), 0.01),
                "bn_g": ones(), "bn_b": zeros(), "bn_m": zeros(),
                "bn_v": jnp.ones((1, D), jnp.float32),
                "pw2_w": wmat((D, D)), "pw2_b": nrm((1, D), 0.01),
                "fln_g": ones(), "fln_b": zeros()}

    def dec_layer():
        return {"sa": self_attn(), "ca": cross_attn(), "ffn": ffn()}

    def vocab_head(pad_bias):
        # lane-dense 128-padded vocab projection; padded cols get zero weights and `pad_bias`.
        w = jnp.zeros((D, Vp), jnp.bfloat16).at[:, :V].set(wmat((D, V)))
        b = jnp.full((1, Vp), pad_bias, jnp.float32).at[:, :V].set(nrm((1, V), 0.01))
        return {"w": w, "b": b}

    return {
        "pe": sinusoidal_pe(cfg["max_len"], D),
        "emb": nrm((V, D)),
        "conv_sub": {"w1": wmat((3 * Cin, D)), "b1": nrm((1, D), 0.01),
                     "w2": wmat((3 * D, D)), "b2": nrm((1, D), 0.01)},
        # shared self.layer_norm used as the final norm of every TransformerDecoder
        "final_ln_g": ones(), "final_ln_b": zeros(),
        "conformer": [[conf_layer() for _ in range(cfg["n_enc_layers"])]
                      for _ in range(cfg["n_enc_exits"])],
        "dec": [dec_layer() for _ in range(cfg["n_enc_exits"])],
        "lin1": [vocab_head(-1e30) for _ in range(cfg["n_enc_exits"])],   # pad cols excluded from log_softmax
        "lin2": [vocab_head(0.0) for _ in range(cfg["n_enc_exits"])],
    }


# ---------------------------- demo ----------------------------

if __name__ == "__main__":
    cfg = dict(trg_pad_idx=0, n_enc_exits=2, enc_voc_size=40, dec_voc_size=40,
               d_model=32, n_head=4, max_len=64, d_ff=64,
               n_enc_layers=1, n_dec_layers=1, features_length=8,
               drop_prob=0.1, depthwise_kernel_size=3)

    key = jax.random.PRNGKey(0)
    kp, ks, kt = jax.random.split(key, 3)
    params = init_params(kp, cfg)

    B, T_in, T_trg = 2, 35, 6                     # T_in=35 -> conv-subsampled T'=8
    src = jax.random.normal(ks, (B, cfg["features_length"], T_in), jnp.float32)   # NCW like PyTorch
    lengths = jnp.array([35.0, 30.0], jnp.float32)
    trg = jax.random.randint(kt, (B, T_trg), 1, cfg["dec_voc_size"])
    trg = trg.at[0, 4:].set(cfg["trg_pad_idx"]).at[1, 5:].set(cfg["trg_pad_idx"])

    fwd = jax.jit(functools.partial(full_conformer_forward, cfg=cfg))
    dec_out, enc_out = fwd(params, src, lengths, trg)
    jax.block_until_ready((dec_out, enc_out))

    assert dec_out.shape == (cfg["n_enc_exits"], B, T_trg, cfg["dec_voc_size"])
    assert enc_out.shape == (cfg["n_enc_exits"], B, 8, cfg["dec_voc_size"])
    assert bool(jnp.all(jnp.isfinite(dec_out))) and bool(jnp.all(jnp.isfinite(enc_out)))
    print("KERNEL_OK")
</pallas_src>

<mosaic_0001>
module attributes {stable_mosaic.version = 11 : i64} {
  func.func @_mm_kernel(%arg0: i32, %arg1: memref<34x24xf32, #tpu.memory_space<vmem>>, %arg2: memref<24x32xbf16, #tpu.memory_space<vmem>>, %arg3: memref<1x32xf32, #tpu.memory_space<vmem>>, %arg4: memref<34x32xf32, #tpu.memory_space<vmem>>) attributes {dimension_semantics = [#tpu.dimension_semantics<parallel>], iteration_bounds = array<i64: 1>, scalar_prefetch = 0 : i64, scratch_operands = 0 : i64, tpu.core_type = #tpu.core_type<tc>, window_params = [{transform_indices = @transform_0, window_bounds = array<i64: 34, 24>}, {pipeline_mode = #tpu.pipeline_mode<synchronous>, transform_indices = @transform_1, window_bounds = array<i64: 24, 32>}, {pipeline_mode = #tpu.pipeline_mode<synchronous>, transform_indices = @transform_2, window_bounds = array<i64: 1, 32>}, {transform_indices = @transform_3, window_bounds = array<i64: 34, 32>}]} {
    %c0 = arith.constant 0 : index
    %c0_0 = arith.constant 0 : index
    %0 = vector.load %arg1[%c0, %c0_0] : memref<34x24xf32, #tpu.memory_space<vmem>>, vector<34x24xf32>
    %1 = arith.truncf %0 : vector<34x24xf32> to vector<34x24xbf16>
    %c0_1 = arith.constant 0 : index
    %c0_2 = arith.constant 0 : index
    %2 = vector.load %arg2[%c0_1, %c0_2] : memref<24x32xbf16, #tpu.memory_space<vmem>>, vector<24x32xbf16>
    %cst = arith.constant dense<0.000000e+00> : vector<34x32xf32>
    %3 = tpu.matmul %1, %2, %cst {dimension_numbers = #tpu.dot_dimension_numbers<[1], [0], [0], [1], [0, 0, 1, 1], [], []>} : vector<34x24xbf16>, vector<24x32xbf16>, vector<34x32xf32> -> vector<34x32xf32>
    %c0_3 = arith.constant 0 : index
    %c0_4 = arith.constant 0 : index
    %4 = vector.load %arg3[%c0_3, %c0_4] : memref<1x32xf32, #tpu.memory_space<vmem>>, vector<1x32xf32>
    %5 = vector.broadcast %4 : vector<1x32xf32> to vector<34x32xf32>
    %6 = arith.addf %3, %5 : vector<34x32xf32>
    %c0_5 = arith.constant 0 : index
    %c0_6 = arith.constant 0 : index
    %7 = vector.load %arg4[%c0_5, %c0_6] : memref<34x32xf32, #tpu.memory_space<vmem>>, vector<34x32xf32>
    tpu.vector_store %arg4[%c0_5, %c0_6], %6 {strides = array<i32>} : memref<34x32xf32, #tpu.memory_space<vmem>>, vector<34x32xf32>,
    return
  }
  func.func @transform_0(%arg0: i32) -> (i32, i32) {
    %c0_i32 = arith.constant 0 : i32
    %c0_i32_0 = arith.constant 0 : i32
    return %arg0, %c0_i32 : i32, i32
  }
  func.func @transform_1(%arg0: i32) -> (i32, i32) {
    %c0_i32 = arith.constant 0 : i32
    %c0_i32_0 = arith.constant 0 : i32
    %c0_i32_1 = arith.constant 0 : i32
    return %c0_i32, %c0_i32_0 : i32, i32
  }
  func.func @transform_2(%arg0: i32) -> (i32, i32) {
    %c0_i32 = arith.constant 0 : i32
    %c0_i32_0 = arith.constant 0 : i32
    %c0_i32_1 = arith.constant 0 : i32
    return %c0_i32, %c0_i32_0 : i32, i32
  }
  func.func @transform_3(%arg0: i32) -> (i32, i32) {
    %c0_i32 = arith.constant 0 : i32
    %c0_i32_0 = arith.constant 0 : i32
    return %arg0, %c0_i32 : i32, i32
  }
}

module attributes {stable_mosaic.version = 11 : i64} {
  func.func @_mm_kernel(%arg0: i32, %arg1: memref<16x96xf32, #tpu.memory_space<vmem>>, %arg2: memref<96x32xbf16, #tpu.memory_space<vmem>>, %arg3: memref<1x32xf32, #tpu.memory_space<vmem>>, %arg4: memref<16x32xf32, #tpu.memory_space<vmem>>) attributes {dimension_semantics = [#tpu.dimension_semantics<parallel>], iteration_bounds = array<i64: 1>, scalar_prefetch = 0 : i64, scratch_operands = 0 : i64, tpu.core_type = #tpu.core_type<tc>, window_params = [{transform_indices = @transform_0, window_bounds = array<i64: 16, 96>}, {pipeline_mode = #tpu.pipeline_mode<synchronous>, transform_indices = @transform_1, window_bounds = array<i64: 96, 32>}, {pipeline_mode = #tpu.pipeline_mode<synchronous>, transform_indices = @transform_2, window_bounds = array<i64: 1, 32>}, {transform_indices = @transform_3, window_bounds = array<i64: 16, 32>}]} {
    %c0 = arith.constant 0 : index
    %c0_0 = arith.constant 0 : index
    %0 = vector.load %arg1[%c0, %c0_0] : memref<16x96xf32, #tpu.memory_space<vmem>>, vector<16x96xf32>
    %1 = arith.truncf %0 : vector<16x96xf32> to vector<16x96xbf16>
    %c0_1 = arith.constant 0 : index
    %c0_2 = arith.constant 0 : index
    %2 = vector.load %arg2[%c0_1, %c0_2] : memref<96x32xbf16, #tpu.memory_space<vmem>>, vector<96x32xbf16>
    %cst = arith.constant dense<0.000000e+00> : vector<16x32xf32>
    %3 = tpu.matmul %1, %2, %cst {dimension_numbers = #tpu.dot_dimension_numbers<[1], [0], [0], [1], [0, 0, 1, 1], [], []>} : vector<16x96xbf16>, vector<96x32xbf16>, vector<16x32xf32> -> vector<16x32xf32>
    %c0_3 = arith.constant 0 : index
    %c0_4 = arith.constant 0 : index
    %4 = vector.load %arg3[%c0_3, %c0_4] : memref<1x32xf32, #tpu.memory_space<vmem>>, vector<1x32xf32>
    %5 = vector.broadcast %4 : vector<1x32xf32> to vector<16x32xf32>
    %6 = arith.addf %3, %5 : vector<16x32xf32>
    %c0_5 = arith.constant 0 : index
    %c0_6 = arith.constant 0 : index
    %7 = vector.load %arg4[%c0_5, %c0_6] : memref<16x32xf32, #tpu.memory_space<vmem>>, vector<16x32xf32>
    tpu.vector_store %arg4[%c0_5, %c0_6], %6 {strides = array<i32>} : memref<16x32xf32, #tpu.memory_space<vmem>>, vector<16x32xf32>,
    return
  }
  func.func @transform_0(%arg0: i32) -> (i32, i32) {
    %c0_i32 = arith.constant 0 : i32
    %c0_i32_0 = arith.constant 0 : i32
    return %arg0, %c0_i32 : i32, i32
  }
  func.func @transform_1(%arg0: i32) -> (i32, i32) {
    %c0_i32 = arith.constant 0 : i32
    %c0_i32_0 = arith.constant 0 : i32
    %c0_i32_1 = arith.constant 0 : i32
    return %c0_i32, %c0_i32_0 : i32, i32
  }
  func.func @transform_2(%arg0: i32) -> (i32, i32) {
    %c0_i32 = arith.constant 0 : i32
    %c0_i32_0 = arith.constant 0 : i32
    %c0_i32_1 = arith.constant 0 : i32
    return %c0_i32, %c0_i32_0 : i32, i32
  }
  func.func @transform_3(%arg0: i32) -> (i32, i32) {
    %c0_i32 = arith.constant 0 : i32
    %c0_i32_0 = arith.constant 0 : i32
    return %arg0, %c0_i32 : i32, i32
  }
}

module attributes {stable_mosaic.version = 11 : i64} {
  func.func @_ln_mm_kernel(%arg0: i32, %arg1: memref<16x32xf32, #tpu.memory_space<vmem>>, %arg2: memref<1x32xf32, #tpu.memory_space<vmem>>, %arg3: memref<1x32xf32, #tpu.memory_space<vmem>>, %arg4: memref<32x96xbf16, #tpu.memory_space<vmem>>, %arg5: memref<1x96xf32, #tpu.memory_space<vmem>>, %arg6: memref<16x96xbf16, #tpu.memory_space<vmem>>) attributes {dimension_semantics = [#tpu.dimension_semantics<parallel>], iteration_bounds = array<i64: 1>, scalar_prefetch = 0 : i64, scratch_operands = 0 : i64, tpu.core_type = #tpu.core_type<tc>, window_params = [{transform_indices = @transform_0, window_bounds = array<i64: 16, 32>}, {pipeline_mode = #tpu.pipeline_mode<synchronous>, transform_indices = @transform_1, window_bounds = array<i64: 1, 32>}, {pipeline_mode = #tpu.pipeline_mode<synchronous>, transform_indices = @transform_2, window_bounds = array<i64: 1, 32>}, {pipeline_mode = #tpu.pipeline_mode<synchronous>, transform_indices = @transform_3, window_bounds = array<i64: 32, 96>}, {pipeline_mode = #tpu.pipeline_mode<synchronous>, transform_indices = @transform_4, window_bounds = array<i64: 1, 96>}, {transform_indices = @transform_5, window_bounds = array<i64: 16, 96>}]} {
    %c0 = arith.constant 0 : index
    %c0_0 = arith.constant 0 : index
    %0 = vector.load %arg1[%c0, %c0_0] : memref<16x32xf32, #tpu.memory_space<vmem>>, vector<16x32xf32>
    %cst = arith.constant dense<0.000000e+00> : vector<16xf32>
    %1 = vector.multi_reduction <add>, %0, %cst [1] : vector<16x32xf32> to vector<16xf32>
    %2 = vector.shape_cast %1 : vector<16xf32> to vector<16x1xf32>
    %cst_1 = arith.constant 3.200000e+01 : f32
    %3 = vector.broadcast %cst_1 : f32 to vector<16x1xf32>
    %4 = arith.divf %2, %3 : vector<16x1xf32>
    %5 = vector.broadcast %4 : vector<16x1xf32> to vector<16x32xf32>
    %6 = arith.subf %0, %5 : vector<16x32xf32>
    %7 = arith.mulf %6, %6 : vector<16x32xf32>
    %cst_2 = arith.constant dense<0.000000e+00> : vector<16xf32>
    %8 = vector.multi_reduction <add>, %7, %cst_2 [1] : vector<16x32xf32> to vector<16xf32>
    %9 = vector.shape_cast %8 : vector<16xf32> to vector<16x1xf32>
    %cst_3 = arith.constant 3.200000e+01 : f32
    %10 = vector.broadcast %cst_3 : f32 to vector<16x1xf32>
    %11 = arith.divf %9, %10 : vector<16x1xf32>
    %12 = vector.broadcast %4 : vector<16x1xf32> to vector<16x32xf32>
    %13 = arith.subf %0, %12 : vector<16x32xf32>
    %cst_4 = arith.constant 9.99999974E-6 : f32
    %14 = vector.broadcast %cst_4 : f32 to vector<16x1xf32>
    %15 = arith.addf %11, %14 : vector<16x1xf32>
    %16 = math.rsqrt %15 : vector<16x1xf32>
    %17 = vector.broadcast %16 : vector<16x1xf32> to vector<16x32xf32>
    %18 = arith.mulf %13, %17 : vector<16x32xf32>
    %c0_5 = arith.constant 0 : index
    %c0_6 = arith.constant 0 : index
    %19 = vector.load %arg2[%c0_5, %c0_6] : memref<1x32xf32, #tpu.memory_space<vmem>>, vector<1x32xf32>
    %20 = vector.broadcast %19 : vector<1x32xf32> to vector<16x32xf32>
    %21 = arith.mulf %18, %20 : vector<16x32xf32>
    %c0_7 = arith.constant 0 : index
    %c0_8 = arith.constant 0 : index
    %22 = vector.load %arg3[%c0_7, %c0_8] : memref<1x32xf32, #tpu.memory_space<vmem>>, vector<1x32xf32>
    %23 = vector.broadcast %22 : vector<1x32xf32> to vector<16x32xf32>
    %24 = arith.addf %21, %23 : vector<16x32xf32>
    %25 = arith.truncf %24 : vector<16x32xf32> to vector<16x32xbf16>
    %c0_9 = arith.constant 0 : index
    %c0_10 = arith.constant 0 : index
    %26 = vector.load %arg4[%c0_9, %c0_10] : memref<32x96xbf16, #tpu.memory_space<vmem>>, vector<32x96xbf16>
    %cst_11 = arith.constant dense<0.000000e+00> : vector<16x96xf32>
    %27 = tpu.matmul %25, %26, %cst_11 {dimension_numbers = #tpu.dot_dimension_numbers<[1], [0], [0], [1], [0, 0, 1, 1], [], []>} : vector<16x32xbf16>, vector<32x96xbf16>, vector<16x96xf32> -> vector<16x96xf32>
    %c0_12 = arith.constant 0 : index
    %c0_13 = arith.constant 0 : index
    %28 = vector.load %arg5[%c0_12, %c0_13] : memref<1x96xf32, #tpu.memory_space<vmem>>, vector<1x96xf32>
    %29 = vector.broadcast %28 : vector<1x96xf32> to vector<16x96xf32>
    %30 = arith.addf %27, %29 : vector<16x96xf32>
    %31 = arith.truncf %30 : vector<16x96xf32> to vector<16x96xbf16>
    %c0_14 = arith.constant 0 : index
    %c0_15 = arith.constant 0 : index
    %32 = vector.load %arg6[%c0_14, %c0_15] : memref<16x96xbf16, #tpu.memory_space<vmem>>, vector<16x96xbf16>
    tpu.vector_store %arg6[%c0_14, %c0_15], %31 {strides = array<i32>} : memref<16x96xbf16, #tpu.memory_space<vmem>>, vector<16x96xbf16>,
    return
  }
  func.func @transform_0(%arg0: i32) -> (i32, i32) {
    %c0_i32 = arith.constant 0 : i32
    %c0_i32_0 = arith.constant 0 : i32
    return %arg0, %c0_i32 : i32, i32
  }
  func.func @transform_1(%arg0: i32) -> (i32, i32) {
    %c0_i32 = arith.constant 0 : i32
    %c0_i32_0 = arith.constant 0 : i32
    %c0_i32_1 = arith.constant 0 : i32
    return %c0_i32, %c0_i32_0 : i32, i32
  }
  func.func @transform_2(%arg0: i32) -> (i32, i32) {
    %c0_i32 = arith.constant 0 : i32
    %c0_i32_0 = arith.constant 0 : i32
    %c0_i32_1 = arith.constant 0 : i32
    return %c0_i32, %c0_i32_0 : i32, i32
  }
  func.func @transform_3(%arg0: i32) -> (i32, i32) {
    %c0_i32 = arith.constant 0 : i32
    %c0_i32_0 = arith.constant 0 : i32
    %c0_i32_1 = arith.constant 0 : i32
    return %c0_i32, %c0_i32_0 : i32, i32
  }
  func.func @transform_4(%arg0: i32) -> (i32, i32) {
    %c0_i32 = arith.constant 0 : i32
    %c0_i32_0 = arith.constant 0 : i32
    %c0_i32_1 = arith.constant 0 : i32
    return %c0_i32, %c0_i32_0 : i32, i32
  }
  func.func @transform_5(%arg0: i32) -> (i32, i32) {
    %c0_i32 = arith.constant 0 : i32
    %c0_i32_0 = arith.constant 0 : i32
    return %arg0, %c0_i32 : i32, i32
  }
}

module attributes {stable_mosaic.version = 11 : i64} {
  func.func @_ffn_kernel(%arg0: i32, %arg1: memref<16x32xf32, #tpu.memory_space<vmem>>, %arg2: memref<1x32xf32, #tpu.memory_space<vmem>>, %arg3: memref<1x32xf32, #tpu.memory_space<vmem>>, %arg4: memref<32x64xbf16, #tpu.memory_space<vmem>>, %arg5: memref<1x64xf32, #tpu.memory_space<vmem>>, %arg6: memref<64x32xbf16, #tpu.memory_space<vmem>>, %arg7: memref<1x32xf32, #tpu.memory_space<vmem>>, %arg8: memref<1x32xf32, #tpu.memory_space<vmem>>, %arg9: memref<1x32xf32, #tpu.memory_space<vmem>>, %arg10: memref<16x32xf32, #tpu.memory_space<vmem>>) attributes {dimension_semantics = [#tpu.dimension_semantics<parallel>], iteration_bounds = array<i64: 1>, scalar_prefetch = 0 : i64, scratch_operands = 0 : i64, tpu.core_type = #tpu.core_type<tc>, window_params = [{transform_indices = @transform_0, window_bounds = array<i64: 16, 32>}, {pipeline_mode = #tpu.pipeline_mode<synchronous>, transform_indices = @transform_1, window_bounds = array<i64: 1, 32>}, {pipeline_mode = #tpu.pipeline_mode<synchronous>, transform_indices = @transform_2, window_bounds = array<i64: 1, 32>}, {pipeline_mode = #tpu.pipeline_mode<synchronous>, transform_indices = @transform_3, window_bounds = array<i64: 32, 64>}, {pipeline_mode = #tpu.pipeline_mode<synchronous>, transform_indices = @transform_4, window_bounds = array<i64: 1, 64>}, {pipeline_mode = #tpu.pipeline_mode<synchronous>, transform_indices = @transform_5, window_bounds = array<i64: 64, 32>}, {pipeline_mode = #tpu.pipeline_mode<synchronous>, transform_indices = @transform_6, window_bounds = array<i64: 1, 32>}, {pipeline_mode = #tpu.pipeline_mode<synchronous>, transform_indices = @transform_7, window_bounds = array<i64: 1, 32>}, {pipeline_mode = #tpu.pipeline_mode<synchronous>, transform_indices = @transform_8, window_bounds = array<i64: 1, 32>}, {transform_indices = @transform_9, window_bounds = array<i64: 16, 32>}]} {
    %c0 = arith.constant 0 : index
    %c0_0 = arith.constant 0 : index
    %0 = vector.load %arg1[%c0, %c0_0] : memref<16x32xf32, #tpu.memory_space<vmem>>, vector<16x32xf32>
    %cst = arith.constant dense<0.000000e+00> : vector<16xf32>
    %1 = vector.multi_reduction <add>, %0, %cst [1] : vector<16x32xf32> to vector<16xf32>
    %2 = vector.shape_cast %1 : vector<16xf32> to vector<16x1xf32>
    %cst_1 = arith.constant 3.200000e+01 : f32
    %3 = vector.broadcast %cst_1 : f32 to vector<16x1xf32>
    %4 = arith.divf %2, %3 : vector<16x1xf32>
    %5 = vector.broadcast %4 : vector<16x1xf32> to vector<16x32xf32>
    %6 = arith.subf %0, %5 : vector<16x32xf32>
    %7 = arith.mulf %6, %6 : vector<16x32xf32>
    %cst_2 = arith.constant dense<0.000000e+00> : vector<16xf32>
    %8 = vector.multi_reduction <add>, %7, %cst_2 [1] : vector<16x32xf32> to vector<16xf32>
    %9 = vector.shape_cast %8 : vector<16xf32> to vector<16x1xf32>
    %cst_3 = arith.constant 3.200000e+01 : f32
    %10 = vector.broadcast %cst_3 : f32 to vector<16x1xf32>
    %11 = arith.divf %9, %10 : vector<16x1xf32>
    %12 = vector.broadcast %4 : vector<16x1xf32> to vector<16x32xf32>
    %13 = arith.subf %0, %12 : vector<16x32xf32>
    %cst_4 = arith.constant 9.99999974E-6 : f32
    %14 = vector.broadcast %cst_4 : f32 to vector<16x1xf32>
    %15 = arith.addf %11, %14 : vector<16x1xf32>
    %16 = math.rsqrt %15 : vector<16x1xf32>
    %17 = vector.broadcast %16 : vector<16x1xf32> to vector<16x32xf32>
    %18 = arith.mulf %13, %17 : vector<16x32xf32>
    %c0_5 = arith.constant 0 : index
    %c0_6 = arith.constant 0 : index
    %19 = vector.load %arg2[%c0_5, %c0_6] : memref<1x32xf32, #tpu.memory_space<vmem>>, vector<1x32xf32>
    %20 = vector.broadcast %19 : vector<1x32xf32> to vector<16x32xf32>
    %21 = arith.mulf %18, %20 : vector<16x32xf32>
    %c0_7 = arith.constant 0 : index
    %c0_8 = arith.constant 0 : index
    %22 = vector.load %arg3[%c0_7, %c0_8] : memref<1x32xf32, #tpu.memory_space<vmem>>, vector<1x32xf32>
    %23 = vector.broadcast %22 : vector<1x32xf32> to vector<16x32xf32>
    %24 = arith.addf %21, %23 : vector<16x32xf32>
    %25 = arith.truncf %24 : vector<16x32xf32> to vector<16x32xbf16>
    %c0_9 = arith.constant 0 : index
    %c0_10 = arith.constant 0 : index
    %26 = vector.load %arg4[%c0_9, %c0_10] : memref<32x64xbf16, #tpu.memory_space<vmem>>, vector<32x64xbf16>
    %cst_11 = arith.constant dense<0.000000e+00> : vector<16x64xf32>
    %27 = tpu.matmul %25, %26, %cst_11 {dimension_numbers = #tpu.dot_dimension_numbers<[1], [0], [0], [1], [0, 0, 1, 1], [], []>} : vector<16x32xbf16>, vector<32x64xbf16>, vector<16x64xf32> -> vector<16x64xf32>
    %c0_12 = arith.constant 0 : index
    %c0_13 = arith.constant 0 : index
    %28 = vector.load %arg5[%c0_12, %c0_13] : memref<1x64xf32, #tpu.memory_space<vmem>>, vector<1x64xf32>
    %29 = vector.broadcast %28 : vector<1x64xf32> to vector<16x64xf32>
    %30 = arith.addf %27, %29 : vector<16x64xf32>
    %cst_14 = arith.constant -3.000000e+01 : f32
    %31 = vector.broadcast %cst_14 : f32 to vector<16x64xf32>
    %32 = arith.maximumf %30, %31 : vector<16x64xf32>
    %cst_15 = arith.constant 0.000000e+00 : f32
    %33 = vector.broadcast %cst_15 : f32 to vector<16x64xf32>
    %34 = arith.subf %33, %32 : vector<16x64xf32>
    %35 = math.exp %34 : vector<16x64xf32>
    %cst_16 = arith.constant 1.000000e+00 : f32
    %36 = vector.broadcast %cst_16 : f32 to vector<16x64xf32>
    %37 = arith.addf %36, %35 : vector<16x64xf32>
    %38 = tpu.reciprocal %37 {approx = true} : vector<16x64xf32> -> vector<16x64xf32>
    %39 = arith.mulf %30, %38 : vector<16x64xf32>
    %40 = arith.truncf %39 : vector<16x64xf32> to vector<16x64xbf16>
    %c0_17 = arith.constant 0 : index
    %c0_18 = arith.constant 0 : index
    %41 = vector.load %arg6[%c0_17, %c0_18] : memref<64x32xbf16, #tpu.memory_space<vmem>>, vector<64x32xbf16>
    %cst_19 = arith.constant dense<0.000000e+00> : vector<16x32xf32>
    %42 = tpu.matmul %40, %41, %cst_19 {dimension_numbers = #tpu.dot_dimension_numbers<[1], [0], [0], [1], [0, 0, 1, 1], [], []>} : vector<16x64xbf16>, vector<64x32xbf16>, vector<16x32xf32> -> vector<16x32xf32>
    %c0_20 = arith.constant 0 : index
    %c0_21 = arith.constant 0 : index
    %43 = vector.load %arg7[%c0_20, %c0_21] : memref<1x32xf32, #tpu.memory_space<vmem>>, vector<1x32xf32>
    %44 = vector.broadcast %43 : vector<1x32xf32> to vector<16x32xf32>
    %45 = arith.addf %42, %44 : vector<16x32xf32>
    %cst_22 = arith.constant 5.000000e-01 : f32
    %46 = vector.broadcast %cst_22 : f32 to vector<16x32xf32>
    %47 = arith.mulf %46, %45 : vector<16x32xf32>
    %48 = arith.addf %0, %47 : vector<16x32xf32>
    %c0_23 = arith.constant 0 : index
    %c0_24 = arith.constant 0 : index
    %49 = vector.load %arg10[%c0_23, %c0_24] : memref<16x32xf32, #tpu.memory_space<vmem>>, vector<16x32xf32>
    tpu.vector_store %arg10[%c0_23, %c0_24], %48 {strides = array<i32>} : memref<16x32xf32, #tpu.memory_space<vmem>>, vector<16x32xf32>,
    return
  }
  func.func @transform_0(%arg0: i32) -> (i32, i32) {
    %c0_i32 = arith.constant 0 : i32
    %c0_i32_0 = arith.constant 0 : i32
    return %arg0, %c0_i32 : i32, i32
  }
  func.func @transform_1(%arg0: i32) -> (i32, i32) {
    %c0_i32 = arith.constant 0 : i32
    %c0_i32_0 = arith.constant 0 : i32
    %c0_i32_1 = arith.constant 0 : i32
    return %c0_i32, %c0_i32_0 : i32, i32
  }
  func.func @transform_2(%arg0: i32) -> (i32, i32) {
    %c0_i32 = arith.constant 0 : i32
    %c0_i32_0 = arith.constant 0 : i32
    %c0_i32_1 = arith.constant 0 : i32
    return %c0_i32, %c0_i32_0 : i32, i32
  }
  func.func @transform_3(%arg0: i32) -> (i32, i32) {
    %c0_i32 = arith.constant 0 : i32
    %c0_i32_0 = arith.constant 0 : i32
    %c0_i32_1 = arith.constant 0 : i32
    return %c0_i32, %c0_i32_0 : i32, i32
  }
  func.func @transform_4(%arg0: i32) -> (i32, i32) {
    %c0_i32 = arith.constant 0 : i32
    %c0_i32_0 = arith.constant 0 : i32
    %c0_i32_1 = arith.constant 0 : i32
    return %c0_i32, %c0_i32_0 : i32, i32
  }
  func.func @transform_5(%arg0: i32) -> (i32, i32) {
    %c0_i32 = arith.constant 0 : i32
    %c0_i32_0 = arith.constant 0 : i32
    %c0_i32_1 = arith.constant 0 : i32
    return %c0_i32, %c0_i32_0 : i32, i32
  }
  func.func @transform_6(%arg0: i32) -> (i32, i32) {
    %c0_i32 = arith.constant 0 : i32
    %c0_i32_0 = arith.constant 0 : i32
    %c0_i32_1 = arith.constant 0 : i32
    return %c0_i32, %c0_i32_0 : i32, i32
  }
  func.func @transform_7(%arg0: i32) -> (i32, i32) {
    %c0_i32 = arith.constant 0 : i32
    %c0_i32_0 = arith.constant 0 : i32
    %c0_i32_1 = arith.constant 0 : i32
    return %c0_i32, %c0_i32_0 : i32, i32
  }
  func.func @transform_8(%arg0: i32) -> (i32, i32) {
    %c0_i32 = arith.constant 0 : i32
    %c0_i32_0 = arith.constant 0 : i32
    %c0_i32_1 = arith.constant 0 : i32
    return %c0_i32, %c0_i32_0 : i32, i32
  }
  func.func @transform_9(%arg0: i32) -> (i32, i32) {
    %c0_i32 = arith.constant 0 : i32
    %c0_i32_0 = arith.constant 0 : i32
    return %arg0, %c0_i32 : i32, i32
  }
}

module attributes {stable_mosaic.version = 11 : i64} {
  func.func @_mm_res_kernel(%arg0: i32, %arg1: memref<16x32xbf16, #tpu.memory_space<vmem>>, %arg2: memref<16x32xf32, #tpu.memory_space<vmem>>, %arg3: memref<32x32xbf16, #tpu.memory_space<vmem>>, %arg4: memref<1x32xf32, #tpu.memory_space<vmem>>, %arg5: memref<16x32xf32, #tpu.memory_space<vmem>>) attributes {dimension_semantics = [#tpu.dimension_semantics<parallel>], iteration_bounds = array<i64: 1>, scalar_prefetch = 0 : i64, scratch_operands = 0 : i64, tpu.core_type = #tpu.core_type<tc>, window_params = [{transform_indices = @transform_0, window_bounds = array<i64: 16, 32>}, {transform_indices = @transform_1, window_bounds = array<i64: 16, 32>}, {pipeline_mode = #tpu.pipeline_mode<synchronous>, transform_indices = @transform_2, window_bounds = array<i64: 32, 32>}, {pipeline_mode = #tpu.pipeline_mode<synchronous>, transform_indices = @transform_3, window_bounds = array<i64: 1, 32>}, {transform_indices = @transform_4, window_bounds = array<i64: 16, 32>}]} {
    %c0 = arith.constant 0 : index
    %c0_0 = arith.constant 0 : index
    %0 = vector.load %arg2[%c0, %c0_0] : memref<16x32xf32, #tpu.memory_space<vmem>>, vector<16x32xf32>
    %c0_1 = arith.constant 0 : index
    %c0_2 = arith.constant 0 : index
    %1 = vector.load %arg1[%c0_1, %c0_2] : memref<16x32xbf16, #tpu.memory_space<vmem>>, vector<16x32xbf16>
    %c0_3 = arith.constant 0 : index
    %c0_4 = arith.constant 0 : index
    %2 = vector.load %arg3[%c0_3, %c0_4] : memref<32x32xbf16, #tpu.memory_space<vmem>>, vector<32x32xbf16>
    %cst = arith.constant dense<0.000000e+00> : vector<16x32xf32>
    %3 = tpu.matmul %1, %2, %cst {dimension_numbers = #tpu.dot_dimension_numbers<[1], [0], [0], [1], [0, 0, 1, 1], [], []>} : vector<16x32xbf16>, vector<32x32xbf16>, vector<16x32xf32> -> vector<16x32xf32>
    %c0_5 = arith.constant 0 : index
    %c0_6 = arith.constant 0 : index
    %4 = vector.load %arg4[%c0_5, %c0_6] : memref<1x32xf32, #tpu.memory_space<vmem>>, vector<1x32xf32>
    %5 = vector.broadcast %4 : vector<1x32xf32> to vector<16x32xf32>
    %6 = arith.addf %3, %5 : vector<16x32xf32>
    %7 = arith.addf %0, %6 : vector<16x32xf32>
    %c0_7 = arith.constant 0 : index
    %c0_8 = arith.constant 0 : index
    %8 = vector.load %arg5[%c0_7, %c0_8] : memref<16x32xf32, #tpu.memory_space<vmem>>, vector<16x32xf32>
    tpu.vector_store %arg5[%c0_7, %c0_8], %7 {strides = array<i32>} : memref<16x32xf32, #tpu.memory_space<vmem>>, vector<16x32xf32>,
    return
  }
  func.func @transform_0(%arg0: i32) -> (i32, i32) {
    %c0_i32 = arith.constant 0 : i32
    %c0_i32_0 = arith.constant 0 : i32
    return %arg0, %c0_i32 : i32, i32
  }
  func.func @transform_1(%arg0: i32) -> (i32, i32) {
    %c0_i32 = arith.constant 0 : i32
    %c0_i32_0 = arith.constant 0 : i32
    return %arg0, %c0_i32 : i32, i32
  }
  func.func @transform_2(%arg0: i32) -> (i32, i32) {
    %c0_i32 = arith.constant 0 : i32
    %c0_i32_0 = arith.constant 0 : i32
    %c0_i32_1 = arith.constant 0 : i32
    return %c0_i32, %c0_i32_0 : i32, i32
  }
  func.func @transform_3(%arg0: i32) -> (i32, i32) {
    %c0_i32 = arith.constant 0 : i32
    %c0_i32_0 = arith.constant 0 : i32
    %c0_i32_1 = arith.constant 0 : i32
    return %c0_i32, %c0_i32_0 : i32, i32
  }
  func.func @transform_4(%arg0: i32) -> (i32, i32) {
    %c0_i32 = arith.constant 0 : i32
    %c0_i32_0 = arith.constant 0 : i32
    return %arg0, %c0_i32 : i32, i32
  }
}

module attributes {stable_mosaic.version = 11 : i64} {
  func.func @_ln_glu_kernel(%arg0: i32, %arg1: memref<16x32xf32, #tpu.memory_space<vmem>>, %arg2: memref<1x32xf32, #tpu.memory_space<vmem>>, %arg3: memref<1x32xf32, #tpu.memory_space<vmem>>, %arg4: memref<32x32xbf16, #tpu.memory_space<vmem>>, %arg5: memref<1x32xf32, #tpu.memory_space<vmem>>, %arg6: memref<32x32xbf16, #tpu.memory_space<vmem>>, %arg7: memref<1x32xf32, #tpu.memory_space<vmem>>, %arg8: memref<16x32xf32, #tpu.memory_space<vmem>>) attributes {dimension_semantics = [#tpu.dimension_semantics<parallel>], iteration_bounds = array<i64: 1>, scalar_prefetch = 0 : i64, scratch_operands = 0 : i64, tpu.core_type = #tpu.core_type<tc>, window_params = [{transform_indices = @transform_0, window_bounds = array<i64: 16, 32>}, {pipeline_mode = #tpu.pipeline_mode<synchronous>, transform_indices = @transform_1, window_bounds = array<i64: 1, 32>}, {pipeline_mode = #tpu.pipeline_mode<synchronous>, transform_indices = @transform_2, window_bounds = array<i64: 1, 32>}, {pipeline_mode = #tpu.pipeline_mode<synchronous>, transform_indices = @transform_3, window_bounds = array<i64: 32, 32>}, {pipeline_mode = #tpu.pipeline_mode<synchronous>, transform_indices = @transform_4, window_bounds = array<i64: 1, 32>}, {pipeline_mode = #tpu.pipeline_mode<synchronous>, transform_indices = @transform_5, window_bounds = array<i64: 32, 32>}, {pipeline_mode = #tpu.pipeline_mode<synchronous>, transform_indices = @transform_6, window_bounds = array<i64: 1, 32>}, {transform_indices = @transform_7, window_bounds = array<i64: 16, 32>}]} {
    %c0 = arith.constant 0 : index
    %c0_0 = arith.constant 0 : index
    %0 = vector.load %arg1[%c0, %c0_0] : memref<16x32xf32, #tpu.memory_space<vmem>>, vector<16x32xf32>
    %cst = arith.constant dense<0.000000e+00> : vector<16xf32>
    %1 = vector.multi_reduction <add>, %0, %cst [1] : vector<16x32xf32> to vector<16xf32>
    %2 = vector.shape_cast %1 : vector<16xf32> to vector<16x1xf32>
    %cst_1 = arith.constant 3.200000e+01 : f32
    %3 = vector.broadcast %cst_1 : f32 to vector<16x1xf32>
    %4 = arith.divf %2, %3 : vector<16x1xf32>
    %5 = vector.broadcast %4 : vector<16x1xf32> to vector<16x32xf32>
    %6 = arith.subf %0, %5 : vector<16x32xf32>
    %7 = arith.mulf %6, %6 : vector<16x32xf32>
    %cst_2 = arith.constant dense<0.000000e+00> : vector<16xf32>
    %8 = vector.multi_reduction <add>, %7, %cst_2 [1] : vector<16x32xf32> to vector<16xf32>
    %9 = vector.shape_cast %8 : vector<16xf32> to vector<16x1xf32>
    %cst_3 = arith.constant 3.200000e+01 : f32
    %10 = vector.broadcast %cst_3 : f32 to vector<16x1xf32>
    %11 = arith.divf %9, %10 : vector<16x1xf32>
    %12 = vector.broadcast %4 : vector<16x1xf32> to vector<16x32xf32>
    %13 = arith.subf %0, %12 : vector<16x32xf32>
    %cst_4 = arith.constant 9.99999974E-6 : f32
    %14 = vector.broadcast %cst_4 : f32 to vector<16x1xf32>
    %15 = arith.addf %11, %14 : vector<16x1xf32>
    %16 = math.rsqrt %15 : vector<16x1xf32>
    %17 = vector.broadcast %16 : vector<16x1xf32> to vector<16x32xf32>
    %18 = arith.mulf %13, %17 : vector<16x32xf32>
    %c0_5 = arith.constant 0 : index
    %c0_6 = arith.constant 0 : index
    %19 = vector.load %arg2[%c0_5, %c0_6] : memref<1x32xf32, #tpu.memory_space<vmem>>, vector<1x32xf32>
    %20 = vector.broadcast %19 : vector<1x32xf32> to vector<16x32xf32>
    %21 = arith.mulf %18, %20 : vector<16x32xf32>
    %c0_7 = arith.constant 0 : index
    %c0_8 = arith.constant 0 : index
    %22 = vector.load %arg3[%c0_7, %c0_8] : memref<1x32xf32, #tpu.memory_space<vmem>>, vector<1x32xf32>
    %23 = vector.broadcast %22 : vector<1x32xf32> to vector<16x32xf32>
    %24 = arith.addf %21, %23 : vector<16x32xf32>
    %25 = arith.truncf %24 : vector<16x32xf32> to vector<16x32xbf16>
    %c0_9 = arith.constant 0 : index
    %c0_10 = arith.constant 0 : index
    %26 = vector.load %arg4[%c0_9, %c0_10] : memref<32x32xbf16, #tpu.memory_space<vmem>>, vector<32x32xbf16>
    %cst_11 = arith.constant dense<0.000000e+00> : vector<16x32xf32>
    %27 = tpu.matmul %25, %26, %cst_11 {dimension_numbers = #tpu.dot_dimension_numbers<[1], [0], [0], [1], [0, 0, 1, 1], [], []>} : vector<16x32xbf16>, vector<32x32xbf16>, vector<16x32xf32> -> vector<16x32xf32>
    %c0_12 = arith.constant 0 : index
    %c0_13 = arith.constant 0 : index
    %28 = vector.load %arg5[%c0_12, %c0_13] : memref<1x32xf32, #tpu.memory_space<vmem>>, vector<1x32xf32>
    %29 = vector.broadcast %28 : vector<1x32xf32> to vector<16x32xf32>
    %30 = arith.addf %27, %29 : vector<16x32xf32>
    %c0_14 = arith.constant 0 : index
    %c0_15 = arith.constant 0 : index
    %31 = vector.load %arg6[%c0_14, %c0_15] : memref<32x32xbf16, #tpu.memory_space<vmem>>, vector<32x32xbf16>
    %cst_16 = arith.constant dense<0.000000e+00> : vector<16x32xf32>
    %32 = tpu.matmul %25, %31, %cst_16 {dimension_numbers = #tpu.dot_dimension_numbers<[1], [0], [0], [1], [0, 0, 1, 1], [], []>} : vector<16x32xbf16>, vector<32x32xbf16>, vector<16x32xf32> -> vector<16x32xf32>
    %c0_17 = arith.constant 0 : index
    %c0_18 = arith.constant 0 : index
    %33 = vector.load %arg7[%c0_17, %c0_18] : memref<1x32xf32, #tpu.memory_space<vmem>>, vector<1x32xf32>
    %34 = vector.broadcast %33 : vector<1x32xf32> to vector<16x32xf32>
    %35 = arith.addf %32, %34 : vector<16x32xf32>
    %cst_19 = arith.constant -3.000000e+01 : f32
    %36 = vector.broadcast %cst_19 : f32 to vector<16x32xf32>
    %37 = arith.maximumf %35, %36 : vector<16x32xf32>
    %cst_20 = arith.constant 0.000000e+00 : f32
    %38 = vector.broadcast %cst_20 : f32 to vector<16x32xf32>
    %39 = arith.subf %38, %37 : vector<16x32xf32>
    %40 = math.exp %39 : vector<16x32xf32>
    %cst_21 = arith.constant 1.000000e+00 : f32
    %41 = vector.broadcast %cst_21 : f32 to vector<16x32xf32>
    %42 = arith.addf %41, %40 : vector<16x32xf32>
    %43 = tpu.reciprocal %42 {approx = true} : vector<16x32xf32> -> vector<16x32xf32>
    %44 = arith.mulf %30, %43 : vector<16x32xf32>
    %c0_22 = arith.constant 0 : index
    %c0_23 = arith.constant 0 : index
    %45 = vector.load %arg8[%c0_22, %c0_23] : memref<16x32xf32, #tpu.memory_space<vmem>>, vector<16x32xf32>
    tpu.vector_store %arg8[%c0_22, %c0_23], %44 {strides = array<i32>} : memref<16x32xf32, #tpu.memory_space<vmem>>, vector<16x32xf32>,
    return
  }
  func.func @transform_0(%arg0: i32) -> (i32, i32) {
    %c0_i32 = arith.constant 0 : i32
    %c0_i32_0 = arith.constant 0 : i32
    return %arg0, %c0_i32 : i32, i32
  }
  func.func @transform_1(%arg0: i32) -> (i32, i32) {
    %c0_i32 = arith.constant 0 : i32
    %c0_i32_0 = arith.constant 0 : i32
    %c0_i32_1 = arith.constant 0 : i32
    return %c0_i32, %c0_i32_0 : i32, i32
  }
  func.func @transform_2(%arg0: i32) -> (i32, i32) {
    %c0_i32 = arith.constant 0 : i32
    %c0_i32_0 = arith.constant 0 : i32
    %c0_i32_1 = arith.constant 0 : i32
    return %c0_i32, %c0_i32_0 : i32, i32
  }
  func.func @transform_3(%arg0: i32) -> (i32, i32) {
    %c0_i32 = arith.constant 0 : i32
    %c0_i32_0 = arith.constant 0 : i32
    %c0_i32_1 = arith.constant 0 : i32
    return %c0_i32, %c0_i32_0 : i32, i32
  }
  func.func @transform_4(%arg0: i32) -> (i32, i32) {
    %c0_i32 = arith.constant 0 : i32
    %c0_i32_0 = arith.constant 0 : i32
    %c0_i32_1 = arith.constant 0 : i32
    return %c0_i32, %c0_i32_0 : i32, i32
  }
  func.func @transform_5(%arg0: i32) -> (i32, i32) {
    %c0_i32 = arith.constant 0 : i32
    %c0_i32_0 = arith.constant 0 : i32
    %c0_i32_1 = arith.constant 0 : i32
    return %c0_i32, %c0_i32_0 : i32, i32
  }
  func.func @transform_6(%arg0: i32) -> (i32, i32) {
    %c0_i32 = arith.constant 0 : i32
    %c0_i32_0 = arith.constant 0 : i32
    %c0_i32_1 = arith.constant 0 : i32
    return %c0_i32, %c0_i32_0 : i32, i32
  }
  func.func @transform_7(%arg0: i32) -> (i32, i32) {
    %c0_i32 = arith.constant 0 : i32
    %c0_i32_0 = arith.constant 0 : i32
    return %arg0, %c0_i32 : i32, i32
  }
}

module attributes {stable_mosaic.version = 11 : i64} {
  func.func @_attn_kernel(%arg0: i32, %arg1: memref<1x8x32xbf16, #tpu.memory_space<vmem>>, %arg2: memref<1x8x32xbf16, #tpu.memory_space<vmem>>, %arg3: memref<1x8x32xbf16, #tpu.memory_space<vmem>>, %arg4: memref<1x1x8xf32, #tpu.memory_space<vmem>>, %arg5: memref<1x8x32xbf16, #tpu.memory_space<vmem>>) attributes {dimension_semantics = [#tpu.dimension_semantics<parallel>], iteration_bounds = array<i64: 2>, scalar_prefetch = 0 : i64, scratch_operands = 0 : i64, tpu.core_type = #tpu.core_type<tc>, window_params = [{transform_indices = @transform_0, window_bounds = array<i64: 1, 8, 32>}, {transform_indices = @transform_1, window_bounds = array<i64: 1, 8, 32>}, {transform_indices = @transform_2, window_bounds = array<i64: 1, 8, 32>}, {transform_indices = @transform_3, window_bounds = array<i64: 1, 1, 8>}, {transform_indices = @transform_4, window_bounds = array<i64: 1, 8, 32>}]} {
    %c0 = arith.constant 0 : index
    %c0_0 = arith.constant 0 : index
    %c0_1 = arith.constant 0 : index
    %0 = vector.load %arg1[%c0, %c0_0, %c0_1] : memref<1x8x32xbf16, #tpu.memory_space<vmem>>, vector<1x8x32xbf16>
    %1 = vector.shape_cast %0 : vector<1x8x32xbf16> to vector<8x32xbf16>
    %cst = arith.constant 3.535160e-01 : bf16
    %2 = vector.broadcast %cst : bf16 to vector<8x32xbf16>
    %3 = arith.mulf %1, %2 : vector<8x32xbf16>
    %c0_2 = arith.constant 0 : index
    %c0_3 = arith.constant 0 : index
    %c0_4 = arith.constant 0 : index
    %4 = vector.load %arg2[%c0_2, %c0_3, %c0_4] : memref<1x8x32xbf16, #tpu.memory_space<vmem>>, vector<1x8x32xbf16>
    %5 = vector.shape_cast %4 : vector<1x8x32xbf16> to vector<8x32xbf16>
    %c0_5 = arith.constant 0 : index
    %c0_6 = arith.constant 0 : index
    %c0_7 = arith.constant 0 : index
    %6 = vector.load %arg3[%c0_5, %c0_6, %c0_7] : memref<1x8x32xbf16, #tpu.memory_space<vmem>>, vector<1x8x32xbf16>
    %7 = vector.shape_cast %6 : vector<1x8x32xbf16> to vector<8x32xbf16>
    %c0_8 = arith.constant 0 : index
    %c0_9 = arith.constant 0 : index
    %c0_10 = arith.constant 0 : index
    %8 = vector.load %arg4[%c0_8, %c0_9, %c0_10] : memref<1x1x8xf32, #tpu.memory_space<vmem>>, vector<1x1x8xf32>
    %9 = vector.shape_cast %8 : vector<1x1x8xf32> to vector<1x8xf32>
    %10 = vector.extract_strided_slice %3 {offsets = [0, 0], sizes = [8, 8], strides = [1, 1]} : vector<8x32xbf16> to vector<8x8xbf16>
    %11 = vector.extract_strided_slice %5 {offsets = [0, 0], sizes = [8, 8], strides = [1, 1]} : vector<8x32xbf16> to vector<8x8xbf16>
    %cst_11 = arith.constant dense<0.000000e+00> : vector<8x8xf32>
    %12 = tpu.matmul %10, %11, %cst_11 {dimension_numbers = #tpu.dot_dimension_numbers<[1], [1], [0], [0], [0, 0, 1, 0], [], []>} : vector<8x8xbf16>, vector<8x8xbf16>, vector<8x8xf32> -> vector<8x8xf32>
    %13 = vector.broadcast %9 : vector<1x8xf32> to vector<8x8xf32>
    %14 = arith.addf %12, %13 : vector<8x8xf32>
    %cst_12 = arith.constant dense<0xFF800000> : vector<8xf32>
    %15 = vector.multi_reduction <maximumf>, %14, %cst_12 [1] : vector<8x8xf32> to vector<8xf32>
    %16 = vector.shape_cast %15 : vector<8xf32> to vector<8x1xf32>
    %17 = vector.broadcast %16 : vector<8x1xf32> to vector<8x8xf32>
    %18 = arith.subf %14, %17 : vector<8x8xf32>
    %19 = math.exp %18 : vector<8x8xf32>
    %cst_13 = arith.constant dense<0.000000e+00> : vector<8xf32>
    %20 = vector.multi_reduction <add>, %19, %cst_13 [1] : vector<8x8xf32> to vector<8xf32>
    %21 = vector.shape_cast %20 : vector<8xf32> to vector<8x1xf32>
    %22 = tpu.reciprocal %21 {approx = true} : vector<8x1xf32> -> vector<8x1xf32>
    %23 = vector.broadcast %22 : vector<8x1xf32> to vector<8x8xf32>
    %24 = arith.mulf %19, %23 : vector<8x8xf32>
    %25 = arith.truncf %24 : vector<8x8xf32> to vector<8x8xbf16>
    %26 = vector.extract_strided_slice %7 {offsets = [0, 0], sizes = [8, 8], strides = [1, 1]} : vector<8x32xbf16> to vector<8x8xbf16>
    %cst_14 = arith.constant dense<0.000000e+00> : vector<8x8xf32>
    %27 = tpu.matmul %25, %26, %cst_14 {dimension_numbers = #tpu.dot_dimension_numbers<[1], [0], [0], [1], [0, 0, 1, 1], [], []>} : vector<8x8xbf16>, vector<8x8xbf16>, vector<8x8xf32> -> vector<8x8xf32>
    %28 = vector.extract_strided_slice %3 {offsets = [0, 8], sizes = [8, 8], strides = [1, 1]} : vector<8x32xbf16> to vector<8x8xbf16>
    %29 = vector.extract_strided_slice %5 {offsets = [0, 8], sizes = [8, 8], strides = [1, 1]} : vector<8x32xbf16> to vector<8x8xbf16>
    %cst_15 = arith.constant dense<0.000000e+00> : vector<8x8xf32>
    %30 = tpu.matmul %28, %29, %cst_15 {dimension_numbers = #tpu.dot_dimension_numbers<[1], [1], [0], [0], [0, 0, 1, 0], [], []>} : vector<8x8xbf16>, vector<8x8xbf16>, vector<8x8xf32> -> vector<8x8xf32>
    %31 = vector.broadcast %9 : vector<1x8xf32> to vector<8x8xf32>
    %32 = arith.addf %30, %31 : vector<8x8xf32>
    %cst_16 = arith.constant dense<0xFF800000> : vector<8xf32>
    %33 = vector.multi_reduction <maximumf>, %32, %cst_16 [1] : vector<8x8xf32> to vector<8xf32>
    %34 = vector.shape_cast %33 : vector<8xf32> to vector<8x1xf32>
    %35 = vector.broadcast %34 : vector<8x1xf32> to vector<8x8xf32>
    %36 = arith.subf %32, %35 : vector<8x8xf32>
    %37 = math.exp %36 : vector<8x8xf32>
    %cst_17 = arith.constant dense<0.000000e+00> : vector<8xf32>
    %38 = vector.multi_reduction <add>, %37, %cst_17 [1] : vector<8x8xf32> to vector<8xf32>
    %39 = vector.shape_cast %38 : vector<8xf32> to vector<8x1xf32>
    %40 = tpu.reciprocal %39 {approx = true} : vector<8x1xf32> -> vector<8x1xf32>
    %41 = vector.broadcast %40 : vector<8x1xf32> to vector<8x8xf32>
    %42 = arith.mulf %37, %41 : vector<8x8xf32>
    %43 = arith.truncf %42 : vector<8x8xf32> to vector<8x8xbf16>
    %44 = vector.extract_strided_slice %7 {offsets = [0, 8], sizes = [8, 8], strides = [1, 1]} : vector<8x32xbf16> to vector<8x8xbf16>
    %cst_18 = arith.constant dense<0.000000e+00> : vector<8x8xf32>
    %45 = tpu.matmul %43, %44, %cst_18 {dimension_numbers = #tpu.dot_dimension_numbers<[1], [0], [0], [1], [0, 0, 1, 1], [], []>} : vector<8x8xbf16>, vector<8x8xbf16>, vector<8x8xf32> -> vector<8x8xf32>
    %46 = vector.extract_strided_slice %3 {offsets = [0, 16], sizes = [8, 8], strides = [1, 1]} : vector<8x32xbf16> to vector<8x8xbf16>
    %47 = vector.extract_strided_slice %5 {offsets = [0, 16], sizes = [8, 8], strides = [1, 1]} : vector<8x32xbf16> to vector<8x8xbf16>
    %cst_19 = arith.constant dense<0.000000e+00> : vector<8x8xf32>
    %48 = tpu.matmul %46, %47, %cst_19 {dimension_numbers = #tpu.dot_dimension_numbers<[1], [1], [0], [0], [0, 0, 1, 0], [], []>} : vector<8x8xbf16>, vector<8x8xbf16>, vector<8x8xf32> -> vector<8x8xf32>
    %49 = vector.broadcast %9 : vector<1x8xf32> to vector<8x8xf32>
    %50 = arith.addf %48, %49 : vector<8x8xf32>
    %cst_20 = arith.constant dense<0xFF800000> : vector<8xf32>
    %51 = vector.multi_reduction <maximumf>, %50, %cst_20 [1] : vector<8x8xf32> to vector<8xf32>
    %52 = vector.shape_cast %51 : vector<8xf32> to vector<8x1xf32>
    %53 = vector.broadcast %52 : vector<8x1xf32> to vector<8x8xf32>
    %54 = arith.subf %50, %53 : vector<8x8xf32>
    %55 = math.exp %54 : vector<8x8xf32>
    %cst_21 = arith.constant dense<0.000000e+00> : vector<8xf32>
    %56 = vector.multi_reduction <add>, %55, %cst_21 [1] : vector<8x8xf32> to vector<8xf32>
    %57 = vector.shape_cast %56 : vector<8xf32> to vector<8x1xf32>
    %58 = tpu.reciprocal %57 {approx = true} : vector<8x1xf32> -> vector<8x1xf32>
    %59 = vector.broadcast %58 : vector<8x1xf32> to vector<8x8xf32>
    %60 = arith.mulf %55, %59 : vector<8x8xf32>
    %61 = arith.truncf %60 : vector<8x8xf32> to vector<8x8xbf16>
    %62 = vector.extract_strided_slice %7 {offsets = [0, 16], sizes = [8, 8], strides = [1, 1]} : vector<8x32xbf16> to vector<8x8xbf16>
    %cst_22 = arith.constant dense<0.000000e+00> : vector<8x8xf32>
    %63 = tpu.matmul %61, %62, %cst_22 {dimension_numbers = #tpu.dot_dimension_numbers<[1], [0], [0], [1], [0, 0, 1, 1], [], []>} : vector<8x8xbf16>, vector<8x8xbf16>, vector<8x8xf32> -> vector<8x8xf32>
    %64 = vector.extract_strided_slice %3 {offsets = [0, 24], sizes = [8, 8], strides = [1, 1]} : vector<8x32xbf16> to vector<8x8xbf16>
    %65 = vector.extract_strided_slice %5 {offsets = [0, 24], sizes = [8, 8], strides = [1, 1]} : vector<8x32xbf16> to vector<8x8xbf16>
    %cst_23 = arith.constant dense<0.000000e+00> : vector<8x8xf32>
    %66 = tpu.matmul %64, %65, %cst_23 {dimension_numbers = #tpu.dot_dimension_numbers<[1], [1], [0], [0], [0, 0, 1, 0], [], []>} : vector<8x8xbf16>, vector<8x8xbf16>, vector<8x8xf32> -> vector<8x8xf32>
    %67 = vector.broadcast %9 : vector<1x8xf32> to vector<8x8xf32>
    %68 = arith.addf %66, %67 : vector<8x8xf32>
    %cst_24 = arith.constant dense<0xFF800000> : vector<8xf32>
    %69 = vector.multi_reduction <maximumf>, %68, %cst_24 [1] : vector<8x8xf32> to vector<8xf32>
    %70 = vector.shape_cast %69 : vector<8xf32> to vector<8x1xf32>
    %71 = vector.broadcast %70 : vector<8x1xf32> to vector<8x8xf32>
    %72 = arith.subf %68, %71 : vector<8x8xf32>
    %73 = math.exp %72 : vector<8x8xf32>
    %cst_25 = arith.constant dense<0.000000e+00> : vector<8xf32>
    %74 = vector.multi_reduction <add>, %73, %cst_25 [1] : vector<8x8xf32> to vector<8xf32>
    %75 = vector.shape_cast %74 : vector<8xf32> to vector<8x1xf32>
    %76 = tpu.reciprocal %75 {approx = true} : vector<8x1xf32> -> vector<8x1xf32>
    %77 = vector.broadcast %76 : vector<8x1xf32> to vector<8x8xf32>
    %78 = arith.mulf %73, %77 : vector<8x8xf32>
    %79 = arith.truncf %78 : vector<8x8xf32> to vector<8x8xbf16>
    %80 = vector.extract_strided_slice %7 {offsets = [0, 24], sizes = [8, 8], strides = [1, 1]} : vector<8x32xbf16> to vector<8x8xbf16>
    %cst_26 = arith.constant dense<0.000000e+00> : vector<8x8xf32>
    %81 = tpu.matmul %79, %80, %cst_26 {dimension_numbers = #tpu.dot_dimension_numbers<[1], [0], [0], [1], [0, 0, 1, 1], [], []>} : vector<8x8xbf16>, vector<8x8xbf16>, vector<8x8xf32> -> vector<8x8xf32>
    %82 = tpu.concatenate %27, %45, %63, %81 in 1 : vector<8x8xf32>, vector<8x8xf32>, vector<8x8xf32>, vector<8x8xf32> -> vector<8x32xf32>
    %83 = arith.truncf %82 : vector<8x32xf32> to vector<8x32xbf16>
    %c0_27 = arith.constant 0 : index
    %c0_28 = arith.constant 0 : index
    %c0_29 = arith.constant 0 : index
    %84 = vector.load %arg5[%c0_27, %c0_28, %c0_29] : memref<1x8x32xbf16, #tpu.memory_space<vmem>>, vector<1x8x32xbf16>
    %85 = vector.shape_cast %84 : vector<1x8x32xbf16> to vector<8x32xbf16>
    %86 = vector.shape_cast %83 : vector<8x32xbf16> to vector<1x8x32xbf16>
    tpu.vector_store %arg5[%c0_27, %c0_28, %c0_29], %86 {strides = array<i32>} : memref<1x8x32xbf16, #tpu.memory_space<vmem>>, vector<1x8x32xbf16>,
    return
  }
  func.func @transform_0(%arg0: i32) -> (i32, i32, i32) {
    %c0_i32 = arith.constant 0 : i32
    %c0_i32_0 = arith.constant 0 : i32
    %c0_i32_1 = arith.constant 0 : i32
    return %arg0, %c0_i32, %c0_i32_0 : i32, i32, i32
  }
  func.func @transform_1(%arg0: i32) -> (i32, i32, i32) {
    %c0_i32 = arith.constant 0 : i32
    %c0_i32_0 = arith.constant 0 : i32
    %c0_i32_1 = arith.constant 0 : i32
    return %arg0, %c0_i32, %c0_i32_0 : i32, i32, i32
  }
  func.func @transform_2(%arg0: i32) -> (i32, i32, i32) {
    %c0_i32 = arith.constant 0 : i32
    %c0_i32_0 = arith.constant 0 : i32
    %c0_i32_1 = arith.constant 0 : i32
    return %arg0, %c0_i32, %c0_i32_0 : i32, i32, i32
  }
  func.func @transform_3(%arg0: i32) -> (i32, i32, i32) {
    %c0_i32 = arith.constant 0 : i32
    %c0_i32_0 = arith.constant 0 : i32
    %c0_i32_1 = arith.constant 0 : i32
    return %arg0, %c0_i32, %c0_i32_0 : i32, i32, i32
  }
  func.func @transform_4(%arg0: i32) -> (i32, i32, i32) {
    %c0_i32 = arith.constant 0 : i32
    %c0_i32_0 = arith.constant 0 : i32
    %c0_i32_1 = arith.constant 0 : i32
    return %arg0, %c0_i32, %c0_i32_0 : i32, i32, i32
  }
}

module attributes {stable_mosaic.version = 11 : i64} {
  func.func @_conv_module_kernel(%arg0: i32, %arg1: memref<1x10x32xf32, #tpu.memory_space<vmem>>, %arg2: memref<1x8x32xf32, #tpu.memory_space<vmem>>, %arg3: memref<3x32xf32, #tpu.memory_space<vmem>>, %arg4: memref<1x32xf32, #tpu.memory_space<vmem>>, %arg5: memref<1x32xf32, #tpu.memory_space<vmem>>, %arg6: memref<32x32xbf16, #tpu.memory_space<vmem>>, %arg7: memref<1x32xf32, #tpu.memory_space<vmem>>, %arg8: memref<1x8x32xf32, #tpu.memory_space<vmem>>) attributes {dimension_semantics = [#tpu.dimension_semantics<parallel>], iteration_bounds = array<i64: 2>, scalar_prefetch = 0 : i64, scratch_operands = 0 : i64, tpu.core_type = #tpu.core_type<tc>, window_params = [{transform_indices = @transform_0, window_bounds = array<i64: 1, 10, 32>}, {transform_indices = @transform_1, window_bounds = array<i64: 1, 8, 32>}, {pipeline_mode = #tpu.pipeline_mode<synchronous>, transform_indices = @transform_2, window_bounds = array<i64: 3, 32>}, {pipeline_mode = #tpu.pipeline_mode<synchronous>, transform_indices = @transform_3, window_bounds = array<i64: 1, 32>}, {pipeline_mode = #tpu.pipeline_mode<synchronous>, transform_indices = @transform_4, window_bounds = array<i64: 1, 32>}, {pipeline_mode = #tpu.pipeline_mode<synchronous>, transform_indices = @transform_5, window_bounds = array<i64: 32, 32>}, {pipeline_mode = #tpu.pipeline_mode<synchronous>, transform_indices = @transform_6, window_bounds = array<i64: 1, 32>}, {transform_indices = @transform_7, window_bounds = array<i64: 1, 8, 32>}]} {
    %c0 = arith.constant 0 : index
    %c0_0 = arith.constant 0 : index
    %0 = vector.load %arg3[%c0, %c0_0] : memref<3x32xf32, #tpu.memory_space<vmem>>, vector<3x32xf32>
    %c0_1 = arith.constant 0 : index
    %c0_2 = arith.constant 0 : index
    %c0_3 = arith.constant 0 : index
    %1 = vector.load %arg1[%c0_1, %c0_2, %c0_3] : memref<1x10x32xf32, #tpu.memory_space<vmem>>, vector<1x8x32xf32>
    %2 = vector.shape_cast %1 : vector<1x8x32xf32> to vector<8x32xf32>
    %3 = vector.extract_strided_slice %0 {offsets = [0, 0], sizes = [1, 32], strides = [1, 1]} : vector<3x32xf32> to vector<1x32xf32>
    %4 = vector.broadcast %3 : vector<1x32xf32> to vector<8x32xf32>
    %5 = arith.mulf %2, %4 : vector<8x32xf32>
    %c0_4 = arith.constant 0 : index
    %c1 = arith.constant 1 : index
    %c0_5 = arith.constant 0 : index
    %6 = vector.load %arg1[%c0_4, %c1, %c0_5] : memref<1x10x32xf32, #tpu.memory_space<vmem>>, vector<1x8x32xf32>
    %7 = vector.shape_cast %6 : vector<1x8x32xf32> to vector<8x32xf32>
    %8 = vector.extract_strided_slice %0 {offsets = [1, 0], sizes = [1, 32], strides = [1, 1]} : vector<3x32xf32> to vector<1x32xf32>
    %9 = vector.broadcast %8 : vector<1x32xf32> to vector<8x32xf32>
    %10 = arith.mulf %7, %9 : vector<8x32xf32>
    %11 = arith.addf %5, %10 : vector<8x32xf32>
    %c0_6 = arith.constant 0 : index
    %c2 = arith.constant 2 : index
    %c0_7 = arith.constant 0 : index
    %12 = vector.load %arg1[%c0_6, %c2, %c0_7] : memref<1x10x32xf32, #tpu.memory_space<vmem>>, vector<1x8x32xf32>
    %13 = vector.shape_cast %12 : vector<1x8x32xf32> to vector<8x32xf32>
    %14 = vector.extract_strided_slice %0 {offsets = [2, 0], sizes = [1, 32], strides = [1, 1]} : vector<3x32xf32> to vector<1x32xf32>
    %15 = vector.broadcast %14 : vector<1x32xf32> to vector<8x32xf32>
    %16 = arith.mulf %13, %15 : vector<8x32xf32>
    %17 = arith.addf %11, %16 : vector<8x32xf32>
    %c0_8 = arith.constant 0 : index
    %c0_9 = arith.constant 0 : index
    %18 = vector.load %arg4[%c0_8, %c0_9] : memref<1x32xf32, #tpu.memory_space<vmem>>, vector<1x32xf32>
    %19 = vector.broadcast %18 : vector<1x32xf32> to vector<8x32xf32>
    %20 = arith.mulf %17, %19 : vector<8x32xf32>
    %c0_10 = arith.constant 0 : index
    %c0_11 = arith.constant 0 : index
    %21 = vector.load %arg5[%c0_10, %c0_11] : memref<1x32xf32, #tpu.memory_space<vmem>>, vector<1x32xf32>
    %22 = vector.broadcast %21 : vector<1x32xf32> to vector<8x32xf32>
    %23 = arith.addf %20, %22 : vector<8x32xf32>
    %cst = arith.constant -3.000000e+01 : f32
    %24 = vector.broadcast %cst : f32 to vector<8x32xf32>
    %25 = arith.maximumf %23, %24 : vector<8x32xf32>
    %cst_12 = arith.constant 0.000000e+00 : f32
    %26 = vector.broadcast %cst_12 : f32 to vector<8x32xf32>
    %27 = arith.subf %26, %25 : vector<8x32xf32>
    %28 = math.exp %27 : vector<8x32xf32>
    %cst_13 = arith.constant 1.000000e+00 : f32
    %29 = vector.broadcast %cst_13 : f32 to vector<8x32xf32>
    %30 = arith.addf %29, %28 : vector<8x32xf32>
    %31 = tpu.reciprocal %30 {approx = true} : vector<8x32xf32> -> vector<8x32xf32>
    %32 = arith.mulf %23, %31 : vector<8x32xf32>
    %33 = arith.truncf %32 : vector<8x32xf32> to vector<8x32xbf16>
    %c0_14 = arith.constant 0 : index
    %c0_15 = arith.constant 0 : index
    %34 = vector.load %arg6[%c0_14, %c0_15] : memref<32x32xbf16, #tpu.memory_space<vmem>>, vector<32x32xbf16>
    %cst_16 = arith.constant dense<0.000000e+00> : vector<8x32xf32>
    %35 = tpu.matmul %33, %34, %cst_16 {dimension_numbers = #tpu.dot_dimension_numbers<[1], [0], [0], [1], [0, 0, 1, 1], [], []>} : vector<8x32xbf16>, vector<32x32xbf16>, vector<8x32xf32> -> vector<8x32xf32>
    %c0_17 = arith.constant 0 : index
    %c0_18 = arith.constant 0 : index
    %36 = vector.load %arg7[%c0_17, %c0_18] : memref<1x32xf32, #tpu.memory_space<vmem>>, vector<1x32xf32>
    %37 = vector.broadcast %36 : vector<1x32xf32> to vector<8x32xf32>
    %38 = arith.addf %35, %37 : vector<8x32xf32>
    %c0_19 = arith.constant 0 : index
    %c0_20 = arith.constant 0 : index
    %c0_21 = arith.constant 0 : index
    %39 = vector.load %arg2[%c0_19, %c0_20, %c0_21] : memref<1x8x32xf32, #tpu.memory_space<vmem>>, vector<1x8x32xf32>
    %40 = vector.shape_cast %39 : vector<1x8x32xf32> to vector<8x32xf32>
    %41 = arith.addf %40, %38 : vector<8x32xf32>
    %c0_22 = arith.constant 0 : index
    %c0_23 = arith.constant 0 : index
    %c0_24 = arith.constant 0 : index
    %42 = vector.load %arg8[%c0_22, %c0_23, %c0_24] : memref<1x8x32xf32, #tpu.memory_space<vmem>>, vector<1x8x32xf32>
    %43 = vector.shape_cast %42 : vector<1x8x32xf32> to vector<8x32xf32>
    %44 = vector.shape_cast %41 : vector<8x32xf32> to vector<1x8x32xf32>
    tpu.vector_store %arg8[%c0_22, %c0_23, %c0_24], %44 {strides = array<i32>} : memref<1x8x32xf32, #tpu.memory_space<vmem>>, vector<1x8x32xf32>,
    return
  }
  func.func @transform_0(%arg0: i32) -> (i32, i32, i32) {
    %c0_i32 = arith.constant 0 : i32
    %c0_i32_0 = arith.constant 0 : i32
    %c0_i32_1 = arith.constant 0 : i32
    return %arg0, %c0_i32, %c0_i32_0 : i32, i32, i32
  }
  func.func @transform_1(%arg0: i32) -> (i32, i32, i32) {
    %c0_i32 = arith.constant 0 : i32
    %c0_i32_0 = arith.constant 0 : i32
    %c0_i32_1 = arith.constant 0 : i32
    return %arg0, %c0_i32, %c0_i32_0 : i32, i32, i32
  }
  func.func @transform_2(%arg0: i32) -> (i32, i32) {
    %c0_i32 = arith.constant 0 : i32
    %c0_i32_0 = arith.constant 0 : i32
    %c0_i32_1 = arith.constant 0 : i32
    return %c0_i32, %c0_i32_0 : i32, i32
  }
  func.func @transform_3(%arg0: i32) -> (i32, i32) {
    %c0_i32 = arith.constant 0 : i32
    %c0_i32_0 = arith.constant 0 : i32
    %c0_i32_1 = arith.constant 0 : i32
    return %c0_i32, %c0_i32_0 : i32, i32
  }
  func.func @transform_4(%arg0: i32) -> (i32, i32) {
    %c0_i32 = arith.constant 0 : i32
    %c0_i32_0 = arith.constant 0 : i32
    %c0_i32_1 = arith.constant 0 : i32
    return %c0_i32, %c0_i32_0 : i32, i32
  }
  func.func @transform_5(%arg0: i32) -> (i32, i32) {
    %c0_i32 = arith.constant 0 : i32
    %c0_i32_0 = arith.constant 0 : i32
    %c0_i32_1 = arith.constant 0 : i32
    return %c0_i32, %c0_i32_0 : i32, i32
  }
  func.func @transform_6(%arg0: i32) -> (i32, i32) {
    %c0_i32 = arith.constant 0 : i32
    %c0_i32_0 = arith.constant 0 : i32
    %c0_i32_1 = arith.constant 0 : i32
    return %c0_i32, %c0_i32_0 : i32, i32
  }
  func.func @transform_7(%arg0: i32) -> (i32, i32, i32) {
    %c0_i32 = arith.constant 0 : i32
    %c0_i32_0 = arith.constant 0 : i32
    %c0_i32_1 = arith.constant 0 : i32
    return %arg0, %c0_i32, %c0_i32_0 : i32, i32, i32
  }
}

module attributes {stable_mosaic.version = 11 : i64} {
  func.func @_ffn_kernel(%arg0: i32, %arg1: memref<16x32xf32, #tpu.memory_space<vmem>>, %arg2: memref<1x32xf32, #tpu.memory_space<vmem>>, %arg3: memref<1x32xf32, #tpu.memory_space<vmem>>, %arg4: memref<32x64xbf16, #tpu.memory_space<vmem>>, %arg5: memref<1x64xf32, #tpu.memory_space<vmem>>, %arg6: memref<64x32xbf16, #tpu.memory_space<vmem>>, %arg7: memref<1x32xf32, #tpu.memory_space<vmem>>, %arg8: memref<1x32xf32, #tpu.memory_space<vmem>>, %arg9: memref<1x32xf32, #tpu.memory_space<vmem>>, %arg10: memref<16x32xf32, #tpu.memory_space<vmem>>) attributes {dimension_semantics = [#tpu.dimension_semantics<parallel>], iteration_bounds = array<i64: 1>, scalar_prefetch = 0 : i64, scratch_operands = 0 : i64, tpu.core_type = #tpu.core_type<tc>, window_params = [{transform_indices = @transform_0, window_bounds = array<i64: 16, 32>}, {pipeline_mode = #tpu.pipeline_mode<synchronous>, transform_indices = @transform_1, window_bounds = array<i64: 1, 32>}, {pipeline_mode = #tpu.pipeline_mode<synchronous>, transform_indices = @transform_2, window_bounds = array<i64: 1, 32>}, {pipeline_mode = #tpu.pipeline_mode<synchronous>, transform_indices = @transform_3, window_bounds = array<i64: 32, 64>}, {pipeline_mode = #tpu.pipeline_mode<synchronous>, transform_indices = @transform_4, window_bounds = array<i64: 1, 64>}, {pipeline_mode = #tpu.pipeline_mode<synchronous>, transform_indices = @transform_5, window_bounds = array<i64: 64, 32>}, {pipeline_mode = #tpu.pipeline_mode<synchronous>, transform_indices = @transform_6, window_bounds = array<i64: 1, 32>}, {pipeline_mode = #tpu.pipeline_mode<synchronous>, transform_indices = @transform_7, window_bounds = array<i64: 1, 32>}, {pipeline_mode = #tpu.pipeline_mode<synchronous>, transform_indices = @transform_8, window_bounds = array<i64: 1, 32>}, {transform_indices = @transform_9, window_bounds = array<i64: 16, 32>}]} {
    %c0 = arith.constant 0 : index
    %c0_0 = arith.constant 0 : index
    %0 = vector.load %arg1[%c0, %c0_0] : memref<16x32xf32, #tpu.memory_space<vmem>>, vector<16x32xf32>
    %cst = arith.constant dense<0.000000e+00> : vector<16xf32>
    %1 = vector.multi_reduction <add>, %0, %cst [1] : vector<16x32xf32> to vector<16xf32>
    %2 = vector.shape_cast %1 : vector<16xf32> to vector<16x1xf32>
    %cst_1 = arith.constant 3.200000e+01 : f32
    %3 = vector.broadcast %cst_1 : f32 to vector<16x1xf32>
    %4 = arith.divf %2, %3 : vector<16x1xf32>
    %5 = vector.broadcast %4 : vector<16x1xf32> to vector<16x32xf32>
    %6 = arith.subf %0, %5 : vector<16x32xf32>
    %7 = arith.mulf %6, %6 : vector<16x32xf32>
    %cst_2 = arith.constant dense<0.000000e+00> : vector<16xf32>
    %8 = vector.multi_reduction <add>, %7, %cst_2 [1] : vector<16x32xf32> to vector<16xf32>
    %9 = vector.shape_cast %8 : vector<16xf32> to vector<16x1xf32>
    %cst_3 = arith.constant 3.200000e+01 : f32
    %10 = vector.broadcast %cst_3 : f32 to vector<16x1xf32>
    %11 = arith.divf %9, %10 : vector<16x1xf32>
    %12 = vector.broadcast %4 : vector<16x1xf32> to vector<16x32xf32>
    %13 = arith.subf %0, %12 : vector<16x32xf32>
    %cst_4 = arith.constant 9.99999974E-6 : f32
    %14 = vector.broadcast %cst_4 : f32 to vector<16x1xf32>
    %15 = arith.addf %11, %14 : vector<16x1xf32>
    %16 = math.rsqrt %15 : vector<16x1xf32>
    %17 = vector.broadcast %16 : vector<16x1xf32> to vector<16x32xf32>
    %18 = arith.mulf %13, %17 : vector<16x32xf32>
    %c0_5 = arith.constant 0 : index
    %c0_6 = arith.constant 0 : index
    %19 = vector.load %arg2[%c0_5, %c0_6] : memref<1x32xf32, #tpu.memory_space<vmem>>, vector<1x32xf32>
    %20 = vector.broadcast %19 : vector<1x32xf32> to vector<16x32xf32>
    %21 = arith.mulf %18, %20 : vector<16x32xf32>
    %c0_7 = arith.constant 0 : index
    %c0_8 = arith.constant 0 : index
    %22 = vector.load %arg3[%c0_7, %c0_8] : memref<1x32xf32, #tpu.memory_space<vmem>>, vector<1x32xf32>
    %23 = vector.broadcast %22 : vector<1x32xf32> to vector<16x32xf32>
    %24 = arith.addf %21, %23 : vector<16x32xf32>
    %25 = arith.truncf %24 : vector<16x32xf32> to vector<16x32xbf16>
    %c0_9 = arith.constant 0 : index
    %c0_10 = arith.constant 0 : index
    %26 = vector.load %arg4[%c0_9, %c0_10] : memref<32x64xbf16, #tpu.memory_space<vmem>>, vector<32x64xbf16>
    %cst_11 = arith.constant dense<0.000000e+00> : vector<16x64xf32>
    %27 = tpu.matmul %25, %26, %cst_11 {dimension_numbers = #tpu.dot_dimension_numbers<[1], [0], [0], [1], [0, 0, 1, 1], [], []>} : vector<16x32xbf16>, vector<32x64xbf16>, vector<16x64xf32> -> vector<16x64xf32>
    %c0_12 = arith.constant 0 : index
    %c0_13 = arith.constant 0 : index
    %28 = vector.load %arg5[%c0_12, %c0_13] : memref<1x64xf32, #tpu.memory_space<vmem>>, vector<1x64xf32>
    %29 = vector.broadcast %28 : vector<1x64xf32> to vector<16x64xf32>
    %30 = arith.addf %27, %29 : vector<16x64xf32>
    %cst_14 = arith.constant -3.000000e+01 : f32
    %31 = vector.broadcast %cst_14 : f32 to vector<16x64xf32>
    %32 = arith.maximumf %30, %31 : vector<16x64xf32>
    %cst_15 = arith.constant 0.000000e+00 : f32
    %33 = vector.broadcast %cst_15 : f32 to vector<16x64xf32>
    %34 = arith.subf %33, %32 : vector<16x64xf32>
    %35 = math.exp %34 : vector<16x64xf32>
    %cst_16 = arith.constant 1.000000e+00 : f32
    %36 = vector.broadcast %cst_16 : f32 to vector<16x64xf32>
    %37 = arith.addf %36, %35 : vector<16x64xf32>
    %38 = tpu.reciprocal %37 {approx = true} : vector<16x64xf32> -> vector<16x64xf32>
    %39 = arith.mulf %30, %38 : vector<16x64xf32>
    %40 = arith.truncf %39 : vector<16x64xf32> to vector<16x64xbf16>
    %c0_17 = arith.constant 0 : index
    %c0_18 = arith.constant 0 : index
    %41 = vector.load %arg6[%c0_17, %c0_18] : memref<64x32xbf16, #tpu.memory_space<vmem>>, vector<64x32xbf16>
    %cst_19 = arith.constant dense<0.000000e+00> : vector<16x32xf32>
    %42 = tpu.matmul %40, %41, %cst_19 {dimension_numbers = #tpu.dot_dimension_numbers<[1], [0], [0], [1], [0, 0, 1, 1], [], []>} : vector<16x64xbf16>, vector<64x32xbf16>, vector<16x32xf32> -> vector<16x32xf32>
    %c0_20 = arith.constant 0 : index
    %c0_21 = arith.constant 0 : index
    %43 = vector.load %arg7[%c0_20, %c0_21] : memref<1x32xf32, #tpu.memory_space<vmem>>, vector<1x32xf32>
    %44 = vector.broadcast %43 : vector<1x32xf32> to vector<16x32xf32>
    %45 = arith.addf %42, %44 : vector<16x32xf32>
    %cst_22 = arith.constant 5.000000e-01 : f32
    %46 = vector.broadcast %cst_22 : f32 to vector<16x32xf32>
    %47 = arith.mulf %46, %45 : vector<16x32xf32>
    %48 = arith.addf %0, %47 : vector<16x32xf32>
    %cst_23 = arith.constant dense<0.000000e+00> : vector<16xf32>
    %49 = vector.multi_reduction <add>, %48, %cst_23 [1] : vector<16x32xf32> to vector<16xf32>
    %50 = vector.shape_cast %49 : vector<16xf32> to vector<16x1xf32>
    %cst_24 = arith.constant 3.200000e+01 : f32
    %51 = vector.broadcast %cst_24 : f32 to vector<16x1xf32>
    %52 = arith.divf %50, %51 : vector<16x1xf32>
    %53 = vector.broadcast %52 : vector<16x1xf32> to vector<16x32xf32>
    %54 = arith.subf %48, %53 : vector<16x32xf32>
    %55 = arith.mulf %54, %54 : vector<16x32xf32>
    %cst_25 = arith.constant dense<0.000000e+00> : vector<16xf32>
    %56 = vector.multi_reduction <add>, %55, %cst_25 [1] : vector<16x32xf32> to vector<16xf32>
    %57 = vector.shape_cast %56 : vector<16xf32> to vector<16x1xf32>
    %cst_26 = arith.constant 3.200000e+01 : f32
    %58 = vector.broadcast %cst_26 : f32 to vector<16x1xf32>
    %59 = arith.divf %57, %58 : vector<16x1xf32>
    %60 = vector.broadcast %52 : vector<16x1xf32> to vector<16x32xf32>
    %61 = arith.subf %48, %60 : vector<16x32xf32>
    %cst_27 = arith.constant 9.99999974E-6 : f32
    %62 = vector.broadcast %cst_27 : f32 to vector<16x1xf32>
    %63 = arith.addf %59, %62 : vector<16x1xf32>
    %64 = math.rsqrt %63 : vector<16x1xf32>
    %65 = vector.broadcast %64 : vector<16x1xf32> to vector<16x32xf32>
    %66 = arith.mulf %61, %65 : vector<16x32xf32>
    %c0_28 = arith.constant 0 : index
    %c0_29 = arith.constant 0 : index
    %67 = vector.load %arg8[%c0_28, %c0_29] : memref<1x32xf32, #tpu.memory_space<vmem>>, vector<1x32xf32>
    %68 = vector.broadcast %67 : vector<1x32xf32> to vector<16x32xf32>
    %69 = arith.mulf %66, %68 : vector<16x32xf32>
    %c0_30 = arith.constant 0 : index
    %c0_31 = arith.constant 0 : index
    %70 = vector.load %arg9[%c0_30, %c0_31] : memref<1x32xf32, #tpu.memory_space<vmem>>, vector<1x32xf32>
    %71 = vector.broadcast %70 : vector<1x32xf32> to vector<16x32xf32>
    %72 = arith.addf %69, %71 : vector<16x32xf32>
    %c0_32 = arith.constant 0 : index
    %c0_33 = arith.constant 0 : index
    %73 = vector.load %arg10[%c0_32, %c0_33] : memref<16x32xf32, #tpu.memory_space<vmem>>, vector<16x32xf32>
    tpu.vector_store %arg10[%c0_32, %c0_33], %72 {strides = array<i32>} : memref<16x32xf32, #tpu.memory_space<vmem>>, vector<16x32xf32>,
    return
  }
  func.func @transform_0(%arg0: i32) -> (i32, i32) {
    %c0_i32 = arith.constant 0 : i32
    %c0_i32_0 = arith.constant 0 : i32
    return %arg0, %c0_i32 : i32, i32
  }
  func.func @transform_1(%arg0: i32) -> (i32, i32) {
    %c0_i32 = arith.constant 0 : i32
    %c0_i32_0 = arith.constant 0 : i32
    %c0_i32_1 = arith.constant 0 : i32
    return %c0_i32, %c0_i32_0 : i32, i32
  }
  func.func @transform_2(%arg0: i32) -> (i32, i32) {
    %c0_i32 = arith.constant 0 : i32
    %c0_i32_0 = arith.constant 0 : i32
    %c0_i32_1 = arith.constant 0 : i32
    return %c0_i32, %c0_i32_0 : i32, i32
  }
  func.func @transform_3(%arg0: i32) -> (i32, i32) {
    %c0_i32 = arith.constant 0 : i32
    %c0_i32_0 = arith.constant 0 : i32
    %c0_i32_1 = arith.constant 0 : i32
    return %c0_i32, %c0_i32_0 : i32, i32
  }
  func.func @transform_4(%arg0: i32) -> (i32, i32) {
    %c0_i32 = arith.constant 0 : i32
    %c0_i32_0 = arith.constant 0 : i32
    %c0_i32_1 = arith.constant 0 : i32
    return %c0_i32, %c0_i32_0 : i32, i32
  }
  func.func @transform_5(%arg0: i32) -> (i32, i32) {
    %c0_i32 = arith.constant 0 : i32
    %c0_i32_0 = arith.constant 0 : i32
    %c0_i32_1 = arith.constant 0 : i32
    return %c0_i32, %c0_i32_0 : i32, i32
  }
  func.func @transform_6(%arg0: i32) -> (i32, i32) {
    %c0_i32 = arith.constant 0 : i32
    %c0_i32_0 = arith.constant 0 : i32
    %c0_i32_1 = arith.constant 0 : i32
    return %c0_i32, %c0_i32_0 : i32, i32
  }
  func.func @transform_7(%arg0: i32) -> (i32, i32) {
    %c0_i32 = arith.constant 0 : i32
    %c0_i32_0 = arith.constant 0 : i32
    %c0_i32_1 = arith.constant 0 : i32
    return %c0_i32, %c0_i32_0 : i32, i32
  }
  func.func @transform_8(%arg0: i32) -> (i32, i32) {
    %c0_i32 = arith.constant 0 : i32
    %c0_i32_0 = arith.constant 0 : i32
    %c0_i32_1 = arith.constant 0 : i32
    return %c0_i32, %c0_i32_0 : i32, i32
  }
  func.func @transform_9(%arg0: i32) -> (i32, i32) {
    %c0_i32 = arith.constant 0 : i32
    %c0_i32_0 = arith.constant 0 : i32
    return %arg0, %c0_i32 : i32, i32
  }
}

module attributes {stable_mosaic.version = 11 : i64} {
  func.func @_mm_kernel(%arg0: i32, %arg1: memref<16x32xf32, #tpu.memory_space<vmem>>, %arg2: memref<32x128xbf16, #tpu.memory_space<vmem>>, %arg3: memref<1x128xf32, #tpu.memory_space<vmem>>, %arg4: memref<16x128xf32, #tpu.memory_space<vmem>>) attributes {dimension_semantics = [#tpu.dimension_semantics<parallel>], iteration_bounds = array<i64: 1>, scalar_prefetch = 0 : i64, scratch_operands = 0 : i64, tpu.core_type = #tpu.core_type<tc>, window_params = [{transform_indices = @transform_0, window_bounds = array<i64: 16, 32>}, {pipeline_mode = #tpu.pipeline_mode<synchronous>, transform_indices = @transform_1, window_bounds = array<i64: 32, 128>}, {pipeline_mode = #tpu.pipeline_mode<synchronous>, transform_indices = @transform_2, window_bounds = array<i64: 1, 128>}, {transform_indices = @transform_3, window_bounds = array<i64: 16, 128>}]} {
    %c0 = arith.constant 0 : index
    %c0_0 = arith.constant 0 : index
    %0 = vector.load %arg1[%c0, %c0_0] : memref<16x32xf32, #tpu.memory_space<vmem>>, vector<16x32xf32>
    %1 = arith.truncf %0 : vector<16x32xf32> to vector<16x32xbf16>
    %c0_1 = arith.constant 0 : index
    %c0_2 = arith.constant 0 : index
    %2 = vector.load %arg2[%c0_1, %c0_2] : memref<32x128xbf16, #tpu.memory_space<vmem>>, vector<32x128xbf16>
    %cst = arith.constant dense<0.000000e+00> : vector<16x128xf32>
    %3 = tpu.matmul %1, %2, %cst {dimension_numbers = #tpu.dot_dimension_numbers<[1], [0], [0], [1], [0, 0, 1, 1], [], []>} : vector<16x32xbf16>, vector<32x128xbf16>, vector<16x128xf32> -> vector<16x128xf32>
    %c0_3 = arith.constant 0 : index
    %c0_4 = arith.constant 0 : index
    %4 = vector.load %arg3[%c0_3, %c0_4] : memref<1x128xf32, #tpu.memory_space<vmem>>, vector<1x128xf32>
    %5 = vector.broadcast %4 : vector<1x128xf32> to vector<16x128xf32>
    %6 = arith.addf %3, %5 : vector<16x128xf32>
    %cst_5 = arith.constant dense<0xFF800000> : vector<16xf32>
    %7 = vector.multi_reduction <maximumf>, %6, %cst_5 [1] : vector<16x128xf32> to vector<16xf32>
    %8 = vector.shape_cast %7 : vector<16xf32> to vector<16x1xf32>
    %9 = vector.broadcast %8 : vector<16x1xf32> to vector<16x128xf32>
    %10 = arith.subf %6, %9 : vector<16x128xf32>
    %11 = math.exp %10 : vector<16x128xf32>
    %cst_6 = arith.constant dense<0.000000e+00> : vector<16xf32>
    %12 = vector.multi_reduction <add>, %11, %cst_6 [1] : vector<16x128xf32> to vector<16xf32>
    %13 = vector.shape_cast %12 : vector<16xf32> to vector<16x1xf32>
    %14 = math.log %13 : vector<16x1xf32>
    %15 = vector.broadcast %14 : vector<16x1xf32> to vector<16x128xf32>
    %16 = arith.subf %10, %15 : vector<16x128xf32>
    %c0_7 = arith.constant 0 : index
    %c0_8 = arith.constant 0 : index
    %17 = vector.load %arg4[%c0_7, %c0_8] : memref<16x128xf32, #tpu.memory_space<vmem>>, vector<16x128xf32>
    tpu.vector_store %arg4[%c0_7, %c0_8], %16 {strides = array<i32>} : memref<16x128xf32, #tpu.memory_space<vmem>>, vector<16x128xf32>,
    return
  }
  func.func @transform_0(%arg0: i32) -> (i32, i32) {
    %c0_i32 = arith.constant 0 : i32
    %c0_i32_0 = arith.constant 0 : i32
    return %arg0, %c0_i32 : i32, i32
  }
  func.func @transform_1(%arg0: i32) -> (i32, i32) {
    %c0_i32 = arith.constant 0 : i32
    %c0_i32_0 = arith.constant 0 : i32
    %c0_i32_1 = arith.constant 0 : i32
    return %c0_i32, %c0_i32_0 : i32, i32
  }
  func.func @transform_2(%arg0: i32) -> (i32, i32) {
    %c0_i32 = arith.constant 0 : i32
    %c0_i32_0 = arith.constant 0 : i32
    %c0_i32_1 = arith.constant 0 : i32
    return %c0_i32, %c0_i32_0 : i32, i32
  }
  func.func @transform_3(%arg0: i32) -> (i32, i32) {
    %c0_i32 = arith.constant 0 : i32
    %c0_i32_0 = arith.constant 0 : i32
    return %arg0, %c0_i32 : i32, i32
  }
}

module attributes {stable_mosaic.version = 11 : i64} {
  func.func @_mm_kernel(%arg0: i32, %arg1: memref<16x32xf32, #tpu.memory_space<vmem>>, %arg2: memref<32x64xbf16, #tpu.memory_space<vmem>>, %arg3: memref<1x64xf32, #tpu.memory_space<vmem>>, %arg4: memref<16x64xbf16, #tpu.memory_space<vmem>>) attributes {dimension_semantics = [#tpu.dimension_semantics<parallel>], iteration_bounds = array<i64: 1>, scalar_prefetch = 0 : i64, scratch_operands = 0 : i64, tpu.core_type = #tpu.core_type<tc>, window_params = [{transform_indices = @transform_0, window_bounds = array<i64: 16, 32>}, {pipeline_mode = #tpu.pipeline_mode<synchronous>, transform_indices = @transform_1, window_bounds = array<i64: 32, 64>}, {pipeline_mode = #tpu.pipeline_mode<synchronous>, transform_indices = @transform_2, window_bounds = array<i64: 1, 64>}, {transform_indices = @transform_3, window_bounds = array<i64: 16, 64>}]} {
    %c0 = arith.constant 0 : index
    %c0_0 = arith.constant 0 : index
    %0 = vector.load %arg1[%c0, %c0_0] : memref<16x32xf32, #tpu.memory_space<vmem>>, vector<16x32xf32>
    %1 = arith.truncf %0 : vector<16x32xf32> to vector<16x32xbf16>
    %c0_1 = arith.constant 0 : index
    %c0_2 = arith.constant 0 : index
    %2 = vector.load %arg2[%c0_1, %c0_2] : memref<32x64xbf16, #tpu.memory_space<vmem>>, vector<32x64xbf16>
    %cst = arith.constant dense<0.000000e+00> : vector<16x64xf32>
    %3 = tpu.matmul %1, %2, %cst {dimension_numbers = #tpu.dot_dimension_numbers<[1], [0], [0], [1], [0, 0, 1, 1], [], []>} : vector<16x32xbf16>, vector<32x64xbf16>, vector<16x64xf32> -> vector<16x64xf32>
    %c0_3 = arith.constant 0 : index
    %c0_4 = arith.constant 0 : index
    %4 = vector.load %arg3[%c0_3, %c0_4] : memref<1x64xf32, #tpu.memory_space<vmem>>, vector<1x64xf32>
    %5 = vector.broadcast %4 : vector<1x64xf32> to vector<16x64xf32>
    %6 = arith.addf %3, %5 : vector<16x64xf32>
    %7 = arith.truncf %6 : vector<16x64xf32> to vector<16x64xbf16>
    %c0_5 = arith.constant 0 : index
    %c0_6 = arith.constant 0 : index
    %8 = vector.load %arg4[%c0_5, %c0_6] : memref<16x64xbf16, #tpu.memory_space<vmem>>, vector<16x64xbf16>
    tpu.vector_store %arg4[%c0_5, %c0_6], %7 {strides = array<i32>} : memref<16x64xbf16, #tpu.memory_space<vmem>>, vector<16x64xbf16>,
    return
  }
  func.func @transform_0(%arg0: i32) -> (i32, i32) {
    %c0_i32 = arith.constant 0 : i32
    %c0_i32_0 = arith.constant 0 : i32
    return %arg0, %c0_i32 : i32, i32
  }
  func.func @transform_1(%arg0: i32) -> (i32, i32) {
    %c0_i32 = arith.constant 0 : i32
    %c0_i32_0 = arith.constant 0 : i32
    %c0_i32_1 = arith.constant 0 : i32
    return %c0_i32, %c0_i32_0 : i32, i32
  }
  func.func @transform_2(%arg0: i32) -> (i32, i32) {
    %c0_i32 = arith.constant 0 : i32
    %c0_i32_0 = arith.constant 0 : i32
    %c0_i32_1 = arith.constant 0 : i32
    return %c0_i32, %c0_i32_0 : i32, i32
  }
  func.func @transform_3(%arg0: i32) -> (i32, i32) {
    %c0_i32 = arith.constant 0 : i32
    %c0_i32_0 = arith.constant 0 : i32
    return %arg0, %c0_i32 : i32, i32
  }
}

module attributes {stable_mosaic.version = 11 : i64} {
  func.func @_ln_mm_kernel(%arg0: i32, %arg1: memref<12x32xf32, #tpu.memory_space<vmem>>, %arg2: memref<1x32xf32, #tpu.memory_space<vmem>>, %arg3: memref<1x32xf32, #tpu.memory_space<vmem>>, %arg4: memref<32x96xbf16, #tpu.memory_space<vmem>>, %arg5: memref<1x96xf32, #tpu.memory_space<vmem>>, %arg6: memref<12x96xbf16, #tpu.memory_space<vmem>>) attributes {dimension_semantics = [#tpu.dimension_semantics<parallel>], iteration_bounds = array<i64: 1>, scalar_prefetch = 0 : i64, scratch_operands = 0 : i64, tpu.core_type = #tpu.core_type<tc>, window_params = [{transform_indices = @transform_0, window_bounds = array<i64: 12, 32>}, {pipeline_mode = #tpu.pipeline_mode<synchronous>, transform_indices = @transform_1, window_bounds = array<i64: 1, 32>}, {pipeline_mode = #tpu.pipeline_mode<synchronous>, transform_indices = @transform_2, window_bounds = array<i64: 1, 32>}, {pipeline_mode = #tpu.pipeline_mode<synchronous>, transform_indices = @transform_3, window_bounds = array<i64: 32, 96>}, {pipeline_mode = #tpu.pipeline_mode<synchronous>, transform_indices = @transform_4, window_bounds = array<i64: 1, 96>}, {transform_indices = @transform_5, window_bounds = array<i64: 12, 96>}]} {
    %c0 = arith.constant 0 : index
    %c0_0 = arith.constant 0 : index
    %0 = vector.load %arg1[%c0, %c0_0] : memref<12x32xf32, #tpu.memory_space<vmem>>, vector<12x32xf32>
    %cst = arith.constant dense<0.000000e+00> : vector<12xf32>
    %1 = vector.multi_reduction <add>, %0, %cst [1] : vector<12x32xf32> to vector<12xf32>
    %2 = vector.shape_cast %1 : vector<12xf32> to vector<12x1xf32>
    %cst_1 = arith.constant 3.200000e+01 : f32
    %3 = vector.broadcast %cst_1 : f32 to vector<12x1xf32>
    %4 = arith.divf %2, %3 : vector<12x1xf32>
    %5 = vector.broadcast %4 : vector<12x1xf32> to vector<12x32xf32>
    %6 = arith.subf %0, %5 : vector<12x32xf32>
    %7 = arith.mulf %6, %6 : vector<12x32xf32>
    %cst_2 = arith.constant dense<0.000000e+00> : vector<12xf32>
    %8 = vector.multi_reduction <add>, %7, %cst_2 [1] : vector<12x32xf32> to vector<12xf32>
    %9 = vector.shape_cast %8 : vector<12xf32> to vector<12x1xf32>
    %cst_3 = arith.constant 3.200000e+01 : f32
    %10 = vector.broadcast %cst_3 : f32 to vector<12x1xf32>
    %11 = arith.divf %9, %10 : vector<12x1xf32>
    %12 = vector.broadcast %4 : vector<12x1xf32> to vector<12x32xf32>
    %13 = arith.subf %0, %12 : vector<12x32xf32>
    %cst_4 = arith.constant 9.99999974E-6 : f32
    %14 = vector.broadcast %cst_4 : f32 to vector<12x1xf32>
    %15 = arith.addf %11, %14 : vector<12x1xf32>
    %16 = math.rsqrt %15 : vector<12x1xf32>
    %17 = vector.broadcast %16 : vector<12x1xf32> to vector<12x32xf32>
    %18 = arith.mulf %13, %17 : vector<12x32xf32>
    %c0_5 = arith.constant 0 : index
    %c0_6 = arith.constant 0 : index
    %19 = vector.load %arg2[%c0_5, %c0_6] : memref<1x32xf32, #tpu.memory_space<vmem>>, vector<1x32xf32>
    %20 = vector.broadcast %19 : vector<1x32xf32> to vector<12x32xf32>
    %21 = arith.mulf %18, %20 : vector<12x32xf32>
    %c0_7 = arith.constant 0 : index
    %c0_8 = arith.constant 0 : index
    %22 = vector.load %arg3[%c0_7, %c0_8] : memref<1x32xf32, #tpu.memory_space<vmem>>, vector<1x32xf32>
    %23 = vector.broadcast %22 : vector<1x32xf32> to vector<12x32xf32>
    %24 = arith.addf %21, %23 : vector<12x32xf32>
    %25 = arith.truncf %24 : vector<12x32xf32> to vector<12x32xbf16>
    %c0_9 = arith.constant 0 : index
    %c0_10 = arith.constant 0 : index
    %26 = vector.load %arg4[%c0_9, %c0_10] : memref<32x96xbf16, #tpu.memory_space<vmem>>, vector<32x96xbf16>
    %cst_11 = arith.constant dense<0.000000e+00> : vector<12x96xf32>
    %27 = tpu.matmul %25, %26, %cst_11 {dimension_numbers = #tpu.dot_dimension_numbers<[1], [0], [0], [1], [0, 0, 1, 1], [], []>} : vector<12x32xbf16>, vector<32x96xbf16>, vector<12x96xf32> -> vector<12x96xf32>
    %c0_12 = arith.constant 0 : index
    %c0_13 = arith.constant 0 : index
    %28 = vector.load %arg5[%c0_12, %c0_13] : memref<1x96xf32, #tpu.memory_space<vmem>>, vector<1x96xf32>
    %29 = vector.broadcast %28 : vector<1x96xf32> to vector<12x96xf32>
    %30 = arith.addf %27, %29 : vector<12x96xf32>
    %31 = arith.truncf %30 : vector<12x96xf32> to vector<12x96xbf16>
    %c0_14 = arith.constant 0 : index
    %c0_15 = arith.constant 0 : index
    %32 = vector.load %arg6[%c0_14, %c0_15] : memref<12x96xbf16, #tpu.memory_space<vmem>>, vector<12x96xbf16>
    tpu.vector_store %arg6[%c0_14, %c0_15], %31 {strides = array<i32>} : memref<12x96xbf16, #tpu.memory_space<vmem>>, vector<12x96xbf16>,
    return
  }
  func.func @transform_0(%arg0: i32) -> (i32, i32) {
    %c0_i32 = arith.constant 0 : i32
    %c0_i32_0 = arith.constant 0 : i32
    return %arg0, %c0_i32 : i32, i32
  }
  func.func @transform_1(%arg0: i32) -> (i32, i32) {
    %c0_i32 = arith.constant 0 : i32
    %c0_i32_0 = arith.constant 0 : i32
    %c0_i32_1 = arith.constant 0 : i32
    return %c0_i32, %c0_i32_0 : i32, i32
  }
  func.func @transform_2(%arg0: i32) -> (i32, i32) {
    %c0_i32 = arith.constant 0 : i32
    %c0_i32_0 = arith.constant 0 : i32
    %c0_i32_1 = arith.constant 0 : i32
    return %c0_i32, %c0_i32_0 : i32, i32
  }
  func.func @transform_3(%arg0: i32) -> (i32, i32) {
    %c0_i32 = arith.constant 0 : i32
    %c0_i32_0 = arith.constant 0 : i32
    %c0_i32_1 = arith.constant 0 : i32
    return %c0_i32, %c0_i32_0 : i32, i32
  }
  func.func @transform_4(%arg0: i32) -> (i32, i32) {
    %c0_i32 = arith.constant 0 : i32
    %c0_i32_0 = arith.constant 0 : i32
    %c0_i32_1 = arith.constant 0 : i32
    return %c0_i32, %c0_i32_0 : i32, i32
  }
  func.func @transform_5(%arg0: i32) -> (i32, i32) {
    %c0_i32 = arith.constant 0 : i32
    %c0_i32_0 = arith.constant 0 : i32
    return %arg0, %c0_i32 : i32, i32
  }
}

module attributes {stable_mosaic.version = 11 : i64} {
  func.func @_attn_kernel(%arg0: i32, %arg1: memref<1x6x32xbf16, #tpu.memory_space<vmem>>, %arg2: memref<1x6x32xbf16, #tpu.memory_space<vmem>>, %arg3: memref<1x6x32xbf16, #tpu.memory_space<vmem>>, %arg4: memref<1x1x6xf32, #tpu.memory_space<vmem>>, %arg5: memref<1x6x32xbf16, #tpu.memory_space<vmem>>) attributes {dimension_semantics = [#tpu.dimension_semantics<parallel>], iteration_bounds = array<i64: 2>, scalar_prefetch = 0 : i64, scratch_operands = 0 : i64, tpu.core_type = #tpu.core_type<tc>, window_params = [{transform_indices = @transform_0, window_bounds = array<i64: 1, 6, 32>}, {transform_indices = @transform_1, window_bounds = array<i64: 1, 6, 32>}, {transform_indices = @transform_2, window_bounds = array<i64: 1, 6, 32>}, {transform_indices = @transform_3, window_bounds = array<i64: 1, 1, 6>}, {transform_indices = @transform_4, window_bounds = array<i64: 1, 6, 32>}]} {
    %c0 = arith.constant 0 : index
    %c0_0 = arith.constant 0 : index
    %c0_1 = arith.constant 0 : index
    %0 = vector.load %arg1[%c0, %c0_0, %c0_1] : memref<1x6x32xbf16, #tpu.memory_space<vmem>>, vector<1x6x32xbf16>
    %1 = vector.shape_cast %0 : vector<1x6x32xbf16> to vector<6x32xbf16>
    %cst = arith.constant 3.535160e-01 : bf16
    %2 = vector.broadcast %cst : bf16 to vector<6x32xbf16>
    %3 = arith.mulf %1, %2 : vector<6x32xbf16>
    %c0_2 = arith.constant 0 : index
    %c0_3 = arith.constant 0 : index
    %c0_4 = arith.constant 0 : index
    %4 = vector.load %arg2[%c0_2, %c0_3, %c0_4] : memref<1x6x32xbf16, #tpu.memory_space<vmem>>, vector<1x6x32xbf16>
    %5 = vector.shape_cast %4 : vector<1x6x32xbf16> to vector<6x32xbf16>
    %c0_5 = arith.constant 0 : index
    %c0_6 = arith.constant 0 : index
    %c0_7 = arith.constant 0 : index
    %6 = vector.load %arg3[%c0_5, %c0_6, %c0_7] : memref<1x6x32xbf16, #tpu.memory_space<vmem>>, vector<1x6x32xbf16>
    %7 = vector.shape_cast %6 : vector<1x6x32xbf16> to vector<6x32xbf16>
    %c0_8 = arith.constant 0 : index
    %c0_9 = arith.constant 0 : index
    %c0_10 = arith.constant 0 : index
    %8 = vector.load %arg4[%c0_8, %c0_9, %c0_10] : memref<1x1x6xf32, #tpu.memory_space<vmem>>, vector<1x1x6xf32>
    %9 = vector.shape_cast %8 : vector<1x1x6xf32> to vector<1x6xf32>
    %10 = tpu.iota {dimensions = array<i32: 0>} : vector<6x6xi32>
    %11 = tpu.iota {dimensions = array<i32: 1>} : vector<6x6xi32>
    %12 = arith.cmpi sgt, %11, %10 : vector<6x6xi32>
    %cst_11 = arith.constant -1.000000e+30 : f32
    %cst_12 = arith.constant 0.000000e+00 : f32
    %13 = vector.broadcast %cst_11 : f32 to vector<6x6xf32>
    %14 = vector.broadcast %cst_12 : f32 to vector<6x6xf32>
    %15 = arith.select %12, %13, %14 : vector<6x6xi1>, vector<6x6xf32>
    %16 = vector.broadcast %9 : vector<1x6xf32> to vector<6x6xf32>
    %17 = arith.addf %16, %15 : vector<6x6xf32>
    %18 = vector.extract_strided_slice %3 {offsets = [0, 0], sizes = [6, 8], strides = [1, 1]} : vector<6x32xbf16> to vector<6x8xbf16>
    %19 = vector.extract_strided_slice %5 {offsets = [0, 0], sizes = [6, 8], strides = [1, 1]} : vector<6x32xbf16> to vector<6x8xbf16>
    %cst_13 = arith.constant dense<0.000000e+00> : vector<6x6xf32>
    %20 = tpu.matmul %18, %19, %cst_13 {dimension_numbers = #tpu.dot_dimension_numbers<[1], [1], [0], [0], [0, 0, 1, 0], [], []>} : vector<6x8xbf16>, vector<6x8xbf16>, vector<6x6xf32> -> vector<6x6xf32>
    %21 = arith.addf %20, %17 : vector<6x6xf32>
    %cst_14 = arith.constant dense<0xFF800000> : vector<6xf32>
    %22 = vector.multi_reduction <maximumf>, %21, %cst_14 [1] : vector<6x6xf32> to vector<6xf32>
    %23 = vector.shape_cast %22 : vector<6xf32> to vector<6x1xf32>
    %24 = vector.broadcast %23 : vector<6x1xf32> to vector<6x6xf32>
    %25 = arith.subf %21, %24 : vector<6x6xf32>
    %26 = math.exp %25 : vector<6x6xf32>
    %cst_15 = arith.constant dense<0.000000e+00> : vector<6xf32>
    %27 = vector.multi_reduction <add>, %26, %cst_15 [1] : vector<6x6xf32> to vector<6xf32>
    %28 = vector.shape_cast %27 : vector<6xf32> to vector<6x1xf32>
    %29 = tpu.reciprocal %28 {approx = true} : vector<6x1xf32> -> vector<6x1xf32>
    %30 = vector.broadcast %29 : vector<6x1xf32> to vector<6x6xf32>
    %31 = arith.mulf %26, %30 : vector<6x6xf32>
    %32 = arith.truncf %31 : vector<6x6xf32> to vector<6x6xbf16>
    %33 = vector.extract_strided_slice %7 {offsets = [0, 0], sizes = [6, 8], strides = [1, 1]} : vector<6x32xbf16> to vector<6x8xbf16>
    %cst_16 = arith.constant dense<0.000000e+00> : vector<6x8xf32>
    %34 = tpu.matmul %32, %33, %cst_16 {dimension_numbers = #tpu.dot_dimension_numbers<[1], [0], [0], [1], [0, 0, 1, 1], [], []>} : vector<6x6xbf16>, vector<6x8xbf16>, vector<6x8xf32> -> vector<6x8xf32>
    %35 = vector.extract_strided_slice %3 {offsets = [0, 8], sizes = [6, 8], strides = [1, 1]} : vector<6x32xbf16> to vector<6x8xbf16>
    %36 = vector.extract_strided_slice %5 {offsets = [0, 8], sizes = [6, 8], strides = [1, 1]} : vector<6x32xbf16> to vector<6x8xbf16>
    %cst_17 = arith.constant dense<0.000000e+00> : vector<6x6xf32>
    %37 = tpu.matmul %35, %36, %cst_17 {dimension_numbers = #tpu.dot_dimension_numbers<[1], [1], [0], [0], [0, 0, 1, 0], [], []>} : vector<6x8xbf16>, vector<6x8xbf16>, vector<6x6xf32> -> vector<6x6xf32>
    %38 = arith.addf %37, %17 : vector<6x6xf32>
    %cst_18 = arith.constant dense<0xFF800000> : vector<6xf32>
    %39 = vector.multi_reduction <maximumf>, %38, %cst_18 [1] : vector<6x6xf32> to vector<6xf32>
    %40 = vector.shape_cast %39 : vector<6xf32> to vector<6x1xf32>
    %41 = vector.broadcast %40 : vector<6x1xf32> to vector<6x6xf32>
    %42 = arith.subf %38, %41 : vector<6x6xf32>
    %43 = math.exp %42 : vector<6x6xf32>
    %cst_19 = arith.constant dense<0.000000e+00> : vector<6xf32>
    %44 = vector.multi_reduction <add>, %43, %cst_19 [1] : vector<6x6xf32> to vector<6xf32>
    %45 = vector.shape_cast %44 : vector<6xf32> to vector<6x1xf32>
    %46 = tpu.reciprocal %45 {approx = true} : vector<6x1xf32> -> vector<6x1xf32>
    %47 = vector.broadcast %46 : vector<6x1xf32> to vector<6x6xf32>
    %48 = arith.mulf %43, %47 : vector<6x6xf32>
    %49 = arith.truncf %48 : vector<6x6xf32> to vector<6x6xbf16>
    %50 = vector.extract_strided_slice %7 {offsets = [0, 8], sizes = [6, 8], strides = [1, 1]} : vector<6x32xbf16> to vector<6x8xbf16>
    %cst_20 = arith.constant dense<0.000000e+00> : vector<6x8xf32>
    %51 = tpu.matmul %49, %50, %cst_20 {dimension_numbers = #tpu.dot_dimension_numbers<[1], [0], [0], [1], [0, 0, 1, 1], [], []>} : vector<6x6xbf16>, vector<6x8xbf16>, vector<6x8xf32> -> vector<6x8xf32>
    %52 = vector.extract_strided_slice %3 {offsets = [0, 16], sizes = [6, 8], strides = [1, 1]} : vector<6x32xbf16> to vector<6x8xbf16>
    %53 = vector.extract_strided_slice %5 {offsets = [0, 16], sizes = [6, 8], strides = [1, 1]} : vector<6x32xbf16> to vector<6x8xbf16>
    %cst_21 = arith.constant dense<0.000000e+00> : vector<6x6xf32>
    %54 = tpu.matmul %52, %53, %cst_21 {dimension_numbers = #tpu.dot_dimension_numbers<[1], [1], [0], [0], [0, 0, 1, 0], [], []>} : vector<6x8xbf16>, vector<6x8xbf16>, vector<6x6xf32> -> vector<6x6xf32>
    %55 = arith.addf %54, %17 : vector<6x6xf32>
    %cst_22 = arith.constant dense<0xFF800000> : vector<6xf32>
    %56 = vector.multi_reduction <maximumf>, %55, %cst_22 [1] : vector<6x6xf32> to vector<6xf32>
    %57 = vector.shape_cast %56 : vector<6xf32> to vector<6x1xf32>
    %58 = vector.broadcast %57 : vector<6x1xf32> to vector<6x6xf32>
    %59 = arith.subf %55, %58 : vector<6x6xf32>
    %60 = math.exp %59 : vector<6x6xf32>
    %cst_23 = arith.constant dense<0.000000e+00> : vector<6xf32>
    %61 = vector.multi_reduction <add>, %60, %cst_23 [1] : vector<6x6xf32> to vector<6xf32>
    %62 = vector.shape_cast %61 : vector<6xf32> to vector<6x1xf32>
    %63 = tpu.reciprocal %62 {approx = true} : vector<6x1xf32> -> vector<6x1xf32>
    %64 = vector.broadcast %63 : vector<6x1xf32> to vector<6x6xf32>
    %65 = arith.mulf %60, %64 : vector<6x6xf32>
    %66 = arith.truncf %65 : vector<6x6xf32> to vector<6x6xbf16>
    %67 = vector.extract_strided_slice %7 {offsets = [0, 16], sizes = [6, 8], strides = [1, 1]} : vector<6x32xbf16> to vector<6x8xbf16>
    %cst_24 = arith.constant dense<0.000000e+00> : vector<6x8xf32>
    %68 = tpu.matmul %66, %67, %cst_24 {dimension_numbers = #tpu.dot_dimension_numbers<[1], [0], [0], [1], [0, 0, 1, 1], [], []>} : vector<6x6xbf16>, vector<6x8xbf16>, vector<6x8xf32> -> vector<6x8xf32>
    %69 = vector.extract_strided_slice %3 {offsets = [0, 24], sizes = [6, 8], strides = [1, 1]} : vector<6x32xbf16> to vector<6x8xbf16>
    %70 = vector.extract_strided_slice %5 {offsets = [0, 24], sizes = [6, 8], strides = [1, 1]} : vector<6x32xbf16> to vector<6x8xbf16>
    %cst_25 = arith.constant dense<0.000000e+00> : vector<6x6xf32>
    %71 = tpu.matmul %69, %70, %cst_25 {dimension_numbers = #tpu.dot_dimension_numbers<[1], [1], [0], [0], [0, 0, 1, 0], [], []>} : vector<6x8xbf16>, vector<6x8xbf16>, vector<6x6xf32> -> vector<6x6xf32>
    %72 = arith.addf %71, %17 : vector<6x6xf32>
    %cst_26 = arith.constant dense<0xFF800000> : vector<6xf32>
    %73 = vector.multi_reduction <maximumf>, %72, %cst_26 [1] : vector<6x6xf32> to vector<6xf32>
    %74 = vector.shape_cast %73 : vector<6xf32> to vector<6x1xf32>
    %75 = vector.broadcast %74 : vector<6x1xf32> to vector<6x6xf32>
    %76 = arith.subf %72, %75 : vector<6x6xf32>
    %77 = math.exp %76 : vector<6x6xf32>
    %cst_27 = arith.constant dense<0.000000e+00> : vector<6xf32>
    %78 = vector.multi_reduction <add>, %77, %cst_27 [1] : vector<6x6xf32> to vector<6xf32>
    %79 = vector.shape_cast %78 : vector<6xf32> to vector<6x1xf32>
    %80 = tpu.reciprocal %79 {approx = true} : vector<6x1xf32> -> vector<6x1xf32>
    %81 = vector.broadcast %80 : vector<6x1xf32> to vector<6x6xf32>
    %82 = arith.mulf %77, %81 : vector<6x6xf32>
    %83 = arith.truncf %82 : vector<6x6xf32> to vector<6x6xbf16>
    %84 = vector.extract_strided_slice %7 {offsets = [0, 24], sizes = [6, 8], strides = [1, 1]} : vector<6x32xbf16> to vector<6x8xbf16>
    %cst_28 = arith.constant dense<0.000000e+00> : vector<6x8xf32>
    %85 = tpu.matmul %83, %84, %cst_28 {dimension_numbers = #tpu.dot_dimension_numbers<[1], [0], [0], [1], [0, 0, 1, 1], [], []>} : vector<6x6xbf16>, vector<6x8xbf16>, vector<6x8xf32> -> vector<6x8xf32>
    %86 = tpu.concatenate %34, %51, %68, %85 in 1 : vector<6x8xf32>, vector<6x8xf32>, vector<6x8xf32>, vector<6x8xf32> -> vector<6x32xf32>
    %87 = arith.truncf %86 : vector<6x32xf32> to vector<6x32xbf16>
    %c0_29 = arith.constant 0 : index
    %c0_30 = arith.constant 0 : index
    %c0_31 = arith.constant 0 : index
    %88 = vector.load %arg5[%c0_29, %c0_30, %c0_31] : memref<1x6x32xbf16, #tpu.memory_space<vmem>>, vector<1x6x32xbf16>
    %89 = vector.shape_cast %88 : vector<1x6x32xbf16> to vector<6x32xbf16>
    %90 = vector.shape_cast %87 : vector<6x32xbf16> to vector<1x6x32xbf16>
    tpu.vector_store %arg5[%c0_29, %c0_30, %c0_31], %90 {strides = array<i32>} : memref<1x6x32xbf16, #tpu.memory_space<vmem>>, vector<1x6x32xbf16>,
    return
  }
  func.func @transform_0(%arg0: i32) -> (i32, i32, i32) {
    %c0_i32 = arith.constant 0 : i32
    %c0_i32_0 = arith.constant 0 : i32
    %c0_i32_1 = arith.constant 0 : i32
    return %arg0, %c0_i32, %c0_i32_0 : i32, i32, i32
  }
  func.func @transform_1(%arg0: i32) -> (i32, i32, i32) {
    %c0_i32 = arith.constant 0 : i32
    %c0_i32_0 = arith.constant 0 : i32
    %c0_i32_1 = arith.constant 0 : i32
    return %arg0, %c0_i32, %c0_i32_0 : i32, i32, i32
  }
  func.func @transform_2(%arg0: i32) -> (i32, i32, i32) {
    %c0_i32 = arith.constant 0 : i32
    %c0_i32_0 = arith.constant 0 : i32
    %c0_i32_1 = arith.constant 0 : i32
    return %arg0, %c0_i32, %c0_i32_0 : i32, i32, i32
  }
  func.func @transform_3(%arg0: i32) -> (i32, i32, i32) {
    %c0_i32 = arith.constant 0 : i32
    %c0_i32_0 = arith.constant 0 : i32
    %c0_i32_1 = arith.constant 0 : i32
    return %arg0, %c0_i32, %c0_i32_0 : i32, i32, i32
  }
  func.func @transform_4(%arg0: i32) -> (i32, i32, i32) {
    %c0_i32 = arith.constant 0 : i32
    %c0_i32_0 = arith.constant 0 : i32
    %c0_i32_1 = arith.constant 0 : i32
    return %arg0, %c0_i32, %c0_i32_0 : i32, i32, i32
  }
}

module attributes {stable_mosaic.version = 11 : i64} {
  func.func @_mm_res_kernel(%arg0: i32, %arg1: memref<12x32xbf16, #tpu.memory_space<vmem>>, %arg2: memref<12x32xf32, #tpu.memory_space<vmem>>, %arg3: memref<32x32xbf16, #tpu.memory_space<vmem>>, %arg4: memref<1x32xf32, #tpu.memory_space<vmem>>, %arg5: memref<12x32xf32, #tpu.memory_space<vmem>>) attributes {dimension_semantics = [#tpu.dimension_semantics<parallel>], iteration_bounds = array<i64: 1>, scalar_prefetch = 0 : i64, scratch_operands = 0 : i64, tpu.core_type = #tpu.core_type<tc>, window_params = [{transform_indices = @transform_0, window_bounds = array<i64: 12, 32>}, {transform_indices = @transform_1, window_bounds = array<i64: 12, 32>}, {pipeline_mode = #tpu.pipeline_mode<synchronous>, transform_indices = @transform_2, window_bounds = array<i64: 32, 32>}, {pipeline_mode = #tpu.pipeline_mode<synchronous>, transform_indices = @transform_3, window_bounds = array<i64: 1, 32>}, {transform_indices = @transform_4, window_bounds = array<i64: 12, 32>}]} {
    %c0 = arith.constant 0 : index
    %c0_0 = arith.constant 0 : index
    %0 = vector.load %arg2[%c0, %c0_0] : memref<12x32xf32, #tpu.memory_space<vmem>>, vector<12x32xf32>
    %c0_1 = arith.constant 0 : index
    %c0_2 = arith.constant 0 : index
    %1 = vector.load %arg1[%c0_1, %c0_2] : memref<12x32xbf16, #tpu.memory_space<vmem>>, vector<12x32xbf16>
    %c0_3 = arith.constant 0 : index
    %c0_4 = arith.constant 0 : index
    %2 = vector.load %arg3[%c0_3, %c0_4] : memref<32x32xbf16, #tpu.memory_space<vmem>>, vector<32x32xbf16>
    %cst = arith.constant dense<0.000000e+00> : vector<12x32xf32>
    %3 = tpu.matmul %1, %2, %cst {dimension_numbers = #tpu.dot_dimension_numbers<[1], [0], [0], [1], [0, 0, 1, 1], [], []>} : vector<12x32xbf16>, vector<32x32xbf16>, vector<12x32xf32> -> vector<12x32xf32>
    %c0_5 = arith.constant 0 : index
    %c0_6 = arith.constant 0 : index
    %4 = vector.load %arg4[%c0_5, %c0_6] : memref<1x32xf32, #tpu.memory_space<vmem>>, vector<1x32xf32>
    %5 = vector.broadcast %4 : vector<1x32xf32> to vector<12x32xf32>
    %6 = arith.addf %3, %5 : vector<12x32xf32>
    %7 = arith.addf %0, %6 : vector<12x32xf32>
    %c0_7 = arith.constant 0 : index
    %c0_8 = arith.constant 0 : index
    %8 = vector.load %arg5[%c0_7, %c0_8] : memref<12x32xf32, #tpu.memory_space<vmem>>, vector<12x32xf32>
    tpu.vector_store %arg5[%c0_7, %c0_8], %7 {strides = array<i32>} : memref<12x32xf32, #tpu.memory_space<vmem>>, vector<12x32xf32>,
    return
  }
  func.func @transform_0(%arg0: i32) -> (i32, i32) {
    %c0_i32 = arith.constant 0 : i32
    %c0_i32_0 = arith.constant 0 : i32
    return %arg0, %c0_i32 : i32, i32
  }
  func.func @transform_1(%arg0: i32) -> (i32, i32) {
    %c0_i32 = arith.constant 0 : i32
    %c0_i32_0 = arith.constant 0 : i32
    return %arg0, %c0_i32 : i32, i32
  }
  func.func @transform_2(%arg0: i32) -> (i32, i32) {
    %c0_i32 = arith.constant 0 : i32
    %c0_i32_0 = arith.constant 0 : i32
    %c0_i32_1 = arith.constant 0 : i32
    return %c0_i32, %c0_i32_0 : i32, i32
  }
  func.func @transform_3(%arg0: i32) -> (i32, i32) {
    %c0_i32 = arith.constant 0 : i32
    %c0_i32_0 = arith.constant 0 : i32
    %c0_i32_1 = arith.constant 0 : i32
    return %c0_i32, %c0_i32_0 : i32, i32
  }
  func.func @transform_4(%arg0: i32) -> (i32, i32) {
    %c0_i32 = arith.constant 0 : i32
    %c0_i32_0 = arith.constant 0 : i32
    return %arg0, %c0_i32 : i32, i32
  }
}

module attributes {stable_mosaic.version = 11 : i64} {
  func.func @_ln_mm_kernel(%arg0: i32, %arg1: memref<12x32xf32, #tpu.memory_space<vmem>>, %arg2: memref<1x32xf32, #tpu.memory_space<vmem>>, %arg3: memref<1x32xf32, #tpu.memory_space<vmem>>, %arg4: memref<32x32xbf16, #tpu.memory_space<vmem>>, %arg5: memref<1x32xf32, #tpu.memory_space<vmem>>, %arg6: memref<12x32xbf16, #tpu.memory_space<vmem>>) attributes {dimension_semantics = [#tpu.dimension_semantics<parallel>], iteration_bounds = array<i64: 1>, scalar_prefetch = 0 : i64, scratch_operands = 0 : i64, tpu.core_type = #tpu.core_type<tc>, window_params = [{transform_indices = @transform_0, window_bounds = array<i64: 12, 32>}, {pipeline_mode = #tpu.pipeline_mode<synchronous>, transform_indices = @transform_1, window_bounds = array<i64: 1, 32>}, {pipeline_mode = #tpu.pipeline_mode<synchronous>, transform_indices = @transform_2, window_bounds = array<i64: 1, 32>}, {pipeline_mode = #tpu.pipeline_mode<synchronous>, transform_indices = @transform_3, window_bounds = array<i64: 32, 32>}, {pipeline_mode = #tpu.pipeline_mode<synchronous>, transform_indices = @transform_4, window_bounds = array<i64: 1, 32>}, {transform_indices = @transform_5, window_bounds = array<i64: 12, 32>}]} {
    %c0 = arith.constant 0 : index
    %c0_0 = arith.constant 0 : index
    %0 = vector.load %arg1[%c0, %c0_0] : memref<12x32xf32, #tpu.memory_space<vmem>>, vector<12x32xf32>
    %cst = arith.constant dense<0.000000e+00> : vector<12xf32>
    %1 = vector.multi_reduction <add>, %0, %cst [1] : vector<12x32xf32> to vector<12xf32>
    %2 = vector.shape_cast %1 : vector<12xf32> to vector<12x1xf32>
    %cst_1 = arith.constant 3.200000e+01 : f32
    %3 = vector.broadcast %cst_1 : f32 to vector<12x1xf32>
    %4 = arith.divf %2, %3 : vector<12x1xf32>
    %5 = vector.broadcast %4 : vector<12x1xf32> to vector<12x32xf32>
    %6 = arith.subf %0, %5 : vector<12x32xf32>
    %7 = arith.mulf %6, %6 : vector<12x32xf32>
    %cst_2 = arith.constant dense<0.000000e+00> : vector<12xf32>
    %8 = vector.multi_reduction <add>, %7, %cst_2 [1] : vector<12x32xf32> to vector<12xf32>
    %9 = vector.shape_cast %8 : vector<12xf32> to vector<12x1xf32>
    %cst_3 = arith.constant 3.200000e+01 : f32
    %10 = vector.broadcast %cst_3 : f32 to vector<12x1xf32>
    %11 = arith.divf %9, %10 : vector<12x1xf32>
    %12 = vector.broadcast %4 : vector<12x1xf32> to vector<12x32xf32>
    %13 = arith.subf %0, %12 : vector<12x32xf32>
    %cst_4 = arith.constant 9.99999974E-6 : f32
    %14 = vector.broadcast %cst_4 : f32 to vector<12x1xf32>
    %15 = arith.addf %11, %14 : vector<12x1xf32>
    %16 = math.rsqrt %15 : vector<12x1xf32>
    %17 = vector.broadcast %16 : vector<12x1xf32> to vector<12x32xf32>
    %18 = arith.mulf %13, %17 : vector<12x32xf32>
    %c0_5 = arith.constant 0 : index
    %c0_6 = arith.constant 0 : index
    %19 = vector.load %arg2[%c0_5, %c0_6] : memref<1x32xf32, #tpu.memory_space<vmem>>, vector<1x32xf32>
    %20 = vector.broadcast %19 : vector<1x32xf32> to vector<12x32xf32>
    %21 = arith.mulf %18, %20 : vector<12x32xf32>
    %c0_7 = arith.constant 0 : index
    %c0_8 = arith.constant 0 : index
    %22 = vector.load %arg3[%c0_7, %c0_8] : memref<1x32xf32, #tpu.memory_space<vmem>>, vector<1x32xf32>
    %23 = vector.broadcast %22 : vector<1x32xf32> to vector<12x32xf32>
    %24 = arith.addf %21, %23 : vector<12x32xf32>
    %25 = arith.truncf %24 : vector<12x32xf32> to vector<12x32xbf16>
    %c0_9 = arith.constant 0 : index
    %c0_10 = arith.constant 0 : index
    %26 = vector.load %arg4[%c0_9, %c0_10] : memref<32x32xbf16, #tpu.memory_space<vmem>>, vector<32x32xbf16>
    %cst_11 = arith.constant dense<0.000000e+00> : vector<12x32xf32>
    %27 = tpu.matmul %25, %26, %cst_11 {dimension_numbers = #tpu.dot_dimension_numbers<[1], [0], [0], [1], [0, 0, 1, 1], [], []>} : vector<12x32xbf16>, vector<32x32xbf16>, vector<12x32xf32> -> vector<12x32xf32>
    %c0_12 = arith.constant 0 : index
    %c0_13 = arith.constant 0 : index
    %28 = vector.load %arg5[%c0_12, %c0_13] : memref<1x32xf32, #tpu.memory_space<vmem>>, vector<1x32xf32>
    %29 = vector.broadcast %28 : vector<1x32xf32> to vector<12x32xf32>
    %30 = arith.addf %27, %29 : vector<12x32xf32>
    %31 = arith.truncf %30 : vector<12x32xf32> to vector<12x32xbf16>
    %c0_14 = arith.constant 0 : index
    %c0_15 = arith.constant 0 : index
    %32 = vector.load %arg6[%c0_14, %c0_15] : memref<12x32xbf16, #tpu.memory_space<vmem>>, vector<12x32xbf16>
    tpu.vector_store %arg6[%c0_14, %c0_15], %31 {strides = array<i32>} : memref<12x32xbf16, #tpu.memory_space<vmem>>, vector<12x32xbf16>,
    return
  }
  func.func @transform_0(%arg0: i32) -> (i32, i32) {
    %c0_i32 = arith.constant 0 : i32
    %c0_i32_0 = arith.constant 0 : i32
    return %arg0, %c0_i32 : i32, i32
  }
  func.func @transform_1(%arg0: i32) -> (i32, i32) {
    %c0_i32 = arith.constant 0 : i32
    %c0_i32_0 = arith.constant 0 : i32
    %c0_i32_1 = arith.constant 0 : i32
    return %c0_i32, %c0_i32_0 : i32, i32
  }
  func.func @transform_2(%arg0: i32) -> (i32, i32) {
    %c0_i32 = arith.constant 0 : i32
    %c0_i32_0 = arith.constant 0 : i32
    %c0_i32_1 = arith.constant 0 : i32
    return %c0_i32, %c0_i32_0 : i32, i32
  }
  func.func @transform_3(%arg0: i32) -> (i32, i32) {
    %c0_i32 = arith.constant 0 : i32
    %c0_i32_0 = arith.constant 0 : i32
    %c0_i32_1 = arith.constant 0 : i32
    return %c0_i32, %c0_i32_0 : i32, i32
  }
  func.func @transform_4(%arg0: i32) -> (i32, i32) {
    %c0_i32 = arith.constant 0 : i32
    %c0_i32_0 = arith.constant 0 : i32
    %c0_i32_1 = arith.constant 0 : i32
    return %c0_i32, %c0_i32_0 : i32, i32
  }
  func.func @transform_5(%arg0: i32) -> (i32, i32) {
    %c0_i32 = arith.constant 0 : i32
    %c0_i32_0 = arith.constant 0 : i32
    return %arg0, %c0_i32 : i32, i32
  }
}

module attributes {stable_mosaic.version = 11 : i64} {
  func.func @_ffn_kernel(%arg0: i32, %arg1: memref<12x32xf32, #tpu.memory_space<vmem>>, %arg2: memref<1x32xf32, #tpu.memory_space<vmem>>, %arg3: memref<1x32xf32, #tpu.memory_space<vmem>>, %arg4: memref<32x64xbf16, #tpu.memory_space<vmem>>, %arg5: memref<1x64xf32, #tpu.memory_space<vmem>>, %arg6: memref<64x32xbf16, #tpu.memory_space<vmem>>, %arg7: memref<1x32xf32, #tpu.memory_space<vmem>>, %arg8: memref<1x32xf32, #tpu.memory_space<vmem>>, %arg9: memref<1x32xf32, #tpu.memory_space<vmem>>, %arg10: memref<12x32xf32, #tpu.memory_space<vmem>>) attributes {dimension_semantics = [#tpu.dimension_semantics<parallel>], iteration_bounds = array<i64: 1>, scalar_prefetch = 0 : i64, scratch_operands = 0 : i64, tpu.core_type = #tpu.core_type<tc>, window_params = [{transform_indices = @transform_0, window_bounds = array<i64: 12, 32>}, {pipeline_mode = #tpu.pipeline_mode<synchronous>, transform_indices = @transform_1, window_bounds = array<i64: 1, 32>}, {pipeline_mode = #tpu.pipeline_mode<synchronous>, transform_indices = @transform_2, window_bounds = array<i64: 1, 32>}, {pipeline_mode = #tpu.pipeline_mode<synchronous>, transform_indices = @transform_3, window_bounds = array<i64: 32, 64>}, {pipeline_mode = #tpu.pipeline_mode<synchronous>, transform_indices = @transform_4, window_bounds = array<i64: 1, 64>}, {pipeline_mode = #tpu.pipeline_mode<synchronous>, transform_indices = @transform_5, window_bounds = array<i64: 64, 32>}, {pipeline_mode = #tpu.pipeline_mode<synchronous>, transform_indices = @transform_6, window_bounds = array<i64: 1, 32>}, {pipeline_mode = #tpu.pipeline_mode<synchronous>, transform_indices = @transform_7, window_bounds = array<i64: 1, 32>}, {pipeline_mode = #tpu.pipeline_mode<synchronous>, transform_indices = @transform_8, window_bounds = array<i64: 1, 32>}, {transform_indices = @transform_9, window_bounds = array<i64: 12, 32>}]} {
    %c0 = arith.constant 0 : index
    %c0_0 = arith.constant 0 : index
    %0 = vector.load %arg1[%c0, %c0_0] : memref<12x32xf32, #tpu.memory_space<vmem>>, vector<12x32xf32>
    %cst = arith.constant dense<0.000000e+00> : vector<12xf32>
    %1 = vector.multi_reduction <add>, %0, %cst [1] : vector<12x32xf32> to vector<12xf32>
    %2 = vector.shape_cast %1 : vector<12xf32> to vector<12x1xf32>
    %cst_1 = arith.constant 3.200000e+01 : f32
    %3 = vector.broadcast %cst_1 : f32 to vector<12x1xf32>
    %4 = arith.divf %2, %3 : vector<12x1xf32>
    %5 = vector.broadcast %4 : vector<12x1xf32> to vector<12x32xf32>
    %6 = arith.subf %0, %5 : vector<12x32xf32>
    %7 = arith.mulf %6, %6 : vector<12x32xf32>
    %cst_2 = arith.constant dense<0.000000e+00> : vector<12xf32>
    %8 = vector.multi_reduction <add>, %7, %cst_2 [1] : vector<12x32xf32> to vector<12xf32>
    %9 = vector.shape_cast %8 : vector<12xf32> to vector<12x1xf32>
    %cst_3 = arith.constant 3.200000e+01 : f32
    %10 = vector.broadcast %cst_3 : f32 to vector<12x1xf32>
    %11 = arith.divf %9, %10 : vector<12x1xf32>
    %12 = vector.broadcast %4 : vector<12x1xf32> to vector<12x32xf32>
    %13 = arith.subf %0, %12 : vector<12x32xf32>
    %cst_4 = arith.constant 9.99999974E-6 : f32
    %14 = vector.broadcast %cst_4 : f32 to vector<12x1xf32>
    %15 = arith.addf %11, %14 : vector<12x1xf32>
    %16 = math.rsqrt %15 : vector<12x1xf32>
    %17 = vector.broadcast %16 : vector<12x1xf32> to vector<12x32xf32>
    %18 = arith.mulf %13, %17 : vector<12x32xf32>
    %c0_5 = arith.constant 0 : index
    %c0_6 = arith.constant 0 : index
    %19 = vector.load %arg2[%c0_5, %c0_6] : memref<1x32xf32, #tpu.memory_space<vmem>>, vector<1x32xf32>
    %20 = vector.broadcast %19 : vector<1x32xf32> to vector<12x32xf32>
    %21 = arith.mulf %18, %20 : vector<12x32xf32>
    %c0_7 = arith.constant 0 : index
    %c0_8 = arith.constant 0 : index
    %22 = vector.load %arg3[%c0_7, %c0_8] : memref<1x32xf32, #tpu.memory_space<vmem>>, vector<1x32xf32>
    %23 = vector.broadcast %22 : vector<1x32xf32> to vector<12x32xf32>
    %24 = arith.addf %21, %23 : vector<12x32xf32>
    %25 = arith.truncf %24 : vector<12x32xf32> to vector<12x32xbf16>
    %c0_9 = arith.constant 0 : index
    %c0_10 = arith.constant 0 : index
    %26 = vector.load %arg4[%c0_9, %c0_10] : memref<32x64xbf16, #tpu.memory_space<vmem>>, vector<32x64xbf16>
    %cst_11 = arith.constant dense<0.000000e+00> : vector<12x64xf32>
    %27 = tpu.matmul %25, %26, %cst_11 {dimension_numbers = #tpu.dot_dimension_numbers<[1], [0], [0], [1], [0, 0, 1, 1], [], []>} : vector<12x32xbf16>, vector<32x64xbf16>, vector<12x64xf32> -> vector<12x64xf32>
    %c0_12 = arith.constant 0 : index
    %c0_13 = arith.constant 0 : index
    %28 = vector.load %arg5[%c0_12, %c0_13] : memref<1x64xf32, #tpu.memory_space<vmem>>, vector<1x64xf32>
    %29 = vector.broadcast %28 : vector<1x64xf32> to vector<12x64xf32>
    %30 = arith.addf %27, %29 : vector<12x64xf32>
    %cst_14 = arith.constant 0.000000e+00 : f32
    %31 = vector.broadcast %cst_14 : f32 to vector<12x64xf32>
    %32 = arith.maximumf %30, %31 : vector<12x64xf32>
    %33 = arith.truncf %32 : vector<12x64xf32> to vector<12x64xbf16>
    %c0_15 = arith.constant 0 : index
    %c0_16 = arith.constant 0 : index
    %34 = vector.load %arg6[%c0_15, %c0_16] : memref<64x32xbf16, #tpu.memory_space<vmem>>, vector<64x32xbf16>
    %cst_17 = arith.constant dense<0.000000e+00> : vector<12x32xf32>
    %35 = tpu.matmul %33, %34, %cst_17 {dimension_numbers = #tpu.dot_dimension_numbers<[1], [0], [0], [1], [0, 0, 1, 1], [], []>} : vector<12x64xbf16>, vector<64x32xbf16>, vector<12x32xf32> -> vector<12x32xf32>
    %c0_18 = arith.constant 0 : index
    %c0_19 = arith.constant 0 : index
    %36 = vector.load %arg7[%c0_18, %c0_19] : memref<1x32xf32, #tpu.memory_space<vmem>>, vector<1x32xf32>
    %37 = vector.broadcast %36 : vector<1x32xf32> to vector<12x32xf32>
    %38 = arith.addf %35, %37 : vector<12x32xf32>
    %cst_20 = arith.constant 1.000000e+00 : f32
    %39 = vector.broadcast %cst_20 : f32 to vector<12x32xf32>
    %40 = arith.mulf %39, %38 : vector<12x32xf32>
    %41 = arith.addf %0, %40 : vector<12x32xf32>
    %c0_21 = arith.constant 0 : index
    %c0_22 = arith.constant 0 : index
    %42 = vector.load %arg10[%c0_21, %c0_22] : memref<12x32xf32, #tpu.memory_space<vmem>>, vector<12x32xf32>
    tpu.vector_store %arg10[%c0_21, %c0_22], %41 {strides = array<i32>} : memref<12x32xf32, #tpu.memory_space<vmem>>, vector<12x32xf32>,
    return
  }
  func.func @transform_0(%arg0: i32) -> (i32, i32) {
    %c0_i32 = arith.constant 0 : i32
    %c0_i32_0 = arith.constant 0 : i32
    return %arg0, %c0_i32 : i32, i32
  }
  func.func @transform_1(%arg0: i32) -> (i32, i32) {
    %c0_i32 = arith.constant 0 : i32
    %c0_i32_0 = arith.constant 0 : i32
    %c0_i32_1 = arith.constant 0 : i32
    return %c0_i32, %c0_i32_0 : i32, i32
  }
  func.func @transform_2(%arg0: i32) -> (i32, i32) {
    %c0_i32 = arith.constant 0 : i32
    %c0_i32_0 = arith.constant 0 : i32
    %c0_i32_1 = arith.constant 0 : i32
    return %c0_i32, %c0_i32_0 : i32, i32
  }
  func.func @transform_3(%arg0: i32) -> (i32, i32) {
    %c0_i32 = arith.constant 0 : i32
    %c0_i32_0 = arith.constant 0 : i32
    %c0_i32_1 = arith.constant 0 : i32
    return %c0_i32, %c0_i32_0 : i32, i32
  }
  func.func @transform_4(%arg0: i32) -> (i32, i32) {
    %c0_i32 = arith.constant 0 : i32
    %c0_i32_0 = arith.constant 0 : i32
    %c0_i32_1 = arith.constant 0 : i32
    return %c0_i32, %c0_i32_0 : i32, i32
  }
  func.func @transform_5(%arg0: i32) -> (i32, i32) {
    %c0_i32 = arith.constant 0 : i32
    %c0_i32_0 = arith.constant 0 : i32
    %c0_i32_1 = arith.constant 0 : i32
    return %c0_i32, %c0_i32_0 : i32, i32
  }
  func.func @transform_6(%arg0: i32) -> (i32, i32) {
    %c0_i32 = arith.constant 0 : i32
    %c0_i32_0 = arith.constant 0 : i32
    %c0_i32_1 = arith.constant 0 : i32
    return %c0_i32, %c0_i32_0 : i32, i32
  }
  func.func @transform_7(%arg0: i32) -> (i32, i32) {
    %c0_i32 = arith.constant 0 : i32
    %c0_i32_0 = arith.constant 0 : i32
    %c0_i32_1 = arith.constant 0 : i32
    return %c0_i32, %c0_i32_0 : i32, i32
  }
  func.func @transform_8(%arg0: i32) -> (i32, i32) {
    %c0_i32 = arith.constant 0 : i32
    %c0_i32_0 = arith.constant 0 : i32
    %c0_i32_1 = arith.constant 0 : i32
    return %c0_i32, %c0_i32_0 : i32, i32
  }
  func.func @transform_9(%arg0: i32) -> (i32, i32) {
    %c0_i32 = arith.constant 0 : i32
    %c0_i32_0 = arith.constant 0 : i32
    return %arg0, %c0_i32 : i32, i32
  }
}

module attributes {stable_mosaic.version = 11 : i64} {
  func.func @_attn_kernel(%arg0: i32, %arg1: memref<1x6x32xbf16, #tpu.memory_space<vmem>>, %arg2: memref<1x8x32xbf16, #tpu.memory_space<vmem>>, %arg3: memref<1x8x32xbf16, #tpu.memory_space<vmem>>, %arg4: memref<1x1x8xf32, #tpu.memory_space<vmem>>, %arg5: memref<1x6x32xbf16, #tpu.memory_space<vmem>>) attributes {dimension_semantics = [#tpu.dimension_semantics<parallel>], iteration_bounds = array<i64: 2>, scalar_prefetch = 0 : i64, scratch_operands = 0 : i64, tpu.core_type = #tpu.core_type<tc>, window_params = [{transform_indices = @transform_0, window_bounds = array<i64: 1, 6, 32>}, {transform_indices = @transform_1, window_bounds = array<i64: 1, 8, 32>}, {transform_indices = @transform_2, window_bounds = array<i64: 1, 8, 32>}, {transform_indices = @transform_3, window_bounds = array<i64: 1, 1, 8>}, {transform_indices = @transform_4, window_bounds = array<i64: 1, 6, 32>}]} {
    %c0 = arith.constant 0 : index
    %c0_0 = arith.constant 0 : index
    %c0_1 = arith.constant 0 : index
    %0 = vector.load %arg1[%c0, %c0_0, %c0_1] : memref<1x6x32xbf16, #tpu.memory_space<vmem>>, vector<1x6x32xbf16>
    %1 = vector.shape_cast %0 : vector<1x6x32xbf16> to vector<6x32xbf16>
    %cst = arith.constant 3.535160e-01 : bf16
    %2 = vector.broadcast %cst : bf16 to vector<6x32xbf16>
    %3 = arith.mulf %1, %2 : vector<6x32xbf16>
    %c0_2 = arith.constant 0 : index
    %c0_3 = arith.constant 0 : index
    %c0_4 = arith.constant 0 : index
    %4 = vector.load %arg2[%c0_2, %c0_3, %c0_4] : memref<1x8x32xbf16, #tpu.memory_space<vmem>>, vector<1x8x32xbf16>
    %5 = vector.shape_cast %4 : vector<1x8x32xbf16> to vector<8x32xbf16>
    %c0_5 = arith.constant 0 : index
    %c0_6 = arith.constant 0 : index
    %c0_7 = arith.constant 0 : index
    %6 = vector.load %arg3[%c0_5, %c0_6, %c0_7] : memref<1x8x32xbf16, #tpu.memory_space<vmem>>, vector<1x8x32xbf16>
    %7 = vector.shape_cast %6 : vector<1x8x32xbf16> to vector<8x32xbf16>
    %c0_8 = arith.constant 0 : index
    %c0_9 = arith.constant 0 : index
    %c0_10 = arith.constant 0 : index
    %8 = vector.load %arg4[%c0_8, %c0_9, %c0_10] : memref<1x1x8xf32, #tpu.memory_space<vmem>>, vector<1x1x8xf32>
    %9 = vector.shape_cast %8 : vector<1x1x8xf32> to vector<1x8xf32>
    %10 = vector.extract_strided_slice %3 {offsets = [0, 0], sizes = [6, 8], strides = [1, 1]} : vector<6x32xbf16> to vector<6x8xbf16>
    %11 = vector.extract_strided_slice %5 {offsets = [0, 0], sizes = [8, 8], strides = [1, 1]} : vector<8x32xbf16> to vector<8x8xbf16>
    %cst_11 = arith.constant dense<0.000000e+00> : vector<6x8xf32>
    %12 = tpu.matmul %10, %11, %cst_11 {dimension_numbers = #tpu.dot_dimension_numbers<[1], [1], [0], [0], [0, 0, 1, 0], [], []>} : vector<6x8xbf16>, vector<8x8xbf16>, vector<6x8xf32> -> vector<6x8xf32>
    %13 = vector.broadcast %9 : vector<1x8xf32> to vector<6x8xf32>
    %14 = arith.addf %12, %13 : vector<6x8xf32>
    %cst_12 = arith.constant dense<0xFF800000> : vector<6xf32>
    %15 = vector.multi_reduction <maximumf>, %14, %cst_12 [1] : vector<6x8xf32> to vector<6xf32>
    %16 = vector.shape_cast %15 : vector<6xf32> to vector<6x1xf32>
    %17 = vector.broadcast %16 : vector<6x1xf32> to vector<6x8xf32>
    %18 = arith.subf %14, %17 : vector<6x8xf32>
    %19 = math.exp %18 : vector<6x8xf32>
    %cst_13 = arith.constant dense<0.000000e+00> : vector<6xf32>
    %20 = vector.multi_reduction <add>, %19, %cst_13 [1] : vector<6x8xf32> to vector<6xf32>
    %21 = vector.shape_cast %20 : vector<6xf32> to vector<6x1xf32>
    %22 = tpu.reciprocal %21 {approx = true} : vector<6x1xf32> -> vector<6x1xf32>
    %23 = vector.broadcast %22 : vector<6x1xf32> to vector<6x8xf32>
    %24 = arith.mulf %19, %23 : vector<6x8xf32>
    %25 = arith.truncf %24 : vector<6x8xf32> to vector<6x8xbf16>
    %26 = vector.extract_strided_slice %7 {offsets = [0, 0], sizes = [8, 8], strides = [1, 1]} : vector<8x32xbf16> to vector<8x8xbf16>
    %cst_14 = arith.constant dense<0.000000e+00> : vector<6x8xf32>
    %27 = tpu.matmul %25, %26, %cst_14 {dimension_numbers = #tpu.dot_dimension_numbers<[1], [0], [0], [1], [0, 0, 1, 1], [], []>} : vector<6x8xbf16>, vector<8x8xbf16>, vector<6x8xf32> -> vector<6x8xf32>
    %28 = vector.extract_strided_slice %3 {offsets = [0, 8], sizes = [6, 8], strides = [1, 1]} : vector<6x32xbf16> to vector<6x8xbf16>
    %29 = vector.extract_strided_slice %5 {offsets = [0, 8], sizes = [8, 8], strides = [1, 1]} : vector<8x32xbf16> to vector<8x8xbf16>
    %cst_15 = arith.constant dense<0.000000e+00> : vector<6x8xf32>
    %30 = tpu.matmul %28, %29, %cst_15 {dimension_numbers = #tpu.dot_dimension_numbers<[1], [1], [0], [0], [0, 0, 1, 0], [], []>} : vector<6x8xbf16>, vector<8x8xbf16>, vector<6x8xf32> -> vector<6x8xf32>
    %31 = vector.broadcast %9 : vector<1x8xf32> to vector<6x8xf32>
    %32 = arith.addf %30, %31 : vector<6x8xf32>
    %cst_16 = arith.constant dense<0xFF800000> : vector<6xf32>
    %33 = vector.multi_reduction <maximumf>, %32, %cst_16 [1] : vector<6x8xf32> to vector<6xf32>
    %34 = vector.shape_cast %33 : vector<6xf32> to vector<6x1xf32>
    %35 = vector.broadcast %34 : vector<6x1xf32> to vector<6x8xf32>
    %36 = arith.subf %32, %35 : vector<6x8xf32>
    %37 = math.exp %36 : vector<6x8xf32>
    %cst_17 = arith.constant dense<0.000000e+00> : vector<6xf32>
    %38 = vector.multi_reduction <add>, %37, %cst_17 [1] : vector<6x8xf32> to vector<6xf32>
    %39 = vector.shape_cast %38 : vector<6xf32> to vector<6x1xf32>
    %40 = tpu.reciprocal %39 {approx = true} : vector<6x1xf32> -> vector<6x1xf32>
    %41 = vector.broadcast %40 : vector<6x1xf32> to vector<6x8xf32>
    %42 = arith.mulf %37, %41 : vector<6x8xf32>
    %43 = arith.truncf %42 : vector<6x8xf32> to vector<6x8xbf16>
    %44 = vector.extract_strided_slice %7 {offsets = [0, 8], sizes = [8, 8], strides = [1, 1]} : vector<8x32xbf16> to vector<8x8xbf16>
    %cst_18 = arith.constant dense<0.000000e+00> : vector<6x8xf32>
    %45 = tpu.matmul %43, %44, %cst_18 {dimension_numbers = #tpu.dot_dimension_numbers<[1], [0], [0], [1], [0, 0, 1, 1], [], []>} : vector<6x8xbf16>, vector<8x8xbf16>, vector<6x8xf32> -> vector<6x8xf32>
    %46 = vector.extract_strided_slice %3 {offsets = [0, 16], sizes = [6, 8], strides = [1, 1]} : vector<6x32xbf16> to vector<6x8xbf16>
    %47 = vector.extract_strided_slice %5 {offsets = [0, 16], sizes = [8, 8], strides = [1, 1]} : vector<8x32xbf16> to vector<8x8xbf16>
    %cst_19 = arith.constant dense<0.000000e+00> : vector<6x8xf32>
    %48 = tpu.matmul %46, %47, %cst_19 {dimension_numbers = #tpu.dot_dimension_numbers<[1], [1], [0], [0], [0, 0, 1, 0], [], []>} : vector<6x8xbf16>, vector<8x8xbf16>, vector<6x8xf32> -> vector<6x8xf32>
    %49 = vector.broadcast %9 : vector<1x8xf32> to vector<6x8xf32>
    %50 = arith.addf %48, %49 : vector<6x8xf32>
    %cst_20 = arith.constant dense<0xFF800000> : vector<6xf32>
    %51 = vector.multi_reduction <maximumf>, %50, %cst_20 [1] : vector<6x8xf32> to vector<6xf32>
    %52 = vector.shape_cast %51 : vector<6xf32> to vector<6x1xf32>
    %53 = vector.broadcast %52 : vector<6x1xf32> to vector<6x8xf32>
    %54 = arith.subf %50, %53 : vector<6x8xf32>
    %55 = math.exp %54 : vector<6x8xf32>
    %cst_21 = arith.constant dense<0.000000e+00> : vector<6xf32>
    %56 = vector.multi_reduction <add>, %55, %cst_21 [1] : vector<6x8xf32> to vector<6xf32>
    %57 = vector.shape_cast %56 : vector<6xf32> to vector<6x1xf32>
    %58 = tpu.reciprocal %57 {approx = true} : vector<6x1xf32> -> vector<6x1xf32>
    %59 = vector.broadcast %58 : vector<6x1xf32> to vector<6x8xf32>
    %60 = arith.mulf %55, %59 : vector<6x8xf32>
    %61 = arith.truncf %60 : vector<6x8xf32> to vector<6x8xbf16>
    %62 = vector.extract_strided_slice %7 {offsets = [0, 16], sizes = [8, 8], strides = [1, 1]} : vector<8x32xbf16> to vector<8x8xbf16>
    %cst_22 = arith.constant dense<0.000000e+00> : vector<6x8xf32>
    %63 = tpu.matmul %61, %62, %cst_22 {dimension_numbers = #tpu.dot_dimension_numbers<[1], [0], [0], [1], [0, 0, 1, 1], [], []>} : vector<6x8xbf16>, vector<8x8xbf16>, vector<6x8xf32> -> vector<6x8xf32>
    %64 = vector.extract_strided_slice %3 {offsets = [0, 24], sizes = [6, 8], strides = [1, 1]} : vector<6x32xbf16> to vector<6x8xbf16>
    %65 = vector.extract_strided_slice %5 {offsets = [0, 24], sizes = [8, 8], strides = [1, 1]} : vector<8x32xbf16> to vector<8x8xbf16>
    %cst_23 = arith.constant dense<0.000000e+00> : vector<6x8xf32>
    %66 = tpu.matmul %64, %65, %cst_23 {dimension_numbers = #tpu.dot_dimension_numbers<[1], [1], [0], [0], [0, 0, 1, 0], [], []>} : vector<6x8xbf16>, vector<8x8xbf16>, vector<6x8xf32> -> vector<6x8xf32>
    %67 = vector.broadcast %9 : vector<1x8xf32> to vector<6x8xf32>
    %68 = arith.addf %66, %67 : vector<6x8xf32>
    %cst_24 = arith.constant dense<0xFF800000> : vector<6xf32>
    %69 = vector.multi_reduction <maximumf>, %68, %cst_24 [1] : vector<6x8xf32> to vector<6xf32>
    %70 = vector.shape_cast %69 : vector<6xf32> to vector<6x1xf32>
    %71 = vector.broadcast %70 : vector<6x1xf32> to vector<6x8xf32>
    %72 = arith.subf %68, %71 : vector<6x8xf32>
    %73 = math.exp %72 : vector<6x8xf32>
    %cst_25 = arith.constant dense<0.000000e+00> : vector<6xf32>
    %74 = vector.multi_reduction <add>, %73, %cst_25 [1] : vector<6x8xf32> to vector<6xf32>
    %75 = vector.shape_cast %74 : vector<6xf32> to vector<6x1xf32>
    %76 = tpu.reciprocal %75 {approx = true} : vector<6x1xf32> -> vector<6x1xf32>
    %77 = vector.broadcast %76 : vector<6x1xf32> to vector<6x8xf32>
    %78 = arith.mulf %73, %77 : vector<6x8xf32>
    %79 = arith.truncf %78 : vector<6x8xf32> to vector<6x8xbf16>
    %80 = vector.extract_strided_slice %7 {offsets = [0, 24], sizes = [8, 8], strides = [1, 1]} : vector<8x32xbf16> to vector<8x8xbf16>
    %cst_26 = arith.constant dense<0.000000e+00> : vector<6x8xf32>
    %81 = tpu.matmul %79, %80, %cst_26 {dimension_numbers = #tpu.dot_dimension_numbers<[1], [0], [0], [1], [0, 0, 1, 1], [], []>} : vector<6x8xbf16>, vector<8x8xbf16>, vector<6x8xf32> -> vector<6x8xf32>
    %82 = tpu.concatenate %27, %45, %63, %81 in 1 : vector<6x8xf32>, vector<6x8xf32>, vector<6x8xf32>, vector<6x8xf32> -> vector<6x32xf32>
    %83 = arith.truncf %82 : vector<6x32xf32> to vector<6x32xbf16>
    %c0_27 = arith.constant 0 : index
    %c0_28 = arith.constant 0 : index
    %c0_29 = arith.constant 0 : index
    %84 = vector.load %arg5[%c0_27, %c0_28, %c0_29] : memref<1x6x32xbf16, #tpu.memory_space<vmem>>, vector<1x6x32xbf16>
    %85 = vector.shape_cast %84 : vector<1x6x32xbf16> to vector<6x32xbf16>
    %86 = vector.shape_cast %83 : vector<6x32xbf16> to vector<1x6x32xbf16>
    tpu.vector_store %arg5[%c0_27, %c0_28, %c0_29], %86 {strides = array<i32>} : memref<1x6x32xbf16, #tpu.memory_space<vmem>>, vector<1x6x32xbf16>,
    return
  }
  func.func @transform_0(%arg0: i32) -> (i32, i32, i32) {
    %c0_i32 = arith.constant 0 : i32
    %c0_i32_0 = arith.constant 0 : i32
    %c0_i32_1 = arith.constant 0 : i32
    return %arg0, %c0_i32, %c0_i32_0 : i32, i32, i32
  }
  func.func @transform_1(%arg0: i32) -> (i32, i32, i32) {
    %c0_i32 = arith.constant 0 : i32
    %c0_i32_0 = arith.constant 0 : i32
    %c0_i32_1 = arith.constant 0 : i32
    return %arg0, %c0_i32, %c0_i32_0 : i32, i32, i32
  }
  func.func @transform_2(%arg0: i32) -> (i32, i32, i32) {
    %c0_i32 = arith.constant 0 : i32
    %c0_i32_0 = arith.constant 0 : i32
    %c0_i32_1 = arith.constant 0 : i32
    return %arg0, %c0_i32, %c0_i32_0 : i32, i32, i32
  }
  func.func @transform_3(%arg0: i32) -> (i32, i32, i32) {
    %c0_i32 = arith.constant 0 : i32
    %c0_i32_0 = arith.constant 0 : i32
    %c0_i32_1 = arith.constant 0 : i32
    return %arg0, %c0_i32, %c0_i32_0 : i32, i32, i32
  }
  func.func @transform_4(%arg0: i32) -> (i32, i32, i32) {
    %c0_i32 = arith.constant 0 : i32
    %c0_i32_0 = arith.constant 0 : i32
    %c0_i32_1 = arith.constant 0 : i32
    return %arg0, %c0_i32, %c0_i32_0 : i32, i32, i32
  }
}

module attributes {stable_mosaic.version = 11 : i64} {
  func.func @_ln_mm_kernel(%arg0: i32, %arg1: memref<12x32xf32, #tpu.memory_space<vmem>>, %arg2: memref<1x32xf32, #tpu.memory_space<vmem>>, %arg3: memref<1x32xf32, #tpu.memory_space<vmem>>, %arg4: memref<32x128xbf16, #tpu.memory_space<vmem>>, %arg5: memref<1x128xf32, #tpu.memory_space<vmem>>, %arg6: memref<12x128xf32, #tpu.memory_space<vmem>>) attributes {dimension_semantics = [#tpu.dimension_semantics<parallel>], iteration_bounds = array<i64: 1>, scalar_prefetch = 0 : i64, scratch_operands = 0 : i64, tpu.core_type = #tpu.core_type<tc>, window_params = [{transform_indices = @transform_0, window_bounds = array<i64: 12, 32>}, {pipeline_mode = #tpu.pipeline_mode<synchronous>, transform_indices = @transform_1, window_bounds = array<i64: 1, 32>}, {pipeline_mode = #tpu.pipeline_mode<synchronous>, transform_indices = @transform_2, window_bounds = array<i64: 1, 32>}, {pipeline_mode = #tpu.pipeline_mode<synchronous>, transform_indices = @transform_3, window_bounds = array<i64: 32, 128>}, {pipeline_mode = #tpu.pipeline_mode<synchronous>, transform_indices = @transform_4, window_bounds = array<i64: 1, 128>}, {transform_indices = @transform_5, window_bounds = array<i64: 12, 128>}]} {
    %c0 = arith.constant 0 : index
    %c0_0 = arith.constant 0 : index
    %0 = vector.load %arg1[%c0, %c0_0] : memref<12x32xf32, #tpu.memory_space<vmem>>, vector<12x32xf32>
    %cst = arith.constant dense<0.000000e+00> : vector<12xf32>
    %1 = vector.multi_reduction <add>, %0, %cst [1] : vector<12x32xf32> to vector<12xf32>
    %2 = vector.shape_cast %1 : vector<12xf32> to vector<12x1xf32>
    %cst_1 = arith.constant 3.200000e+01 : f32
    %3 = vector.broadcast %cst_1 : f32 to vector<12x1xf32>
    %4 = arith.divf %2, %3 : vector<12x1xf32>
    %5 = vector.broadcast %4 : vector<12x1xf32> to vector<12x32xf32>
    %6 = arith.subf %0, %5 : vector<12x32xf32>
    %7 = arith.mulf %6, %6 : vector<12x32xf32>
    %cst_2 = arith.constant dense<0.000000e+00> : vector<12xf32>
    %8 = vector.multi_reduction <add>, %7, %cst_2 [1] : vector<12x32xf32> to vector<12xf32>
    %9 = vector.shape_cast %8 : vector<12xf32> to vector<12x1xf32>
    %cst_3 = arith.constant 3.200000e+01 : f32
    %10 = vector.broadcast %cst_3 : f32 to vector<12x1xf32>
    %11 = arith.divf %9, %10 : vector<12x1xf32>
    %12 = vector.broadcast %4 : vector<12x1xf32> to vector<12x32xf32>
    %13 = arith.subf %0, %12 : vector<12x32xf32>
    %cst_4 = arith.constant 9.99999974E-6 : f32
    %14 = vector.broadcast %cst_4 : f32 to vector<12x1xf32>
    %15 = arith.addf %11, %14 : vector<12x1xf32>
    %16 = math.rsqrt %15 : vector<12x1xf32>
    %17 = vector.broadcast %16 : vector<12x1xf32> to vector<12x32xf32>
    %18 = arith.mulf %13, %17 : vector<12x32xf32>
    %c0_5 = arith.constant 0 : index
    %c0_6 = arith.constant 0 : index
    %19 = vector.load %arg2[%c0_5, %c0_6] : memref<1x32xf32, #tpu.memory_space<vmem>>, vector<1x32xf32>
    %20 = vector.broadcast %19 : vector<1x32xf32> to vector<12x32xf32>
    %21 = arith.mulf %18, %20 : vector<12x32xf32>
    %c0_7 = arith.constant 0 : index
    %c0_8 = arith.constant 0 : index
    %22 = vector.load %arg3[%c0_7, %c0_8] : memref<1x32xf32, #tpu.memory_space<vmem>>, vector<1x32xf32>
    %23 = vector.broadcast %22 : vector<1x32xf32> to vector<12x32xf32>
    %24 = arith.addf %21, %23 : vector<12x32xf32>
    %25 = arith.truncf %24 : vector<12x32xf32> to vector<12x32xbf16>
    %c0_9 = arith.constant 0 : index
    %c0_10 = arith.constant 0 : index
    %26 = vector.load %arg4[%c0_9, %c0_10] : memref<32x128xbf16, #tpu.memory_space<vmem>>, vector<32x128xbf16>
    %cst_11 = arith.constant dense<0.000000e+00> : vector<12x128xf32>
    %27 = tpu.matmul %25, %26, %cst_11 {dimension_numbers = #tpu.dot_dimension_numbers<[1], [0], [0], [1], [0, 0, 1, 1], [], []>} : vector<12x32xbf16>, vector<32x128xbf16>, vector<12x128xf32> -> vector<12x128xf32>
    %c0_12 = arith.constant 0 : index
    %c0_13 = arith.constant 0 : index
    %28 = vector.load %arg5[%c0_12, %c0_13] : memref<1x128xf32, #tpu.memory_space<vmem>>, vector<1x128xf32>
    %29 = vector.broadcast %28 : vector<1x128xf32> to vector<12x128xf32>
    %30 = arith.addf %27, %29 : vector<12x128xf32>
    %c0_14 = arith.constant 0 : index
    %c0_15 = arith.constant 0 : index
    %31 = vector.load %arg6[%c0_14, %c0_15] : memref<12x128xf32, #tpu.memory_space<vmem>>, vector<12x128xf32>
    tpu.vector_store %arg6[%c0_14, %c0_15], %30 {strides = array<i32>} : memref<12x128xf32, #tpu.memory_space<vmem>>, vector<12x128xf32>,
    return
  }
  func.func @transform_0(%arg0: i32) -> (i32, i32) {
    %c0_i32 = arith.constant 0 : i32
    %c0_i32_0 = arith.constant 0 : i32
    return %arg0, %c0_i32 : i32, i32
  }
  func.func @transform_1(%arg0: i32) -> (i32, i32) {
    %c0_i32 = arith.constant 0 : i32
    %c0_i32_0 = arith.constant 0 : i32
    %c0_i32_1 = arith.constant 0 : i32
    return %c0_i32, %c0_i32_0 : i32, i32
  }
  func.func @transform_2(%arg0: i32) -> (i32, i32) {
    %c0_i32 = arith.constant 0 : i32
    %c0_i32_0 = arith.constant 0 : i32
    %c0_i32_1 = arith.constant 0 : i32
    return %c0_i32, %c0_i32_0 : i32, i32
  }
  func.func @transform_3(%arg0: i32) -> (i32, i32) {
    %c0_i32 = arith.constant 0 : i32
    %c0_i32_0 = arith.constant 0 : i32
    %c0_i32_1 = arith.constant 0 : i32
    return %c0_i32, %c0_i32_0 : i32, i32
  }
  func.func @transform_4(%arg0: i32) -> (i32, i32) {
    %c0_i32 = arith.constant 0 : i32
    %c0_i32_0 = arith.constant 0 : i32
    %c0_i32_1 = arith.constant 0 : i32
    return %c0_i32, %c0_i32_0 : i32, i32
  }
  func.func @transform_5(%arg0: i32) -> (i32, i32) {
    %c0_i32 = arith.constant 0 : i32
    %c0_i32_0 = arith.constant 0 : i32
    return %arg0, %c0_i32 : i32, i32
  }
}

</mosaic_0001>

<bundles_post_ra>
// kernel: full_conformer_forward.36
= control target key start
LH: loop header
LB: loop body
LE: loop exit
PB: predicated region body
PF: predicated region fallthrough
CT: control target
= control target key end

     0   :  { %vm52_vm0 = vcmask 1043456   ;;  %v158_v0 = vmov 0.0   ;;  %vm159_vm1 = vmmov 0   ;;  %vm42_vm2 = vcmask 195584   ;;  %s222_s1 = inlined_call_operand.vmem [shape: bf16[24,32], index: 1, kind: input, shape index: {}]   ;;  %s223_s0 = inlined_call_operand.vmem [shape: f32[34,24], index: 0, kind: input, shape index: {}]   ;;  %s224_s2 = inlined_call_operand.vmem [shape: f32[1,32], index: 2, kind: input, shape index: {}]   ;;  %s225_s3 = inlined_call_operand.vmem [shape: f32[34,32], index: 3, kind: output, shape index: {}]  }
   0x1   :  { %150 = vmatprep.subr.bf16.mxu1 %v158_v0  ;;  %134 = vmatprep.subr.bf16.mxu0 %v158_v0  ;;  %v156_v1 = vld [vmem:[%s222_s1 + $0x8] ss:$0 sps:$4 sm:$0xff]   ;;  %v157_v3 = vld [vmem:[%s222_s1] sm:$0xff]   ;;  %v17_v4 = vld [vmem:[%s223_s0 + $0x10] sm:$0xff]  ;;  %vm112_vm3 = vcmask 261120   ;;  %vm117_vm4 = vcmask 254976  }
   0x2   :  { %142 = vmatprep.mubr.msk.bf16.mxu1 %vm159_vm1, %v158_v0  ;;  %138 = vmatprep.mubr.msk.bf16.mxu0 %vm159_vm1, %v158_v0  ;;  %v54_v2 = vsel %vm52_vm0, %v156_v1, 0  ;;  %v18_v5 = vld [vmem:[%s223_s0 + $0x18] sm:$0xff]  ;;  %v15_v6 = vld [vmem:[%s223_s0] sm:$0xff]  ;;  %v16_v7 = vld [vmem:[%s223_s0 + $0x8] sm:$0xff] }
   0x3   :  { %152 = vmatpush3.bf16.msra.mxu1 %v54_v2  ;;  %135 = vmatpush3.bf16.msra.mxu0 %v54_v2  ;;  %v21_v8 = vpack.c.bf16 %v18_v5, %v17_v4  ;;  %v20_v9 = vpack.c.bf16 %v16_v7, %v15_v6  ;;  %v19_v10 = vld [vmem:[%s223_s0 + $0x20] sm:$0x3] }
   0x4   :  { %151 = vmatprep.subr.bf16.mxu1 %v158_v0  ;;  %136 = vmatprep.subr.bf16.mxu0 %v158_v0  ;;  %v22_v11 = vpack.c.bf16 %v19_v10, %v19_v10  ;;  %v123_v12 = vld [vmem:[%s224_s2] ss:$0 sm:$0xff] }
   0x7   :  { %153 = vmatpush3.bf16.msra.mxu1 %v157_v3  ;;  %137 = vmatpush3.bf16.msra.mxu0 %v157_v3 }
   0xa   :  { %143 = vmatmul.mubr.msk.bf16.vlgmr.msra.gmra.mxu1 %vm42_vm2, %v21_v8  ;;  %139 = vmatmul.mubr.msk.bf16.vlgmr.msra.gmra.mxu0 %vm42_vm2, %v20_v9 }
   0xb   :  { %146 = vmatprep.mubr.msk.bf16.mxu1 %vm159_vm1, %v158_v0 }
  0x12   :  { %147 = vmatmul.mubr.msk.bf16.gmra.mxu1 %vm42_vm2, %v22_v11 }
  0xca   :  { %v98_v13 = vpop.f32.mrf.mxu1  ;;  %v90_v14 = vpop.f32.mrf.mxu0 }
  0xcb   :  { %v99_v15 = vadd.f32 %v123_v12, %v98_v13  ;;  %v91_v16 = vadd.f32 %v123_v12, %v90_v14 }
  0xcc   :  { %v144_v17 = vpop.f32.mrf.mxu1  ;;  %v140_v18 = vpop.f32.mrf.mxu0 }
  0xcd   :  { %115 = vst.msk [vmem:[%s225_s3 + $0x10] sm:$0xff] %vm112_vm3, %v99_v15  ;;  %113 = vst.msk [vmem:[%s225_s3] sm:$0xff] %vm112_vm3, %v91_v16 }
  0xce   :  { %v101_v19 = vpop.f32.mrf.mxu1  ;;  %v93_v20 = vpop.f32.mrf.mxu0 }
  0xcf   :  { %v102_v21 = vadd.f32 %v123_v12, %v101_v19  ;;  %v94_v22 = vadd.f32 %v123_v12, %v93_v20 }
  0xd0   :  { %v145_v23 = vpop.f32.mrf.mxu1  ;;  %v141_v24 = vpop.f32.mrf.mxu0 }
  0xd1   :  { %116 = vst.msk [vmem:[%s225_s3 + $0x18] sm:$0xff] %vm112_vm3, %v102_v21  ;;  %114 = vst.msk [vmem:[%s225_s3 + $0x8] sm:$0xff] %vm112_vm3, %v94_v22 }
  0xd2   :  { %v106_v25 = vpop.f32.mrf.mxu1 }
  0xd3   :  { %v107_v26 = vadd.f32 %v123_v12, %v106_v25 }
  0xd4   :  { %v148_v27 = vpop.f32.mrf.mxu1 }
  0xd5   :  { %118 = vst.msk [vmem:[%s225_s3 + $0x20] sm:$0x3] %vm117_vm4, %v107_v26 }
  0xd6   :  { %v109_v28 = vpop.f32.mrf.mxu1 }
  0xd8   :  { %v149_v29 = vpop.f32.mrf.mxu1 }

// kernel: full_conformer_forward.37
= control target key start
LH: loop header
LB: loop body
LE: loop exit
PB: predicated region body
PF: predicated region fallthrough
CT: control target
= control target key end

     0   :  { %v164_v0 = vmov 0.0   ;;  %vm165_vm0 = vmmov 0   ;;  %vm73_vm1 = vcmask 785408   ;;  %vm118_vm2 = vcmask 261120   ;;  %s219_s1 = inlined_call_operand.vmem [shape: bf16[96,32], index: 1, kind: input, shape index: {}]   ;;  %s220_s0 = inlined_call_operand.vmem [shape: f32[16,96], index: 0, kind: input, shape index: {}]   ;;  %s221_s2 = inlined_call_operand.vmem [shape: f32[1,32], index: 2, kind: input, shape index: {}]   ;;  %s222_s3 = inlined_call_operand.vmem [shape: f32[16,32], index: 3, kind: output, shape index: {}]  }
   0x1   :  { %140 = vmatprep.subr.bf16.mxu0 %v164_v0  ;;  %v158_v1 = vld [vmem:[%s219_s1 + $0x28] sm:$0xff]   ;;  %152 = vmatprep.mubr.msk.bf16.mxu0 %vm165_vm0, %v164_v0  ;;  %v159_v2 = vld [vmem:[%s219_s1 + $0x20] sm:$0xff]   ;;  %v160_v3 = vld [vmem:[%s219_s1 + $0x18] sm:$0xff]  }
   0x2   :  { %141 = vmatpush3.bf16.msra.mxu0 %v158_v1  ;;  %v161_v4 = vld [vmem:[%s219_s1 + $0x10] sm:$0xff]   ;;  %v162_v5 = vld [vmem:[%s219_s1 + $0x8] sm:$0xff]   ;;  %v163_v6 = vld [vmem:[%s219_s1] sm:$0xff]  }
   0x3   :  { %142 = vmatprep.subr.bf16.mxu0 %v164_v0  ;;  %v15_v7 = vld [vmem:[%s220_s0] sm:$0xff]  ;;  %v16_v8 = vld [vmem:[%s220_s0 + $0x8] sm:$0xff] }
   0x4   :  { %v17_v9 = vpack.c.bf16 %v16_v8, %v15_v7  ;;  %v125_v10 = vld [vmem:[%s221_s2] ss:$0 sm:$0xff] }
   0x6   :  { %143 = vmatpush3.bf16.msra.mxu0 %v159_v2 }
   0x7   :  { %144 = vmatprep.subr.bf16.mxu0 %v164_v0 }
   0xa   :  { %145 = vmatpush3.bf16.msra.mxu0 %v160_v3 }
   0xb   :  { %146 = vmatprep.subr.bf16.mxu0 %v164_v0 }
   0xe   :  { %147 = vmatpush3.bf16.msra.mxu0 %v161_v4 }
   0xf   :  { %148 = vmatprep.subr.bf16.mxu0 %v164_v0 }
  0x12   :  { %149 = vmatpush3.bf16.msra.mxu0 %v162_v5 }
  0x13   :  { %150 = vmatprep.subr.bf16.mxu0 %v164_v0 }
  0x16   :  { %151 = vmatpush3.bf16.msra.mxu0 %v163_v6 }
  0x19   :  { %153 = vmatmul.mubr.msk.bf16.vlgmr.msra.gmra.mxu0 %vm73_vm1, %v17_v9 }
  0xd9   :  { %v111_v11 = vpop.f32.mrf.mxu0 }
  0xda   :  { %v112_v12 = vadd.f32 %v125_v10, %v111_v11 }
  0xdb   :  { %v154_v13 = vpop.f32.mrf.mxu0 }
  0xdc   :  { %119 = vst.msk [vmem:[%s222_s3] sm:$0xff] %vm118_vm2, %v112_v12 }
  0xdd   :  { %v114_v14 = vpop.f32.mrf.mxu0 }
  0xde   :  { %v115_v15 = vadd.f32 %v125_v10, %v114_v14 }
  0xdf   :  { %v155_v16 = vpop.f32.mrf.mxu0 }
  0xe0   :  { %120 = vst.msk [vmem:[%s222_s3 + $0x8] sm:$0xff] %vm118_vm2, %v115_v15 }

// kernel: full_conformer_forward.39
= control target key start
LH: loop header
LB: loop body
LE: loop exit
PB: predicated region body
PF: predicated region fallthrough
CT: control target
= control target key end

     0   :  { %vm23_vm0 = vcmask 261120   ;;  %v181_v14 = vmov 0.0   ;;  %vm182_vm1 = vmmov 0   ;;  %vm145_vm2 = vcmask 781312   ;;  %s245_s0 = inlined_call_operand.vmem [shape: f32[16,32], index: 0, kind: input, shape index: {}]   ;;  %s246_s3 = inlined_call_operand.vmem [shape: bf16[32,96], index: 3, kind: input, shape index: {}]   ;;  %s247_s1 = inlined_call_operand.vmem [shape: f32[1,32], index: 1, kind: input, shape index: {}]   ;;  %s248_s2 = inlined_call_operand.vmem [shape: f32[1,32], index: 2, kind: input, shape index: {}]   ;;  %s249_s4 = inlined_call_operand.vmem [shape: f32[1,96], index: 4, kind: input, shape index: {}]   ;;  %s250_s5 = inlined_call_operand.vmem [shape: bf16[16,96], index: 5, kind: output, shape index: {}]  }
   0x1   :  { %v21_v0 = vld [vmem:[%s245_s0] sm:$0xff]  ;;  %v22_v1 = vld [vmem:[%s245_s0 + $0x8] sm:$0xff]  ;;  %165 = vmatprep.subr.bf16.mxu0 %v181_v14  ;;  %169 = vmatprep.mubr.msk.bf16.mxu0 %vm182_vm1, %v181_v14 }
   0x2   :  { %v24_v2 = vsel %vm23_vm0, %v21_v0, 0.0  ;;  %v27_v3 = vsel %vm23_vm0, %v22_v1, 0.0  ;;  %v175_v15 = vld [vmem:[%s246_s3 + $0x8] sm:$0xff]   ;;  %v176_v16 = vld [vmem:[%s246_s3] sm:$0xff]  }
   0x3   :  { %25 = vadd.xlane.f32.xlu0 %v24_v2  ;;  %166 = vmatpush3.bf16.msra.mxu0 %v175_v15  ;;  %v152_v25 = vld [vmem:[%s247_s1] ss:$0 sm:$0xff] }
   0x4   :  { %167 = vmatprep.subr.bf16.mxu0 %v181_v14  ;;  %v153_v29 = vld [vmem:[%s248_s2] ss:$0 sm:$0xff] }
   0x5   :  { %v154_v34 = vld [vmem:[%s249_s4] ss:$0 sm:$0xff] }
   0x7   :  { %28 = vadd.xlane.f32.xlu0 %v27_v3  ;;  %168 = vmatpush3.bf16.msra.mxu0 %v176_v16 }
  0x8c   :  { %v26_v4 = vpop.xlane.xlu0 %25 }
  0x8d   :  { %v31_v5 = vmul.f32 0.03125, %v26_v4 }
  0x8f   :  { %v33_v6 = vsub.f32 %v21_v0, %v31_v5 }
  0x90   :  { %v29_v7 = vpop.xlane.xlu0 %28 }
  0x91   :  { %v32_v8 = vmul.f32 0.03125, %v29_v7  ;;  %v35_v9 = vmul.f32 %v33_v6, %v33_v6 }
  0x93   :  { %v34_v10 = vsub.f32 %v22_v1, %v32_v8  ;;  %v37_v11 = vsel %vm23_vm0, %v35_v9, 0.0 }
  0x94   :  { %38 = vadd.xlane.f32.xlu1 %v37_v11 }
  0x95   :  { %v36_v12 = vmul.f32 %v34_v10, %v34_v10 }
  0x97   :  { %v40_v13 = vsel %vm23_vm0, %v36_v12, 0.0 }
  0x98   :  { %41 = vadd.xlane.f32.xlu1 %v40_v13 }
 0x11d   :  { %v39_v17 = vpop.xlane.xlu1 %38 }
 0x11e   :  { %v43_v18 = vmul.f32 0.03125, %v39_v17 }
 0x120   :  { %v45_v19 = vadd.f32 1e-05, %v43_v18 }
 0x121   :  { %v42_v20 = vpop.xlane.xlu1 %41 }
 0x122   :  { %177 = vrsqrt.f32 %v45_v19  ;;  %v44_v21 = vmul.f32 0.03125, %v42_v20 }
 0x124   :  { %v46_v22 = vadd.f32 1e-05, %v44_v21 }
 0x126   :  { %179 = vrsqrt.f32 %v46_v22 }
 0x12f   :  { %v178_v23 = vpop.eup %177 }
 0x130   :  { %v49_v24 = vmul.f32 %v178_v23, %v33_v6 }
 0x132   :  { %v58_v28 = vmul.f32 %v152_v25, %v49_v24 }
 0x133   :  { %v180_v26 = vpop.eup %179 }
 0x134   :  { %v50_v27 = vmul.f32 %v180_v26, %v34_v10  ;;  %v67_v31 = vadd.f32 %v153_v29, %v58_v28 }
 0x136   :  { %v59_v30 = vmul.f32 %v152_v25, %v50_v27 }
 0x138   :  { %v68_v32 = vadd.f32 %v153_v29, %v59_v30 }
 0x13a   :  { %v69_v33 = vpack.c.bf16 %v68_v32, %v67_v31 }
 0x13c   :  { %170 = vmatmul.mubr.msk.bf16.vlgmr.msra.gmra.mxu0 %vm23_vm0, %v69_v33 }
 0x1fc   :  { %v130_v35 = vpop.f32.mrf.mxu0 }
 0x1fd   :  { %v131_v36 = vadd.f32 %v154_v34, %v130_v35 }
 0x1fe   :  { %v171_v37 = vpop.f32.mrf.mxu0 }
 0x1ff   :  { %v160_v38 = vpack.c.bf16 %v131_v36, %v131_v36 }
 0x200   :  { %v133_v39 = vpop.f32.mrf.mxu0 }
 0x201   :  { %146 = vst.msk [vmem:[%s250_s5] sm:$0xf] %vm145_vm2, %v160_v38  ;;  %v134_v40 = vadd.f32 %v154_v34, %v133_v39 }
 0x202   :  { %v172_v41 = vpop.f32.mrf.mxu0 }
 0x203   :  { %v161_v42 = vpack.c.bf16 %v134_v40, %v134_v40 }
 0x205   :  { %147 = vst.msk [vmem:[%s250_s5 + $0x4] sm:$0xf] %vm145_vm2, %v161_v42 }

// kernel: full_conformer_forward.38
= control target key start
LH: loop header
LB: loop body
LE: loop exit
PB: predicated region body
PF: predicated region fallthrough
CT: control target
= control target key end

     0   :  { %vm35_vm0 = vcmask 261120   ;;  %v318_v14 = vmov 0.0   ;;  %vm319_vm1 = vmmov 0   ;;  %vm203_vm2 = vcmask 523264   ;;  %s429_s0 = inlined_call_operand.vmem [shape: f32[16,32], index: 0, kind: input, shape index: {}]   ;;  %s430_s7 = inlined_call_operand.vmem [shape: f32[1,32], index: 7, kind: input, shape index: {}]   ;;  %s431_s8 = inlined_call_operand.vmem [shape: f32[1,32], index: 8, kind: input, shape index: {}]   ;;  %s432_s3 = inlined_call_operand.vmem [shape: bf16[32,64], index: 3, kind: input, shape index: {}]   ;;  %s433_s1 = inlined_call_operand.vmem [shape: f32[1,32], index: 1, kind: input, shape index: {}]   ;;  %s434_s2 = inlined_call_operand.vmem [shape: f32[1,32], index: 2, kind: input, shape index: {}]   ;;  %s435_s5 = inlined_call_operand.vmem [shape: bf16[64,32], index: 5, kind: input, shape index: {}]   ;;  %s436_s4 = inlined_call_operand.vmem [shape: f32[1,64], index: 4, kind: input, shape index: {}]   ;;  %s437_s6 = inlined_call_operand.vmem [shape: f32[1,32], index: 6, kind: input, shape index: {}]   ;;  %s438_s9 = inlined_call_operand.vmem [shape: f32[16,32], index: 9, kind: output, shape index: {}]  }
   0x1   :  { %v373_v0 = vld [vmem:[%s429_s0] sm:$0xff]  ;;  %v378_v1 = vld [vmem:[%s429_s0 + $0x8] sm:$0xff]  ;;  %278 = vmatprep.subr.bf16.mxu0 %v318_v14  ;;  %282 = vmatprep.mubr.msk.bf16.mxu0 %vm319_vm1, %v318_v14  ;;  %v302_v34 = vld [vmem:[%s435_s5 + $0x18] sm:$0xff]  }
   0x2   :  { %v36_v2 = vsel %vm35_vm0, %v373_v0, 0.0  ;;  %v39_v3 = vsel %vm35_vm0, %v378_v1, 0.0  ;;  %v300_v15 = vld [vmem:[%s432_s3 + $0x8] sm:$0xff]   ;;  %286 = vmatprep.subr.bf16.mxu1 %v318_v14  ;;  %294 = vmatprep.mubr.msk.bf16.mxu1 %vm319_vm1, %v318_v14  ;;  %v301_v16 = vld [vmem:[%s432_s3] sm:$0xff]   ;;  %v303_v35 = vld [vmem:[%s435_s5 + $0x10] sm:$0xff]  }
   0x3   :  { %37 = vadd.xlane.f32.xlu0 %v36_v2  ;;  %279 = vmatpush3.bf16.msra.mxu0 %v300_v15  ;;  %v258_v25 = vld [vmem:[%s433_s1] ss:$0 sm:$0xff]  ;;  %v304_v36 = vld [vmem:[%s435_s5 + $0x8] sm:$0xff]  }
   0x4   :  { %280 = vmatprep.subr.bf16.mxu0 %v318_v14  ;;  %v259_v29 = vld [vmem:[%s434_s2] ss:$0 sm:$0xff]  ;;  %287 = vmatpush3.bf16.msra.mxu1 %v302_v34 }
   0x5   :  { %288 = vmatprep.subr.bf16.mxu1 %v318_v14  ;;  %v305_v37 = vld [vmem:[%s435_s5] sm:$0xff]  }
   0x6   :  { %v260_v38 = vld [vmem:[%s436_s4] ss:$0 sm:$0xff] }
   0x7   :  { %40 = vadd.xlane.f32.xlu0 %v39_v3  ;;  %281 = vmatpush3.bf16.msra.mxu0 %v301_v16  ;;  %v264_v60 = vld [vmem:[%s437_s6] ss:$0 sm:$0xff] }
   0x8   :  { %289 = vmatpush3.bf16.msra.mxu1 %v303_v35 }
   0x9   :  { %290 = vmatprep.subr.bf16.mxu1 %v318_v14 }
   0xc   :  { %291 = vmatpush3.bf16.msra.mxu1 %v304_v36 }
   0xd   :  { %292 = vmatprep.subr.bf16.mxu1 %v318_v14 }
  0x10   :  { %293 = vmatpush3.bf16.msra.mxu1 %v305_v37 }
  0x8c   :  { %v38_v4 = vpop.xlane.xlu0 %37 }
  0x8d   :  { %v43_v5 = vmul.f32 0.03125, %v38_v4 }
  0x8f   :  { %v45_v6 = vsub.f32 %v373_v0, %v43_v5 }
  0x90   :  { %v41_v7 = vpop.xlane.xlu0 %40 }
  0x91   :  { %v44_v8 = vmul.f32 0.03125, %v41_v7  ;;  %v47_v9 = vmul.f32 %v45_v6, %v45_v6 }
  0x93   :  { %v46_v10 = vsub.f32 %v378_v1, %v44_v8  ;;  %v49_v11 = vsel %vm35_vm0, %v47_v9, 0.0 }
  0x94   :  { %50 = vadd.xlane.f32.xlu1 %v49_v11 }
  0x95   :  { %v48_v12 = vmul.f32 %v46_v10, %v46_v10 }
  0x97   :  { %v52_v13 = vsel %vm35_vm0, %v48_v12, 0.0 }
  0x98   :  { %53 = vadd.xlane.f32.xlu1 %v52_v13 }
 0x11d   :  { %v51_v17 = vpop.xlane.xlu1 %50 }
 0x11e   :  { %v55_v18 = vmul.f32 0.03125, %v51_v17 }
 0x120   :  { %v57_v19 = vadd.f32 1e-05, %v55_v18 }
 0x121   :  { %v54_v20 = vpop.xlane.xlu1 %53 }
 0x122   :  { %306 = vrsqrt.f32 %v57_v19  ;;  %v56_v21 = vmul.f32 0.03125, %v54_v20 }
 0x124   :  { %v58_v22 = vadd.f32 1e-05, %v56_v21 }
 0x126   :  { %308 = vrsqrt.f32 %v58_v22 }
 0x12f   :  { %v307_v23 = vpop.eup %306 }
 0x130   :  { %v61_v24 = vmul.f32 %v307_v23, %v45_v6 }
 0x132   :  { %v70_v28 = vmul.f32 %v258_v25, %v61_v24 }
 0x133   :  { %v309_v26 = vpop.eup %308 }
 0x134   :  { %v62_v27 = vmul.f32 %v309_v26, %v46_v10  ;;  %v79_v31 = vadd.f32 %v259_v29, %v70_v28 }
 0x136   :  { %v71_v30 = vmul.f32 %v258_v25, %v62_v27 }
 0x138   :  { %v80_v32 = vadd.f32 %v259_v29, %v71_v30 }
 0x13a   :  { %v81_v33 = vpack.c.bf16 %v80_v32, %v79_v31 }
 0x13c   :  { %283 = vmatmul.mubr.msk.bf16.vlgmr.msra.gmra.mxu0 %vm35_vm0, %v81_v33 }
 0x1fc   :  { %v142_v39 = vpop.f32.mrf.mxu0 }
 0x1fd   :  { %v143_v40 = vadd.f32 %v260_v38, %v142_v39 }
 0x1fe   :  { %v284_v41 = vpop.f32.mrf.mxu0 }
 0x1ff   :  { %v149_v42 = vmax.f32 %v143_v40, -30.0 }
 0x200   :  { %v145_v43 = vpop.f32.mrf.mxu0 }
 0x201   :  { %v151_v44 = vsub.f32 0.0, %v149_v42  ;;  %v146_v45 = vadd.f32 %v260_v38, %v145_v43 }
 0x202   :  { %v285_v46 = vpop.f32.mrf.mxu0 }
 0x203   :  { %v153_v47 = vmul.f32 1.442695, %v151_v44  ;;  %v150_v48 = vmax.f32 %v146_v45, -30.0 }
 0x205   :  { %310 = vpow2.f32 %v153_v47  ;;  %v152_v49 = vsub.f32 0.0, %v150_v48 }
 0x207   :  { %v155_v50 = vmul.f32 1.442695, %v152_v49 }
 0x209   :  { %312 = vpow2.f32 %v155_v50 }
 0x212   :  { %v311_v51 = vpop.eup %310 }
 0x213   :  { %v157_v52 = vadd.f32 1.0, %v311_v51 }
 0x215   :  { %314 = vrcp.f32 %v157_v52 }
 0x216   :  { %v313_v53 = vpop.eup %312 }
 0x217   :  { %v158_v54 = vadd.f32 1.0, %v313_v53 }
 0x219   :  { %316 = vrcp.f32 %v158_v54 }
 0x222   :  { %v315_v55 = vpop.eup %314 }
 0x223   :  { %v161_v57 = vmul.f32 %v315_v55, %v143_v40 }
 0x226   :  { %v317_v56 = vpop.eup %316 }
 0x227   :  { %v162_v58 = vmul.f32 %v317_v56, %v146_v45 }
 0x229   :  { %v163_v59 = vpack.c.bf16 %v162_v58, %v161_v57 }
 0x22b   :  { %295 = vmatmul.mubr.msk.bf16.vlgmr.msra.gmra.mxu1 %vm203_vm2, %v163_v59 }
 0x2eb   :  { %v241_v61 = vpop.f32.mrf.mxu1 }
 0x2ec   :  { %v242_v62 = vadd.f32 %v264_v60, %v241_v61 }
 0x2ed   :  { %v296_v63 = vpop.f32.mrf.mxu1 }
 0x2ee   :  { %v248_v2 = vmul.f32 0.5, %v242_v62 }
 0x2ef   :  { %v244_v3 = vpop.f32.mrf.mxu1 }
 0x2f0   :  { %v250_v4 = vadd.f32 %v248_v2, %v373_v0  ;;  %v245_v5 = vadd.f32 %v264_v60, %v244_v3 }
 0x2f1   :  { %v297_v6 = vpop.f32.mrf.mxu1 }
 0x2f2   :  { %252 = vst.msk [vmem:[%s438_s9] sm:$0xff] %vm35_vm0, %v250_v4  ;;  %v249_v7 = vmul.f32 0.5, %v245_v5 }
 0x2f4   :  { %v251_v8 = vadd.f32 %v249_v7, %v378_v1 }
 0x2f6   :  { %253 = vst.msk [vmem:[%s438_s9 + $0x8] sm:$0xff] %vm35_vm0, %v251_v8 }

// kernel: full_conformer_forward.41
= control target key start
LH: loop header
LB: loop body
LE: loop exit
PB: predicated region body
PF: predicated region fallthrough
CT: control target
= control target key end

     0   :  { %v124_v0 = vmov 0.0   ;;  %vm125_vm0 = vmmov 0   ;;  %vm50_vm1 = vcmask 261120   ;;  %s178_s2 = inlined_call_operand.vmem [shape: bf16[32,32], index: 2, kind: input, shape index: {}]   ;;  %s179_s0 = inlined_call_operand.vmem [shape: bf16[16,32], index: 0, kind: input, shape index: {}]   ;;  %s180_s3 = inlined_call_operand.vmem [shape: f32[1,32], index: 3, kind: input, shape index: {}]   ;;  %s181_s1 = inlined_call_operand.vmem [shape: f32[16,32], index: 1, kind: input, shape index: {}]   ;;  %s182_s4 = inlined_call_operand.vmem [shape: f32[16,32], index: 4, kind: output, shape index: {}]  }
   0x1   :  { %111 = vmatprep.subr.bf16.mxu0 %v124_v0  ;;  %v121_v1 = vld [vmem:[%s178_s2 + $0x8] sm:$0xff]   ;;  %115 = vmatprep.mubr.msk.bf16.mxu0 %vm125_vm0, %v124_v0  ;;  %v122_v2 = vld [vmem:[%s178_s2] sm:$0xff]  }
   0x2   :  { %112 = vmatpush3.bf16.msra.mxu0 %v121_v1  ;;  %v123_v3 = vld [vmem:[%s179_s0] sm:$0xff]   ;;  %v19_v10 = vld [vmem:[%s181_s1 + $0x8] sm:$0xff] }
   0x3   :  { %113 = vmatprep.subr.bf16.mxu0 %v124_v0  ;;  %v103_v4 = vld [vmem:[%s180_s3] ss:$0 sm:$0xff] }
   0x4   :  { %v18_v5 = vld [vmem:[%s181_s1] sm:$0xff] }
   0x6   :  { %114 = vmatpush3.bf16.msra.mxu0 %v122_v2 }
   0x9   :  { %116 = vmatmul.mubr.msk.bf16.vlgmr.msra.gmra.mxu0 %vm50_vm1, %v123_v3 }
  0xc9   :  { %v88_v6 = vpop.f32.mrf.mxu0 }
  0xca   :  { %v89_v7 = vadd.f32 %v103_v4, %v88_v6 }
  0xcb   :  { %v117_v8 = vpop.f32.mrf.mxu0 }
  0xcc   :  { %v95_v9 = vadd.f32 %v89_v7, %v18_v5 }
  0xcd   :  { %v91_v11 = vpop.f32.mrf.mxu0 }
  0xce   :  { %97 = vst.msk [vmem:[%s182_s4] sm:$0xff] %vm50_vm1, %v95_v9  ;;  %v92_v12 = vadd.f32 %v103_v4, %v91_v11 }
  0xcf   :  { %v118_v13 = vpop.f32.mrf.mxu0 }
  0xd0   :  { %v96_v14 = vadd.f32 %v92_v12, %v19_v10 }
  0xd2   :  { %98 = vst.msk [vmem:[%s182_s4 + $0x8] sm:$0xff] %vm50_vm1, %v96_v14 }

// kernel: full_conformer_forward.42
= control target key start
LH: loop header
LB: loop body
LE: loop exit
PB: predicated region body
PF: predicated region fallthrough
CT: control target
= control target key end

     0   :  { %vm29_vm0 = vcmask 261120   ;;  %v277_v14 = vmov 0.0   ;;  %vm278_vm1 = vmmov 0   ;;  %s363_s0 = inlined_call_operand.vmem [shape: f32[16,32], index: 0, kind: input, shape index: {}]   ;;  %s364_s3 = inlined_call_operand.vmem [shape: bf16[32,32], index: 3, kind: input, shape index: {}]   ;;  %s365_s5 = inlined_call_operand.vmem [shape: bf16[32,32], index: 5, kind: input, shape index: {}]   ;;  %s366_s1 = inlined_call_operand.vmem [shape: f32[1,32], index: 1, kind: input, shape index: {}]   ;;  %s367_s2 = inlined_call_operand.vmem [shape: f32[1,32], index: 2, kind: input, shape index: {}]   ;;  %s368_s6 = inlined_call_operand.vmem [shape: f32[1,32], index: 6, kind: input, shape index: {}]   ;;  %s369_s4 = inlined_call_operand.vmem [shape: f32[1,32], index: 4, kind: input, shape index: {}]   ;;  %s370_s7 = inlined_call_operand.vmem [shape: f32[16,32], index: 7, kind: output, shape index: {}]  }
   0x1   :  { %v27_v0 = vld [vmem:[%s363_s0] sm:$0xff]  ;;  %v28_v1 = vld [vmem:[%s363_s0 + $0x8] sm:$0xff]  ;;  %243 = vmatprep.subr.bf16.mxu0 %v277_v14  ;;  %251 = vmatprep.subr.bf16.mxu1 %v277_v14 }
   0x2   :  { %v30_v2 = vsel %vm29_vm0, %v27_v0, 0.0  ;;  %v33_v3 = vsel %vm29_vm0, %v28_v1, 0.0  ;;  %v261_v15 = vld [vmem:[%s364_s3 + $0x8] sm:$0xff]   ;;  %247 = vmatprep.mubr.msk.bf16.mxu0 %vm278_vm1, %v277_v14  ;;  %255 = vmatprep.mubr.msk.bf16.mxu1 %vm278_vm1, %v277_v14  ;;  %v263_v17 = vld [vmem:[%s364_s3] sm:$0xff]  }
   0x3   :  { %31 = vadd.xlane.f32.xlu0 %v30_v2  ;;  %v262_v16 = vld [vmem:[%s365_s5 + $0x8] sm:$0xff]   ;;  %244 = vmatpush3.bf16.msra.mxu0 %v261_v15  ;;  %v264_v18 = vld [vmem:[%s365_s5] sm:$0xff]  }
   0x4   :  { %252 = vmatpush3.bf16.msra.mxu1 %v262_v16  ;;  %245 = vmatprep.subr.bf16.mxu0 %v277_v14  ;;  %v227_v27 = vld [vmem:[%s366_s1] ss:$0 sm:$0xff] }
   0x5   :  { %253 = vmatprep.subr.bf16.mxu1 %v277_v14  ;;  %v228_v31 = vld [vmem:[%s367_s2] ss:$0 sm:$0xff] }
   0x6   :  { %v233_v36 = vld [vmem:[%s368_s6] ss:$0 sm:$0xff] }
   0x7   :  { %34 = vadd.xlane.f32.xlu0 %v33_v3  ;;  %246 = vmatpush3.bf16.msra.mxu0 %v263_v17  ;;  %v229_v57 = vld [vmem:[%s369_s4] ss:$0 sm:$0xff] }
   0x8   :  { %254 = vmatpush3.bf16.msra.mxu1 %v264_v18 }
  0x8c   :  { %v32_v4 = vpop.xlane.xlu0 %31 }
  0x8d   :  { %v37_v5 = vmul.f32 0.03125, %v32_v4 }
  0x8f   :  { %v39_v6 = vsub.f32 %v27_v0, %v37_v5 }
  0x90   :  { %v35_v7 = vpop.xlane.xlu0 %34 }
  0x91   :  { %v38_v8 = vmul.f32 0.03125, %v35_v7  ;;  %v41_v9 = vmul.f32 %v39_v6, %v39_v6 }
  0x93   :  { %v40_v10 = vsub.f32 %v28_v1, %v38_v8  ;;  %v43_v11 = vsel %vm29_vm0, %v41_v9, 0.0 }
  0x94   :  { %44 = vadd.xlane.f32.xlu1 %v43_v11 }
  0x95   :  { %v42_v12 = vmul.f32 %v40_v10, %v40_v10 }
  0x97   :  { %v46_v13 = vsel %vm29_vm0, %v42_v12, 0.0 }
  0x98   :  { %47 = vadd.xlane.f32.xlu1 %v46_v13 }
 0x11d   :  { %v45_v19 = vpop.xlane.xlu1 %44 }
 0x11e   :  { %v49_v20 = vmul.f32 0.03125, %v45_v19 }
 0x120   :  { %v51_v21 = vadd.f32 1e-05, %v49_v20 }
 0x121   :  { %v48_v22 = vpop.xlane.xlu1 %47 }
 0x122   :  { %265 = vrsqrt.f32 %v51_v21  ;;  %v50_v23 = vmul.f32 0.03125, %v48_v22 }
 0x124   :  { %v52_v24 = vadd.f32 1e-05, %v50_v23 }
 0x126   :  { %267 = vrsqrt.f32 %v52_v24 }
 0x12f   :  { %v266_v25 = vpop.eup %265 }
 0x130   :  { %v55_v26 = vmul.f32 %v266_v25, %v39_v6 }
 0x132   :  { %v64_v30 = vmul.f32 %v227_v27, %v55_v26 }
 0x133   :  { %v268_v28 = vpop.eup %267 }
 0x134   :  { %v56_v29 = vmul.f32 %v268_v28, %v40_v10  ;;  %v73_v33 = vadd.f32 %v228_v31, %v64_v30 }
 0x136   :  { %v65_v32 = vmul.f32 %v227_v27, %v56_v29 }
 0x138   :  { %v74_v34 = vadd.f32 %v228_v31, %v65_v32 }
 0x13a   :  { %v75_v35 = vpack.c.bf16 %v74_v34, %v73_v33 }
 0x13c   :  { %248 = vmatmul.mubr.msk.bf16.vlgmr.msra.gmra.mxu0 %vm29_vm0, %v75_v35  ;;  %256 = vmatmul.mubr.msk.bf16.vlgmr.msra.gmra.mxu1 %vm29_vm0, %v75_v35 }
 0x1fc   :  { %v136_v37 = vpop.f32.mrf.mxu0  ;;  %v200_v38 = vpop.f32.mrf.mxu1 }
 0x1fd   :  { %v201_v39 = vadd.f32 %v233_v36, %v200_v38  ;;  %v137_v58 = vadd.f32 %v229_v57, %v136_v37 }
 0x1fe   :  { %v249_v40 = vpop.f32.mrf.mxu0  ;;  %v257_v41 = vpop.f32.mrf.mxu1 }
 0x1ff   :  { %v207_v42 = vmax.f32 %v201_v39, -30.0 }
 0x200   :  { %v139_v43 = vpop.f32.mrf.mxu0  ;;  %v203_v44 = vpop.f32.mrf.mxu1 }
 0x201   :  { %v209_v45 = vsub.f32 0.0, %v207_v42  ;;  %v204_v46 = vadd.f32 %v233_v36, %v203_v44  ;;  %v140_v61 = vadd.f32 %v229_v57, %v139_v43 }
 0x202   :  { %v250_v47 = vpop.f32.mrf.mxu0  ;;  %v258_v48 = vpop.f32.mrf.mxu1 }
 0x203   :  { %v211_v49 = vmul.f32 1.442695, %v209_v45  ;;  %v208_v50 = vmax.f32 %v204_v46, -30.0 }
 0x205   :  { %269 = vpow2.f32 %v211_v49  ;;  %v210_v51 = vsub.f32 0.0, %v208_v50 }
 0x207   :  { %v213_v52 = vmul.f32 1.442695, %v210_v51 }
 0x209   :  { %271 = vpow2.f32 %v213_v52 }
 0x212   :  { %v270_v53 = vpop.eup %269 }
 0x213   :  { %v215_v54 = vadd.f32 1.0, %v270_v53 }
 0x215   :  { %273 = vrcp.f32 %v215_v54 }
 0x216   :  { %v272_v55 = vpop.eup %271 }
 0x217   :  { %v216_v56 = vadd.f32 1.0, %v272_v55 }
 0x219   :  { %275 = vrcp.f32 %v216_v56 }
 0x222   :  { %v274_v59 = vpop.eup %273 }
 0x223   :  { %v219_v60 = vmul.f32 %v274_v59, %v137_v58 }
 0x225   :  { %221 = vst.msk [vmem:[%s370_s7] sm:$0xff] %vm29_vm0, %v219_v60 }
 0x226   :  { %v276_v62 = vpop.eup %275 }
 0x227   :  { %v220_v63 = vmul.f32 %v276_v62, %v140_v61 }
 0x229   :  { %222 = vst.msk [vmem:[%s370_s7 + $0x8] sm:$0xff] %vm29_vm0, %v220_v63 }

// kernel: full_conformer_forward.40
= control target key start
LH: loop header
LB: loop body
LE: loop exit
PB: predicated region body
PF: predicated region fallthrough
CT: control target
= control target key end

     0   :  { %s967_s15 = smov 0   ;;  %s1071_s0 = inlined_call_operand.vmem [shape: bf16[2,8,32], index: 0, kind: input, shape index: {}]   ;;  %s1072_s1 = inlined_call_operand.vmem [shape: bf16[2,8,32], index: 1, kind: input, shape index: {}]   ;;  %s1073_s2 = inlined_call_operand.vmem [shape: bf16[2,8,32], index: 2, kind: input, shape index: {}]   ;;  %s1074_s3 = inlined_call_operand.vmem [shape: f32[2,1,8], index: 3, kind: input, shape index: {}]   ;;  %s1075_s4 = inlined_call_operand.vmem [shape: bf16[2,8,32], index: 4, kind: output, shape index: {}]  }
   0x1 LB: > { %s805_s16 = sadd.s32 4294967295, %s932_s15   ;;  %p809_p0 = scmp.ge.s32.totalorder %s932_s15, 1  ;;  %s932_s15 = sphi %s967_s15, %s14_s15  }
   0x2   : > { %p187_p1 = scmp.lt.s32.totalorder %s932_s15, 3 }
   0x4   : > { %p188_p2 = pnand %p809_p0, %p187_p1 }
   0x5   : > { %p222_p3 = scmp.lt.s32.totalorder (!%p188_p2), %s805_s16, 1  ;;  %s936_s27 = smov (!%p188_p2), 120  }
   0x6   : > { %191 = sbr.rel (%p188_p2) target bundleno = 1414 (0x586), region = 36  ;;  %s937_s28 = smov (!%p188_p2), 112  }
   0x7   : > { %s938_s29 = smov (!%p188_p2), 104   ;;  %s939_s7 = smov (!%p188_p2), 8  }
   0x8   : > { %s940_s8 = smov (!%p188_p2), 16   ;;  %s941_s9 = smov (!%p188_p2), 24  }
   0xb   : > { %v934_v0 = vmov 0.0   ;;  %vm935_vm0 = vmmov 0   ;;  %s1077_s16 = smov (!%p222_p3, %s805_s16), 1  ;;  %vm254_vm1 = vcmask 64512   ;;  %vm316_vm2 = vcmask 1043456  }
   0xc   : > { %844 = vmatprep.subr.bf16.mxu0 %v934_v0  ;;  %846 = vmatprep.mubr.msk.bf16.mxu0 %vm935_vm0, %v934_v0  ;;  %s981_s17 = sshll.u32 %s1077_s16, 2  ;;  %s236_s26 = scalar_lea.vmem %s1074_s3, %s1077_s16  ;;  %vm712_vm3 = vcmask 130048   ;;  %vm714_vm4 = vcmask 195584   ;;  %vm717_vm5 = vcmask 257024  }
   0xd   : > { %850 = vmatprep.subr.bf16.mxu1 %v934_v0  ;;  %852 = vmatprep.mubr.msk.bf16.mxu1 %vm935_vm0, %v934_v0  ;;  %s229_s20 = scalar_lea.vmem %s1072_s1, %s981_s17  ;;  %s225_s23 = scalar_lea.vmem %s1071_s0, %s981_s17  ;;  %v999_v5 = vld [vmem:[%s236_s26] ss:$0 sm:$0xff] }
   0xe   : > { %v245_v1 = vld [vmem:[%s229_s20] sm:$0xf]  ;;  %s233_s6 = scalar_lea.vmem %s1073_s2, %s981_s17  ;;  %s240_s12 = scalar_lea.vmem %s1075_s4, %s981_s17 }
   0xf   : > { %v259_v2 = vsel %vm254_vm1, %v245_v1, 0  ;;  %v243_v3 = vld [vmem:[%s225_s23] sm:$0xf]  ;;  %v818_v12 = vcombine.low %v245_v1, %v245_v1 }
  0x10   : > { %845 = vmatpush3.bf16.xpose.msra.mxu0 %v259_v2  ;;  %v244_v4 = vmul.bf16 1052065461, %v243_v3  ;;  %v1013_v19 = vld [vmem:[%s233_s6] sm:$0xf] }
  0x11   : > { %862 = vmatprep.subr.bf16.mxu0 %v934_v0  ;;  %368 = vrot.lane.b32.xlu1 %v818_v12, %s936_s27  ;;  %v318_v20 = vsel %vm316_vm2, %v1013_v19, 0  ;;  %v820_v3 = vcombine.low %v1013_v19, %v1013_v19 }
  0x12   : > { %v817_v13 = vcombine.low %v244_v4, %v244_v4  ;;  %851 = vmatpush3.bf16.msra.mxu1 %v318_v20 }
  0x13   : > { %856 = vmatprep.subr.bf16.mxu1 %v934_v0 }
  0x15   : > { %363 = vrot.lane.b32.xlu1 %v817_v13, %s936_s27 }
  0x17   : > { %847 = vmatmul.mubr.msk.bf16.vlgmr.msra.gmra.mxu0 %vm254_vm1, %v244_v4 }
  0x18   : > { %864 = vmatprep.mubr.msk.bf16.mxu0 %vm935_vm0, %v934_v0 }
  0x19   : > { %479 = vrot.lane.b32.xlu1 %v817_v13, %s937_s28 }
  0x1d   : > { %591 = vrot.lane.b32.xlu1 %v818_v12, %s938_s29 }
  0x21   : > { %589 = vrot.lane.b32.xlu1 %v817_v13, %s938_s29 }
  0x83   : > { %v369_v23 = vpop.permute.xlu1 %368 }
  0x84   : > { %v374_v25 = vsel %vm254_vm1, %v369_v23, 0 }
  0x87   : > { %v364_v27 = vpop.permute.xlu1 %363 }
  0x8b   : > { %v480_v29 = vpop.permute.xlu1 %479 }
  0x8f   : > { %v592_v31 = vpop.permute.xlu1 %591 }
  0x90   : > { %v597_v32 = vsel %vm254_vm1, %v592_v31, 0 }
  0x93   : > { %v590_v33 = vpop.permute.xlu1 %589 }
  0xd7   : > { %v295_v6 = vpop.f32.mrf.mxu0 }
  0xd8   : > { %v296_v7 = vadd.f32 %v999_v5, %v295_v6 }
  0xd9   : > { %v848_v8 = vpop.f32.mrf.mxu0 }
  0xda   : > { %v301_v9 = vsel %vm254_vm1, %v296_v7, -inf }
  0xdb   : > { %302 = vmax.xlane.f32.xlu0 %v301_v9  ;;  %v298_v10 = vpop.f32.mrf.mxu0 }
  0xdd   : > { %v849_v11 = vpop.f32.mrf.mxu0 }
 0x164   : > { %v303_v14 = vpop.xlane.xlu0 %302 }
 0x165   : > { %v304_v15 = vsub.f32 %v296_v7, %v303_v14 }
 0x167   : > { %v305_v16 = vmul.f32 1.442695, %v304_v15 }
 0x169   : > { %910 = vpow2.f32 %v305_v16 }
 0x176   : > { %v911_v17 = vpop.eup %910 }
 0x177   : > { %v307_v18 = vsel %vm254_vm1, %v911_v17, 0.0 }
 0x178   : > { %308 = vadd.xlane.f32.xlu0 %v307_v18 }
 0x18e   : > { %481 = vrot.lane.b32.xlu0 %v818_v12, %s937_s28 }
 0x201   : > { %v309_v21 = vpop.xlane.xlu0 %308 }
 0x202   : > { %912 = vrcp.f32 %v309_v21 }
 0x205   : > { %v482_v28 = vpop.permute.xlu0 %481 }
 0x206   : > { %v487_v30 = vsel %vm254_vm1, %v482_v28, 0 }
 0x20f   : > { %v913_v22 = vpop.eup %912 }
 0x210   : > { %v311_v24 = vmul.f32 %v913_v22, %v911_v17 }
 0x212   : > { %v312_v26 = vpack.c.bf16 %v311_v24, %v311_v24 }
 0x214   : > { %853 = vmatmul.mubr.msk.bf16.vlgmr.msra.gmra.mxu1 %vm254_vm1, %v312_v26 }
 0x215   : > { %857 = vmatpush3.bf16.xpose.msra.mxu1 %v374_v25  ;;  %858 = vmatprep.mubr.msk.bf16.mxu1 %vm935_vm0, %v934_v0 }
 0x216   : > { %868 = vmatprep.subr.bf16.mxu1 %v934_v0 }
 0x21c   : > { %859 = vmatmul.mubr.msk.bf16.vlgmr.msra.gmra.mxu1 %vm254_vm1, %v364_v27 }
 0x21d   : > { %869 = vmatpush3.bf16.xpose.msra.mxu1 %v487_v30  ;;  %870 = vmatprep.mubr.msk.bf16.mxu1 %vm935_vm0, %v934_v0 }
 0x21e   : > { %880 = vmatprep.subr.bf16.mxu1 %v934_v0 }
 0x224   : > { %871 = vmatmul.mubr.msk.bf16.vlgmr.msra.gmra.mxu1 %vm254_vm1, %v480_v29 }
 0x225   : > { %881 = vmatpush3.bf16.xpose.msra.mxu1 %v597_v32  ;;  %882 = vmatprep.mubr.msk.bf16.mxu1 %vm935_vm0, %v934_v0 }
 0x22c   : > { %883 = vmatmul.mubr.msk.bf16.vlgmr.msra.gmra.mxu1 %vm254_vm1, %v590_v33 }
 0x2d4   : > { %v1034_v34 = vpop.f32.mrf.mxu1 }
 0x2d6   : > { %v854_v35 = vpop.f32.mrf.mxu1 }
 0x2d8   : > { %v357_v36 = vpop.f32.mrf.mxu1 }
 0x2da   : > { %v855_v37 = vpop.f32.mrf.mxu1 }
 0x2dc   : > { %v410_v38 = vpop.f32.mrf.mxu1 }
 0x2dd   : > { %v411_v39 = vadd.f32 %v999_v5, %v410_v38 }
 0x2de   : > { %v860_v40 = vpop.f32.mrf.mxu1 }
 0x2df   : > { %v416_v41 = vsel %vm254_vm1, %v411_v39, -inf }
 0x2e0   : > { %417 = vmax.xlane.f32.xlu1 %v416_v41  ;;  %v413_v42 = vpop.f32.mrf.mxu1 }
 0x2e2   : > { %v861_v43 = vpop.f32.mrf.mxu1 }
 0x2e4   : > { %v523_v44 = vpop.f32.mrf.mxu1 }
 0x2e5   : > { %v524_v45 = vadd.f32 %v999_v5, %v523_v44 }
 0x2e6   : > { %v872_v46 = vpop.f32.mrf.mxu1 }
 0x2e7   : > { %v529_v47 = vsel %vm254_vm1, %v524_v45, -inf }
 0x2e8   : > { %530 = vmax.xlane.f32.xlu0 %v529_v47  ;;  %v526_v48 = vpop.f32.mrf.mxu1 }
 0x2ea   : > { %v873_v49 = vpop.f32.mrf.mxu1 }
 0x2ec   : > { %v633_v50 = vpop.f32.mrf.mxu1 }
 0x2ed   : > { %v634_v51 = vadd.f32 %v999_v5, %v633_v50 }
 0x2ee   : > { %v884_v52 = vpop.f32.mrf.mxu1 }
 0x2ef   : > { %v639_v53 = vsel %vm254_vm1, %v634_v51, -inf }
 0x2f0   : > { %640 = vmax.xlane.f32.xlu1 %v639_v53  ;;  %v636_v54 = vpop.f32.mrf.mxu1 }
 0x2f2   : > { %v885_v55 = vpop.f32.mrf.mxu1 }
 0x369   : > { %v418_v56 = vpop.xlane.xlu1 %417 }
 0x36a   : > { %v419_v57 = vsub.f32 %v411_v39, %v418_v56 }
 0x36c   : > { %v420_v58 = vmul.f32 1.442695, %v419_v57 }
 0x36e   : > { %914 = vpow2.f32 %v420_v58 }
 0x371   : > { %v531_v59 = vpop.xlane.xlu0 %530 }
 0x372   : > { %v532_v60 = vsub.f32 %v524_v45, %v531_v59 }
 0x374   : > { %v533_v61 = vmul.f32 1.442695, %v532_v60 }
 0x376   : > { %916 = vpow2.f32 %v533_v61 }
 0x379   : > { %v641_v4 = vpop.xlane.xlu1 %640 }
 0x37a   : > { %v642_v5 = vsub.f32 %v634_v51, %v641_v4 }
 0x37b   : > { %v915_v62 = vpop.eup %914 }
 0x37c   : > { %v422_v63 = vsel %vm254_vm1, %v915_v62, 0.0  ;;  %v643_v6 = vmul.f32 1.442695, %v642_v5 }
 0x37d   : > { %423 = vadd.xlane.f32.xlu1 %v422_v63 }
 0x37e   : > { %918 = vpow2.f32 %v643_v6 }
 0x383   : > { %v917_v1 = vpop.eup %916 }
 0x384   : > { %v535_v2 = vsel %vm254_vm1, %v917_v1, 0.0 }
 0x385   : > { %536 = vadd.xlane.f32.xlu0 %v535_v2 }
 0x38b   : > { %v919_v7 = vpop.eup %918 }
 0x38c   : > { %v645_v8 = vsel %vm254_vm1, %v919_v7, 0.0 }
 0x38e   : > { %541 = vrot.lane.b32.xlu1 %v820_v3, %s937_s28 }
 0x39b   : > { %431 = vrot.lane.b32.xlu0 %v820_v3, %s936_s27 }
 0x3b2   : > { %646 = vadd.xlane.f32.xlu1 %v645_v8 }
 0x3c3   : > { %651 = vrot.lane.b32.xlu1 %v820_v3, %s938_s29 }
 0x406   : > { %v424_v9 = vpop.xlane.xlu1 %423 }
 0x407   : > { %920 = vrcp.f32 %v424_v9 }
 0x40a   : > { %v542_v15 = vpop.permute.xlu1 %541 }
 0x40b   : > { %v547_v17 = vsel %vm316_vm2, %v542_v15, 0 }
 0x40e   : > { %v537_v10 = vpop.xlane.xlu0 %536 }
 0x40f   : > { %922 = vrcp.f32 %v537_v10 }
 0x412   : > { %v432_v11 = vpop.permute.xlu0 %431 }
 0x413   : > { %v437_v12 = vsel %vm316_vm2, %v432_v11, 0 }
 0x414   : > { %v921_v13 = vpop.eup %920  ;;  %863 = vmatpush3.bf16.msra.mxu0 %v437_v12 }
 0x415   : > { %874 = vmatprep.subr.bf16.mxu0 %v934_v0  ;;  %v426_v14 = vmul.f32 %v921_v13, %v915_v62 }
 0x417   : > { %v427_v16 = vpack.c.bf16 %v426_v14, %v426_v14 }
 0x419   : > { %865 = vmatmul.mubr.msk.bf16.vlgmr.msra.gmra.mxu0 %vm254_vm1, %v427_v16 }
 0x41a   : > { %875 = vmatpush3.bf16.msra.mxu0 %v547_v17  ;;  %876 = vmatprep.mubr.msk.bf16.mxu0 %vm935_vm0, %v934_v0 }
 0x41b   : > { %886 = vmatprep.subr.bf16.mxu0 %v934_v0 }
 0x41c   : > { %v923_v18 = vpop.eup %922 }
 0x41d   : > { %v539_v19 = vmul.f32 %v923_v18, %v917_v1 }
 0x41f   : > { %v540_v20 = vpack.c.bf16 %v539_v19, %v539_v19 }
 0x421   : > { %877 = vmatmul.mubr.msk.bf16.vlgmr.msra.gmra.mxu0 %vm254_vm1, %v540_v20 }
 0x422   : > { %888 = vmatprep.mubr.msk.bf16.mxu0 %vm935_vm0, %v934_v0 }
 0x43b   : > { %v647_v21 = vpop.xlane.xlu1 %646 }
 0x43c   : > { %924 = vrcp.f32 %v647_v21 }
 0x43f   : > { %v652_v22 = vpop.permute.xlu1 %651 }
 0x440   : > { %v657_v23 = vsel %vm316_vm2, %v652_v22, 0 }
 0x441   : > { %887 = vmatpush3.bf16.msra.mxu0 %v657_v23 }
 0x449   : > { %v925_v24 = vpop.eup %924 }
 0x44a   : > { %v649_v25 = vmul.f32 %v925_v24, %v919_v7 }
 0x44c   : > { %v650_v26 = vpack.c.bf16 %v649_v25, %v649_v25 }
 0x44e   : > { %889 = vmatmul.mubr.msk.bf16.vlgmr.msra.gmra.mxu0 %vm254_vm1, %v650_v26 }
 0x4d9   : > { %v473_v27 = vpop.f32.mrf.mxu0 }
 0x4da   : > { %700 = vrot.lane.b32.xlu0 %v473_v27, %s939_s7 }
 0x4db   : > { %v866_v28 = vpop.f32.mrf.mxu0 }
 0x4dd   : > { %v476_v29 = vpop.f32.mrf.mxu0 }
 0x4df   : > { %v867_v30 = vpop.f32.mrf.mxu0 }
 0x4e1   : > { %v583_v31 = vpop.f32.mrf.mxu0 }
 0x4e2   : > { %704 = vrot.lane.b32.xlu1 %v583_v31, %s940_s8 }
 0x4e3   : > { %v878_v0 = vpop.f32.mrf.mxu0 }
 0x4e5   : > { %v586_v32 = vpop.f32.mrf.mxu0 }
 0x4e7   : > { %v879_v33 = vpop.f32.mrf.mxu0 }
 0x50e   : > { %v693_v35 = vpop.f32.mrf.mxu0 }
 0x50f   : > { %708 = vrot.lane.b32.xlu0 %v693_v35, %s941_s9 }
 0x510   : > { %v890_v36 = vpop.f32.mrf.mxu0 }
 0x512   : > { %v696_v37 = vpop.f32.mrf.mxu0 }
 0x514   : > { %v891_v38 = vpop.f32.mrf.mxu0 }
 0x54c   : > { %v701_v39 = vpop.permute.xlu0 %700 }
 0x54d   : > { %v711_v41 = vsel %vm254_vm1, %v1034_v34, %v701_v39 }
 0x554   : > { %v705_v40 = vpop.permute.xlu1 %704 }
 0x555   : > { %v713_v42 = vsel %vm712_vm3, %v711_v41, %v705_v40 }
 0x581   : > { %v709_v43 = vpop.permute.xlu0 %708 }
 0x582   : > { %v715_v44 = vsel %vm714_vm4, %v713_v42, %v709_v43 }
 0x583   : > { %v716_v45 = vpack.c.bf16 %v715_v44, %v715_v44 }
 0x585   : > { %718 = vst.msk [vmem:[%s240_s12] sm:$0xf] %vm717_vm5, %v716_v45 }
 0x586 PF: > { %s14_s15 = sadd.s32 1, %s932_s15  }
 0x587   : > { %p11_p4 = scmp.ge.s32.totalorder %s14_s15, 4  }
 0x589   :  { %13 = sbr.rel (!%p11_p4) target bundleno = 1 (0x1), region = 75 }

// kernel: full_conformer_forward.43
= control target key start
LH: loop header
LB: loop body
LE: loop exit
PB: predicated region body
PF: predicated region fallthrough
CT: control target
= control target key end

     0   :  { %s570_s24 = smov 0   ;;  %s612_s0 = inlined_call_operand.vmem [shape: f32[2,10,32], index: 0, kind: input, shape index: {}]   ;;  %s613_s1 = inlined_call_operand.vmem [shape: f32[2,8,32], index: 1, kind: input, shape index: {}]   ;;  %s614_s2 = inlined_call_operand.vmem [shape: f32[3,32], index: 2, kind: input, shape index: {}]   ;;  %s615_s3 = inlined_call_operand.vmem [shape: f32[1,32], index: 3, kind: input, shape index: {}]   ;;  %s616_s4 = inlined_call_operand.vmem [shape: f32[1,32], index: 4, kind: input, shape index: {}]   ;;  %s617_s5 = inlined_call_operand.vmem [shape: bf16[32,32], index: 5, kind: input, shape index: {}]   ;;  %s618_s6 = inlined_call_operand.vmem [shape: f32[1,32], index: 6, kind: input, shape index: {}]   ;;  %s619_s7 = inlined_call_operand.vmem [shape: f32[2,8,32], index: 7, kind: output, shape index: {}]  }
   0x1 LB: > { %s475_s25 = sadd.s32 4294967295, %s526_s24   ;;  %p479_p0 = scmp.ge.s32.totalorder %s526_s24, 1  ;;  %s526_s24 = sphi %s570_s24, %s17_s24  }
   0x2   : > { %p246_p1 = scmp.lt.s32.totalorder %s526_s24, 3 }
   0x4   : > { %p247_p2 = pnand %p479_p0, %p246_p1 }
   0x5   : > { %p281_p3 = scmp.lt.s32.totalorder (!%p247_p2), %s475_s25, 1 }
   0x6   : > { %250 = sbr.rel (%p247_p2) target bundleno = 268 (0x10c), region = 48 }
   0xb   : > { %v514_v0 = vld [vmem:[%s617_s5 + $0x8] sm:$0xff]   ;;  %v297_v1 = vlaneseq  ;;  %v528_v2 = vmov 0.0   ;;  %v515_v3 = vld [vmem:[%s617_s5] sm:$0xff]   ;;  %vm529_vm0 = vmmov 0   ;;  %s621_s25 = smov (!%p281_p3, %s475_s25), 1  ;;  %vm363_vm1 = vcmask 261120  }
   0xc   : > { %496 = vmatprep.subr.bf16.mxu0 %v528_v2  ;;  %500 = vmatprep.mubr.msk.bf16.mxu0 %vm529_vm0, %v528_v2  ;;  %v295_v5 = vld [vmem:[%s614_s2] sm:$0x7]  ;;  %s492_s9 = sshll.u32 %s621_s25, 4  ;;  %s482_s17 = sshll.u32 %s621_s25, 3 }
   0xd   : > { %497 = vmatpush3.bf16.msra.mxu0 %v514_v0  ;;  %v298_v4 = vshrl.u32 %v297_v1, 7  ;;  %s285_s12 = scalar_lea.vmem %s612_s0, %s492_s9  ;;  %v484_v19 = vld [vmem:[%s615_s3] ss:$0 sm:$0xff]  ;;  %s289_s20 = scalar_lea.vmem %s613_s1, %s482_s17 }
   0xe   : > { %498 = vmatprep.subr.bf16.mxu0 %v528_v2  ;;  %v296_v12 = vld [vmem:[%s285_s12] sm:$0xff]  ;;  %s293_s27 = scalar_lea.vmem %s619_s7, %s482_s17 }
   0xf   : > { %v299_v6 = vsub.s32 0, %v298_v4  ;;  %v305_v7 = vsub.s32 1, %v298_v4  ;;  %v312_v8 = vsub.s32 2, %v298_v4  ;;  %v302_v13 = vld [vmem:[%s285_s12 + $0x1] sm:$0xff]  ;;  %v485_v21 = vld [vmem:[%s616_s4] ss:$0 sm:$0xff] }
  0x10   : > { %v309_v14 = vld [vmem:[%s285_s12 + $0x2] sm:$0xff]  ;;  %v486_v32 = vld [vmem:[%s618_s6] ss:$0 sm:$0xff] }
  0x11   : > { %499 = vmatpush3.bf16.msra.mxu0 %v515_v3  ;;  %v300_v9 = vrot.slane %v295_v5, %v299_v6  ;;  %v306_v10 = vrot.slane %v295_v5, %v305_v7  ;;  %v313_v11 = vrot.slane %v295_v5, %v312_v8  ;;  %v407_v34 = vld [vmem:[%s289_s20] sm:$0xff] }
  0x13   : > { %v301_v15 = vmul.f32 %v300_v9, %v296_v12  ;;  %v307_v16 = vmul.f32 %v306_v10, %v302_v13  ;;  %v314_v17 = vmul.f32 %v313_v11, %v309_v14 }
  0x15   : > { %v308_v18 = vadd.f32 %v307_v16, %v301_v15 }
  0x17   : > { %v315_v20 = vadd.f32 %v314_v17, %v308_v18 }
  0x19   : > { %v323_v22 = vmul.f32 %v484_v19, %v315_v20 }
  0x1b   : > { %v331_v23 = vadd.f32 %v485_v21, %v323_v22 }
  0x1d   : > { %v332_v24 = vmax.f32 %v331_v23, -30.0 }
  0x1f   : > { %v333_v25 = vsub.f32 0.0, %v332_v24 }
  0x21   : > { %v334_v26 = vmul.f32 1.442695, %v333_v25 }
  0x23   : > { %516 = vpow2.f32 %v334_v26 }
  0x30   : > { %v517_v27 = vpop.eup %516 }
  0x31   : > { %v336_v28 = vadd.f32 1.0, %v517_v27 }
  0x33   : > { %518 = vrcp.f32 %v336_v28 }
  0x40   : > { %v519_v29 = vpop.eup %518 }
  0x41   : > { %v338_v30 = vmul.f32 %v519_v29, %v331_v23 }
  0x43   : > { %v339_v31 = vpack.c.bf16 %v338_v30, %v338_v30 }
  0x45   : > { %501 = vmatmul.mubr.msk.bf16.vlgmr.msra.gmra.mxu0 %vm363_vm1, %v339_v31 }
 0x105   : > { %v401_v33 = vpop.f32.mrf.mxu0 }
 0x106   : > { %v402_v35 = vadd.f32 %v486_v32, %v401_v33 }
 0x107   : > { %v502_v36 = vpop.f32.mrf.mxu0 }
 0x108   : > { %v408_v37 = vadd.f32 %v407_v34, %v402_v35 }
 0x109   : > { %v404_v38 = vpop.f32.mrf.mxu0 }
 0x10a   : > { %409 = vst.msk [vmem:[%s293_s27] sm:$0xff] %vm363_vm1, %v408_v37 }
 0x10b   : > { %v503_v39 = vpop.f32.mrf.mxu0 }
 0x10c PF: > { %s17_s24 = sadd.s32 1, %s526_s24  }
 0x10d   : > { %p14_p4 = scmp.ge.s32.totalorder %s17_s24, 4  }
 0x10f   :  { %16 = sbr.rel (!%p14_p4) target bundleno = 1 (0x1), region = 81 }

// kernel: full_conformer_forward.71
= control target key start
LH: loop header
LB: loop body
LE: loop exit
PB: predicated region body
PF: predicated region fallthrough
CT: control target
= control target key end

     0   :  { %v139_v0 = vmov 0.0   ;;  %vm140_vm0 = vmmov 0   ;;  %vm41_vm1 = vcmask 261120   ;;  %s182_s1 = inlined_call_operand.vmem [shape: bf16[32,128], index: 1, kind: input, shape index: {}]   ;;  %s183_s0 = inlined_call_operand.vmem [shape: f32[16,32], index: 0, kind: input, shape index: {}]   ;;  %s184_s2 = inlined_call_operand.vmem [shape: f32[1,128], index: 2, kind: input, shape index: {}]   ;;  %s185_s3 = inlined_call_operand.vmem [shape: f32[16,128], index: 3, kind: output, shape index: {}]  }
   0x1   :  { %119 = vmatprep.subr.bf16.mxu0 %v139_v0  ;;  %v129_v1 = vld [vmem:[%s182_s1 + $0x8] sm:$0xff]   ;;  %123 = vmatprep.mubr.msk.bf16.mxu0 %vm140_vm0, %v139_v0  ;;  %v130_v2 = vld [vmem:[%s182_s1] sm:$0xff]  }
   0x2   :  { %120 = vmatpush3.bf16.msra.mxu0 %v129_v1  ;;  %v15_v3 = vld [vmem:[%s183_s0] sm:$0xff]  ;;  %v16_v4 = vld [vmem:[%s183_s0 + $0x8] sm:$0xff] }
   0x3   :  { %121 = vmatprep.subr.bf16.mxu0 %v139_v0  ;;  %v17_v5 = vpack.c.bf16 %v16_v4, %v15_v3  ;;  %v112_v6 = vld [vmem:[%s184_s2] ss:$0 sm:$0xff] }
   0x6   :  { %122 = vmatpush3.bf16.msra.mxu0 %v130_v2 }
   0x9   :  { %124 = vmatmul.mubr.msk.bf16.vlgmr.msra.gmra.mxu0 %vm41_vm1, %v17_v5 }
  0xc9   :  { %v79_v7 = vpop.f32.mrf.mxu0 }
  0xca   :  { %v80_v8 = vadd.f32 %v112_v6, %v79_v7 }
  0xcb   :  { %v125_v9 = vpop.f32.mrf.mxu0 }
  0xcc   :  { %86 = vmax.xlane.f32.xlu0 %v80_v8 }
  0xcd   :  { %v82_v10 = vpop.f32.mrf.mxu0 }
  0xce   :  { %v83_v11 = vadd.f32 %v112_v6, %v82_v10 }
  0xcf   :  { %v126_v12 = vpop.f32.mrf.mxu0 }
  0xd0   :  { %88 = vmax.xlane.f32.xlu0 %v83_v11 }
 0x155   :  { %v87_v13 = vpop.xlane.xlu0 %86 }
 0x156   :  { %v90_v14 = vsub.f32 %v80_v8, %v87_v13 }
 0x158   :  { %v92_v15 = vmul.f32 1.442695, %v90_v14 }
 0x159   :  { %v89_v16 = vpop.xlane.xlu0 %88 }
 0x15a   :  { %v91_v17 = vsub.f32 %v83_v11, %v89_v16  ;;  %131 = vpow2.f32 %v92_v15 }
 0x15c   :  { %v94_v18 = vmul.f32 1.442695, %v91_v17 }
 0x15e   :  { %133 = vpow2.f32 %v94_v18 }
 0x167   :  { %v132_v19 = vpop.eup %131 }
 0x168   :  { %96 = vadd.xlane.f32.xlu1 %v132_v19 }
 0x16b   :  { %v134_v20 = vpop.eup %133 }
 0x16c   :  { %98 = vadd.xlane.f32.xlu1 %v134_v20 }
 0x1f1   :  { %v97_v21 = vpop.xlane.xlu1 %96 }
 0x1f2   :  { %135 = vlog2.f32 %v97_v21 }
 0x1f5   :  { %v99_v22 = vpop.xlane.xlu1 %98 }
 0x1f6   :  { %137 = vlog2.f32 %v99_v22 }
 0x1ff   :  { %v136_v23 = vpop.eup %135 }
 0x200   :  { %v101_v24 = vmul.f32 0.6931472, %v136_v23 }
 0x202   :  { %v104_v25 = vsub.f32 %v90_v14, %v101_v24 }
 0x203   :  { %v138_v26 = vpop.eup %137 }
 0x204   :  { %106 = vst [vmem:[%s185_s3] sm:$0xff] %v104_v25  ;;  %v103_v27 = vmul.f32 0.6931472, %v138_v26 }
 0x206   :  { %v105_v28 = vsub.f32 %v91_v17, %v103_v27 }
 0x208   :  { %107 = vst [vmem:[%s185_s3 + $0x8] sm:$0xff] %v105_v28 }

// kernel: full_conformer_forward.44
= control target key start
LH: loop header
LB: loop body
LE: loop exit
PB: predicated region body
PF: predicated region fallthrough
CT: control target
= control target key end

     0   :  { %vm35_vm0 = vcmask 261120   ;;  %v368_v14 = vmov 0.0   ;;  %vm369_vm1 = vmmov 0   ;;  %vm203_vm2 = vcmask 523264   ;;  %s489_s0 = inlined_call_operand.vmem [shape: f32[16,32], index: 0, kind: input, shape index: {}]   ;;  %s490_s3 = inlined_call_operand.vmem [shape: bf16[32,64], index: 3, kind: input, shape index: {}]   ;;  %s491_s1 = inlined_call_operand.vmem [shape: f32[1,32], index: 1, kind: input, shape index: {}]   ;;  %s492_s2 = inlined_call_operand.vmem [shape: f32[1,32], index: 2, kind: input, shape index: {}]   ;;  %s493_s5 = inlined_call_operand.vmem [shape: bf16[64,32], index: 5, kind: input, shape index: {}]   ;;  %s494_s4 = inlined_call_operand.vmem [shape: f32[1,64], index: 4, kind: input, shape index: {}]   ;;  %s495_s6 = inlined_call_operand.vmem [shape: f32[1,32], index: 6, kind: input, shape index: {}]   ;;  %s496_s7 = inlined_call_operand.vmem [shape: f32[1,32], index: 7, kind: input, shape index: {}]   ;;  %s497_s8 = inlined_call_operand.vmem [shape: f32[1,32], index: 8, kind: input, shape index: {}]   ;;  %s498_s9 = inlined_call_operand.vmem [shape: f32[16,32], index: 9, kind: output, shape index: {}]  }
   0x1   :  { %v423_v0 = vld [vmem:[%s489_s0] sm:$0xff]  ;;  %v428_v1 = vld [vmem:[%s489_s0 + $0x8] sm:$0xff]  ;;  %324 = vmatprep.subr.bf16.mxu0 %v368_v14  ;;  %328 = vmatprep.mubr.msk.bf16.mxu0 %vm369_vm1, %v368_v14  ;;  %v348_v34 = vld [vmem:[%s493_s5 + $0x18] sm:$0xff]  }
   0x2   :  { %v36_v2 = vsel %vm35_vm0, %v423_v0, 0.0  ;;  %v39_v3 = vsel %vm35_vm0, %v428_v1, 0.0  ;;  %v346_v15 = vld [vmem:[%s490_s3 + $0x8] sm:$0xff]   ;;  %332 = vmatprep.subr.bf16.mxu1 %v368_v14  ;;  %340 = vmatprep.mubr.msk.bf16.mxu1 %vm369_vm1, %v368_v14  ;;  %v347_v16 = vld [vmem:[%s490_s3] sm:$0xff]   ;;  %v349_v35 = vld [vmem:[%s493_s5 + $0x10] sm:$0xff]  }
   0x3   :  { %37 = vadd.xlane.f32.xlu0 %v36_v2  ;;  %325 = vmatpush3.bf16.msra.mxu0 %v346_v15  ;;  %v302_v25 = vld [vmem:[%s491_s1] ss:$0 sm:$0xff]  ;;  %v350_v36 = vld [vmem:[%s493_s5 + $0x8] sm:$0xff]  }
   0x4   :  { %326 = vmatprep.subr.bf16.mxu0 %v368_v14  ;;  %v303_v29 = vld [vmem:[%s492_s2] ss:$0 sm:$0xff]  ;;  %333 = vmatpush3.bf16.msra.mxu1 %v348_v34 }
   0x5   :  { %334 = vmatprep.subr.bf16.mxu1 %v368_v14  ;;  %v351_v37 = vld [vmem:[%s493_s5] sm:$0xff]  }
   0x6   :  { %v304_v38 = vld [vmem:[%s494_s4] ss:$0 sm:$0xff] }
   0x7   :  { %40 = vadd.xlane.f32.xlu0 %v39_v3  ;;  %327 = vmatpush3.bf16.msra.mxu0 %v347_v16  ;;  %v308_v60 = vld [vmem:[%s495_s6] ss:$0 sm:$0xff] }
   0x8   :  { %335 = vmatpush3.bf16.msra.mxu1 %v349_v35 }
   0x9   :  { %336 = vmatprep.subr.bf16.mxu1 %v368_v14 }
   0xc   :  { %337 = vmatpush3.bf16.msra.mxu1 %v350_v36 }
   0xd   :  { %338 = vmatprep.subr.bf16.mxu1 %v368_v14 }
  0x10   :  { %339 = vmatpush3.bf16.msra.mxu1 %v351_v37 }
  0x8c   :  { %v38_v4 = vpop.xlane.xlu0 %37 }
  0x8d   :  { %v43_v5 = vmul.f32 0.03125, %v38_v4 }
  0x8f   :  { %v45_v6 = vsub.f32 %v423_v0, %v43_v5 }
  0x90   :  { %v41_v7 = vpop.xlane.xlu0 %40 }
  0x91   :  { %v44_v8 = vmul.f32 0.03125, %v41_v7  ;;  %v47_v9 = vmul.f32 %v45_v6, %v45_v6 }
  0x93   :  { %v46_v10 = vsub.f32 %v428_v1, %v44_v8  ;;  %v49_v11 = vsel %vm35_vm0, %v47_v9, 0.0 }
  0x94   :  { %50 = vadd.xlane.f32.xlu1 %v49_v11 }
  0x95   :  { %v48_v12 = vmul.f32 %v46_v10, %v46_v10 }
  0x97   :  { %v52_v13 = vsel %vm35_vm0, %v48_v12, 0.0 }
  0x98   :  { %53 = vadd.xlane.f32.xlu1 %v52_v13 }
 0x11d   :  { %v51_v17 = vpop.xlane.xlu1 %50 }
 0x11e   :  { %v55_v18 = vmul.f32 0.03125, %v51_v17 }
 0x120   :  { %v57_v19 = vadd.f32 1e-05, %v55_v18 }
 0x121   :  { %v54_v20 = vpop.xlane.xlu1 %53 }
 0x122   :  { %352 = vrsqrt.f32 %v57_v19  ;;  %v56_v21 = vmul.f32 0.03125, %v54_v20 }
 0x124   :  { %v58_v22 = vadd.f32 1e-05, %v56_v21 }
 0x126   :  { %354 = vrsqrt.f32 %v58_v22 }
 0x12f   :  { %v353_v23 = vpop.eup %352 }
 0x130   :  { %v61_v24 = vmul.f32 %v353_v23, %v45_v6 }
 0x132   :  { %v70_v28 = vmul.f32 %v302_v25, %v61_v24 }
 0x133   :  { %v355_v26 = vpop.eup %354 }
 0x134   :  { %v62_v27 = vmul.f32 %v355_v26, %v46_v10  ;;  %v79_v31 = vadd.f32 %v303_v29, %v70_v28  ;;  %v314_v26 = vld [vmem:[%s496_s7] ss:$0 sm:$0xff] }
 0x135   :  { %v315_v28 = vld [vmem:[%s497_s8] ss:$0 sm:$0xff] }
 0x136   :  { %v71_v30 = vmul.f32 %v302_v25, %v62_v27 }
 0x138   :  { %v80_v32 = vadd.f32 %v303_v29, %v71_v30 }
 0x13a   :  { %v81_v33 = vpack.c.bf16 %v80_v32, %v79_v31 }
 0x13c   :  { %329 = vmatmul.mubr.msk.bf16.vlgmr.msra.gmra.mxu0 %vm35_vm0, %v81_v33 }
 0x1fc   :  { %v142_v39 = vpop.f32.mrf.mxu0 }
 0x1fd   :  { %v143_v40 = vadd.f32 %v304_v38, %v142_v39 }
 0x1fe   :  { %v330_v41 = vpop.f32.mrf.mxu0 }
 0x1ff   :  { %v149_v42 = vmax.f32 %v143_v40, -30.0 }
 0x200   :  { %v145_v43 = vpop.f32.mrf.mxu0 }
 0x201   :  { %v151_v44 = vsub.f32 0.0, %v149_v42  ;;  %v146_v45 = vadd.f32 %v304_v38, %v145_v43 }
 0x202   :  { %v331_v46 = vpop.f32.mrf.mxu0 }
 0x203   :  { %v153_v47 = vmul.f32 1.442695, %v151_v44  ;;  %v150_v48 = vmax.f32 %v146_v45, -30.0 }
 0x205   :  { %356 = vpow2.f32 %v153_v47  ;;  %v152_v49 = vsub.f32 0.0, %v150_v48 }
 0x207   :  { %v155_v50 = vmul.f32 1.442695, %v152_v49 }
 0x209   :  { %358 = vpow2.f32 %v155_v50 }
 0x212   :  { %v357_v51 = vpop.eup %356 }
 0x213   :  { %v157_v52 = vadd.f32 1.0, %v357_v51 }
 0x215   :  { %360 = vrcp.f32 %v157_v52 }
 0x216   :  { %v359_v53 = vpop.eup %358 }
 0x217   :  { %v158_v54 = vadd.f32 1.0, %v359_v53 }
 0x219   :  { %362 = vrcp.f32 %v158_v54 }
 0x222   :  { %v361_v55 = vpop.eup %360 }
 0x223   :  { %v161_v57 = vmul.f32 %v361_v55, %v143_v40 }
 0x226   :  { %v363_v56 = vpop.eup %362 }
 0x227   :  { %v162_v58 = vmul.f32 %v363_v56, %v146_v45 }
 0x229   :  { %v163_v59 = vpack.c.bf16 %v162_v58, %v161_v57 }
 0x22b   :  { %341 = vmatmul.mubr.msk.bf16.vlgmr.msra.gmra.mxu1 %vm203_vm2, %v163_v59 }
 0x2eb   :  { %v241_v61 = vpop.f32.mrf.mxu1 }
 0x2ec   :  { %v242_v62 = vadd.f32 %v308_v60, %v241_v61 }
 0x2ed   :  { %v342_v63 = vpop.f32.mrf.mxu1 }
 0x2ee   :  { %v248_v2 = vmul.f32 0.5, %v242_v62 }
 0x2ef   :  { %v244_v3 = vpop.f32.mrf.mxu1 }
 0x2f0   :  { %v245_v4 = vadd.f32 %v308_v60, %v244_v3  ;;  %v250_v5 = vadd.f32 %v248_v2, %v423_v0 }
 0x2f1   :  { %v343_v6 = vpop.f32.mrf.mxu1 }
 0x2f2   :  { %v249_v7 = vmul.f32 0.5, %v245_v4  ;;  %v252_v8 = vsel %vm35_vm0, %v250_v5, 0.0 }
 0x2f3   :  { %253 = vadd.xlane.f32.xlu0 %v252_v8 }
 0x2f4   :  { %v251_v9 = vadd.f32 %v249_v7, %v428_v1 }
 0x2f6   :  { %v255_v10 = vsel %vm35_vm0, %v251_v9, 0.0 }
 0x2f7   :  { %256 = vadd.xlane.f32.xlu1 %v255_v10 }
 0x37c   :  { %v254_v11 = vpop.xlane.xlu0 %253 }
 0x37d   :  { %v258_v12 = vmul.f32 0.03125, %v254_v11 }
 0x37f   :  { %v260_v13 = vsub.f32 %v250_v5, %v258_v12 }
 0x380   :  { %v257_v14 = vpop.xlane.xlu1 %256 }
 0x381   :  { %v259_v15 = vmul.f32 0.03125, %v257_v14  ;;  %v262_v16 = vmul.f32 %v260_v13, %v260_v13 }
 0x383   :  { %v261_v17 = vsub.f32 %v251_v9, %v259_v15  ;;  %v264_v18 = vsel %vm35_vm0, %v262_v16, 0.0 }
 0x384   :  { %265 = vadd.xlane.f32.xlu0 %v264_v18 }
 0x385   :  { %v263_v0 = vmul.f32 %v261_v17, %v261_v17 }
 0x387   :  { %v267_v19 = vsel %vm35_vm0, %v263_v0, 0.0 }
 0x388   :  { %268 = vadd.xlane.f32.xlu1 %v267_v19 }
 0x40d   :  { %v266_v20 = vpop.xlane.xlu0 %265 }
 0x40e   :  { %v270_v21 = vmul.f32 0.03125, %v266_v20 }
 0x410   :  { %v272_v1 = vadd.f32 1e-05, %v270_v21 }
 0x411   :  { %v269_v22 = vpop.xlane.xlu1 %268 }
 0x412   :  { %364 = vrsqrt.f32 %v272_v1  ;;  %v271_v23 = vmul.f32 0.03125, %v269_v22 }
 0x414   :  { %v273_v24 = vadd.f32 1e-05, %v271_v23 }
 0x416   :  { %366 = vrsqrt.f32 %v273_v24 }
 0x41f   :  { %v365_v25 = vpop.eup %364 }
 0x420   :  { %v276_v27 = vmul.f32 %v365_v25, %v260_v13 }
 0x422   :  { %v285_v29 = vmul.f32 %v314_v26, %v276_v27 }
 0x423   :  { %v367_v30 = vpop.eup %366 }
 0x424   :  { %v294_v31 = vadd.f32 %v315_v28, %v285_v29  ;;  %v277_v32 = vmul.f32 %v367_v30, %v261_v17 }
 0x426   :  { %296 = vst.msk [vmem:[%s498_s9] sm:$0xff] %vm35_vm0, %v294_v31  ;;  %v286_v33 = vmul.f32 %v314_v26, %v277_v32 }
 0x428   :  { %v295_v34 = vadd.f32 %v315_v28, %v286_v33 }
 0x42a   :  { %297 = vst.msk [vmem:[%s498_s9 + $0x8] sm:$0xff] %vm35_vm0, %v295_v34 }

// kernel: full_conformer_forward.49
= control target key start
LH: loop header
LB: loop body
LE: loop exit
PB: predicated region body
PF: predicated region fallthrough
CT: control target
= control target key end

     0   :  { %v124_v0 = vmov 0.0   ;;  %vm125_vm0 = vmmov 0   ;;  %vm41_vm1 = vcmask 261120   ;;  %vm94_vm2 = vcmask 519168   ;;  %s167_s1 = inlined_call_operand.vmem [shape: bf16[32,64], index: 1, kind: input, shape index: {}]   ;;  %s168_s0 = inlined_call_operand.vmem [shape: f32[16,32], index: 0, kind: input, shape index: {}]   ;;  %s169_s2 = inlined_call_operand.vmem [shape: f32[1,64], index: 2, kind: input, shape index: {}]   ;;  %s170_s3 = inlined_call_operand.vmem [shape: bf16[16,64], index: 3, kind: output, shape index: {}]  }
   0x1   :  { %112 = vmatprep.subr.bf16.mxu0 %v124_v0  ;;  %v122_v1 = vld [vmem:[%s167_s1 + $0x8] sm:$0xff]   ;;  %116 = vmatprep.mubr.msk.bf16.mxu0 %vm125_vm0, %v124_v0  ;;  %v123_v2 = vld [vmem:[%s167_s1] sm:$0xff]  }
   0x2   :  { %113 = vmatpush3.bf16.msra.mxu0 %v122_v1  ;;  %v15_v3 = vld [vmem:[%s168_s0] sm:$0xff]  ;;  %v16_v4 = vld [vmem:[%s168_s0 + $0x8] sm:$0xff] }
   0x3   :  { %114 = vmatprep.subr.bf16.mxu0 %v124_v0  ;;  %v17_v5 = vpack.c.bf16 %v16_v4, %v15_v3  ;;  %v101_v6 = vld [vmem:[%s169_s2] ss:$0 sm:$0xff] }
   0x6   :  { %115 = vmatpush3.bf16.msra.mxu0 %v123_v2 }
   0x9   :  { %117 = vmatmul.mubr.msk.bf16.vlgmr.msra.gmra.mxu0 %vm41_vm1, %v17_v5 }
  0xc9   :  { %v79_v7 = vpop.f32.mrf.mxu0 }
  0xca   :  { %v80_v8 = vadd.f32 %v101_v6, %v79_v7 }
  0xcb   :  { %v118_v9 = vpop.f32.mrf.mxu0 }
  0xcc   :  { %v107_v10 = vpack.c.bf16 %v80_v8, %v80_v8 }
  0xcd   :  { %v82_v11 = vpop.f32.mrf.mxu0 }
  0xce   :  { %95 = vst.msk [vmem:[%s170_s3] sm:$0xf] %vm94_vm2, %v107_v10  ;;  %v83_v12 = vadd.f32 %v101_v6, %v82_v11 }
  0xcf   :  { %v119_v13 = vpop.f32.mrf.mxu0 }
  0xd0   :  { %v108_v14 = vpack.c.bf16 %v83_v12, %v83_v12 }
  0xd2   :  { %96 = vst.msk [vmem:[%s170_s3 + $0x4] sm:$0xf] %vm94_vm2, %v108_v14 }

// kernel: full_conformer_forward.45
= control target key start
LH: loop header
LB: loop body
LE: loop exit
PB: predicated region body
PF: predicated region fallthrough
CT: control target
= control target key end

     0   :  { %vm23_vm0 = vcmask 261120   ;;  %vm27_vm1 = vcmask 257024   ;;  %v183_v14 = vmov 0.0   ;;  %vm184_vm2 = vmmov 0   ;;  %s245_s0 = inlined_call_operand.vmem [shape: f32[12,32], index: 0, kind: input, shape index: {}]   ;;  %s246_s3 = inlined_call_operand.vmem [shape: bf16[32,96], index: 3, kind: input, shape index: {}]   ;;  %s247_s1 = inlined_call_operand.vmem [shape: f32[1,32], index: 1, kind: input, shape index: {}]   ;;  %s248_s2 = inlined_call_operand.vmem [shape: f32[1,32], index: 2, kind: input, shape index: {}]   ;;  %s249_s4 = inlined_call_operand.vmem [shape: f32[1,96], index: 4, kind: input, shape index: {}]   ;;  %s250_s5 = inlined_call_operand.vmem [shape: bf16[12,96], index: 5, kind: output, shape index: {}]  }
   0x1   :  { %v21_v0 = vld [vmem:[%s245_s0] sm:$0xff]  ;;  %v22_v1 = vld [vmem:[%s245_s0 + $0x8] sm:$0xf]  ;;  %167 = vmatprep.subr.bf16.mxu0 %v183_v14  ;;  %171 = vmatprep.mubr.msk.bf16.mxu0 %vm184_vm2, %v183_v14  ;;  %vm146_vm3 = vcmask 781312   ;;  %vm148_vm4 = vcmask 779264  }
   0x2   :  { %v24_v2 = vsel %vm23_vm0, %v21_v0, 0.0  ;;  %v28_v3 = vsel %vm27_vm1, %v22_v1, 0.0  ;;  %v177_v15 = vld [vmem:[%s246_s3 + $0x8] sm:$0xff]   ;;  %v178_v16 = vld [vmem:[%s246_s3] sm:$0xff]  }
   0x3   :  { %25 = vadd.xlane.f32.xlu0 %v24_v2  ;;  %168 = vmatpush3.bf16.msra.mxu0 %v177_v15  ;;  %v154_v25 = vld [vmem:[%s247_s1] ss:$0 sm:$0xff] }
   0x4   :  { %169 = vmatprep.subr.bf16.mxu0 %v183_v14  ;;  %v155_v29 = vld [vmem:[%s248_s2] ss:$0 sm:$0xff] }
   0x5   :  { %v156_v34 = vld [vmem:[%s249_s4] ss:$0 sm:$0xff] }
   0x7   :  { %29 = vadd.xlane.f32.xlu0 %v28_v3  ;;  %170 = vmatpush3.bf16.msra.mxu0 %v178_v16 }
  0x8c   :  { %v26_v4 = vpop.xlane.xlu0 %25 }
  0x8d   :  { %v32_v5 = vmul.f32 0.03125, %v26_v4 }
  0x8f   :  { %v34_v6 = vsub.f32 %v21_v0, %v32_v5 }
  0x90   :  { %v30_v7 = vpop.xlane.xlu0 %29 }
  0x91   :  { %v33_v8 = vmul.f32 0.03125, %v30_v7  ;;  %v36_v9 = vmul.f32 %v34_v6, %v34_v6 }
  0x93   :  { %v35_v10 = vsub.f32 %v22_v1, %v33_v8  ;;  %v38_v11 = vsel %vm23_vm0, %v36_v9, 0.0 }
  0x94   :  { %39 = vadd.xlane.f32.xlu1 %v38_v11 }
  0x95   :  { %v37_v12 = vmul.f32 %v35_v10, %v35_v10 }
  0x97   :  { %v41_v13 = vsel %vm27_vm1, %v37_v12, 0.0 }
  0x98   :  { %42 = vadd.xlane.f32.xlu1 %v41_v13 }
 0x11d   :  { %v40_v17 = vpop.xlane.xlu1 %39 }
 0x11e   :  { %v44_v18 = vmul.f32 0.03125, %v40_v17 }
 0x120   :  { %v46_v19 = vadd.f32 1e-05, %v44_v18 }
 0x121   :  { %v43_v20 = vpop.xlane.xlu1 %42 }
 0x122   :  { %179 = vrsqrt.f32 %v46_v19  ;;  %v45_v21 = vmul.f32 0.03125, %v43_v20 }
 0x124   :  { %v47_v22 = vadd.f32 1e-05, %v45_v21 }
 0x126   :  { %181 = vrsqrt.f32 %v47_v22 }
 0x12f   :  { %v180_v23 = vpop.eup %179 }
 0x130   :  { %v50_v24 = vmul.f32 %v180_v23, %v34_v6 }
 0x132   :  { %v59_v28 = vmul.f32 %v154_v25, %v50_v24 }
 0x133   :  { %v182_v26 = vpop.eup %181 }
 0x134   :  { %v51_v27 = vmul.f32 %v182_v26, %v35_v10  ;;  %v68_v31 = vadd.f32 %v155_v29, %v59_v28 }
 0x136   :  { %v60_v30 = vmul.f32 %v154_v25, %v51_v27 }
 0x138   :  { %v69_v32 = vadd.f32 %v155_v29, %v60_v30 }
 0x13a   :  { %v70_v33 = vpack.c.bf16 %v69_v32, %v68_v31 }
 0x13c   :  { %172 = vmatmul.mubr.msk.bf16.vlgmr.msra.gmra.mxu0 %vm23_vm0, %v70_v33 }
 0x1fc   :  { %v131_v35 = vpop.f32.mrf.mxu0 }
 0x1fd   :  { %v132_v36 = vadd.f32 %v156_v34, %v131_v35 }
 0x1fe   :  { %v173_v37 = vpop.f32.mrf.mxu0 }
 0x1ff   :  { %v162_v38 = vpack.c.bf16 %v132_v36, %v132_v36 }
 0x200   :  { %v134_v39 = vpop.f32.mrf.mxu0 }
 0x201   :  { %147 = vst.msk [vmem:[%s250_s5] sm:$0xf] %vm146_vm3, %v162_v38  ;;  %v135_v40 = vadd.f32 %v156_v34, %v134_v39 }
 0x202   :  { %v174_v41 = vpop.f32.mrf.mxu0 }
 0x203   :  { %v163_v42 = vpack.c.bf16 %v135_v40, %v135_v40 }
 0x205   :  { %149 = vst.msk [vmem:[%s250_s5 + $0x4] sm:$0x3] %vm148_vm4, %v163_v42 }

// kernel: full_conformer_forward.47
= control target key start
LH: loop header
LB: loop body
LE: loop exit
PB: predicated region body
PF: predicated region fallthrough
CT: control target
= control target key end

     0   :  { %v125_v0 = vmov 0.0   ;;  %vm126_vm0 = vmmov 0   ;;  %vm50_vm1 = vcmask 261120   ;;  %vm98_vm2 = vcmask 257024   ;;  %s176_s2 = inlined_call_operand.vmem [shape: bf16[32,32], index: 2, kind: input, shape index: {}]   ;;  %s177_s0 = inlined_call_operand.vmem [shape: bf16[12,32], index: 0, kind: input, shape index: {}]   ;;  %s178_s3 = inlined_call_operand.vmem [shape: f32[1,32], index: 3, kind: input, shape index: {}]   ;;  %s179_s1 = inlined_call_operand.vmem [shape: f32[12,32], index: 1, kind: input, shape index: {}]   ;;  %s180_s4 = inlined_call_operand.vmem [shape: f32[12,32], index: 4, kind: output, shape index: {}]  }
   0x1   :  { %112 = vmatprep.subr.bf16.mxu0 %v125_v0  ;;  %v122_v1 = vld [vmem:[%s176_s2 + $0x8] sm:$0xff]   ;;  %116 = vmatprep.mubr.msk.bf16.mxu0 %vm126_vm0, %v125_v0  ;;  %v123_v2 = vld [vmem:[%s176_s2] sm:$0xff]  }
   0x2   :  { %113 = vmatpush3.bf16.msra.mxu0 %v122_v1  ;;  %v124_v3 = vld [vmem:[%s177_s0] sm:$0x3f]   ;;  %v19_v10 = vld [vmem:[%s179_s1 + $0x8] sm:$0xf] }
   0x3   :  { %114 = vmatprep.subr.bf16.mxu0 %v125_v0  ;;  %v104_v4 = vld [vmem:[%s178_s3] ss:$0 sm:$0xff] }
   0x4   :  { %v18_v5 = vld [vmem:[%s179_s1] sm:$0xff] }
   0x6   :  { %115 = vmatpush3.bf16.msra.mxu0 %v123_v2 }
   0x9   :  { %117 = vmatmul.mubr.msk.bf16.vlgmr.msra.gmra.mxu0 %vm50_vm1, %v124_v3 }
  0xc9   :  { %v88_v6 = vpop.f32.mrf.mxu0 }
  0xca   :  { %v89_v7 = vadd.f32 %v104_v4, %v88_v6 }
  0xcb   :  { %v118_v8 = vpop.f32.mrf.mxu0 }
  0xcc   :  { %v95_v9 = vadd.f32 %v89_v7, %v18_v5 }
  0xcd   :  { %v91_v11 = vpop.f32.mrf.mxu0 }
  0xce   :  { %97 = vst.msk [vmem:[%s180_s4] sm:$0xff] %vm50_vm1, %v95_v9  ;;  %v92_v12 = vadd.f32 %v104_v4, %v91_v11 }
  0xcf   :  { %v119_v13 = vpop.f32.mrf.mxu0 }
  0xd0   :  { %v96_v14 = vadd.f32 %v92_v12, %v19_v10 }
  0xd2   :  { %99 = vst.msk [vmem:[%s180_s4 + $0x8] sm:$0xf] %vm98_vm2, %v96_v14 }

// kernel: full_conformer_forward.48
= control target key start
LH: loop header
LB: loop body
LE: loop exit
PB: predicated region body
PF: predicated region fallthrough
CT: control target
= control target key end

     0   :  { %vm23_vm0 = vcmask 261120   ;;  %vm27_vm1 = vcmask 257024   ;;  %v182_v14 = vmov 0.0   ;;  %vm183_vm2 = vmmov 0   ;;  %s247_s0 = inlined_call_operand.vmem [shape: f32[12,32], index: 0, kind: input, shape index: {}]   ;;  %s248_s3 = inlined_call_operand.vmem [shape: bf16[32,32], index: 3, kind: input, shape index: {}]   ;;  %s249_s1 = inlined_call_operand.vmem [shape: f32[1,32], index: 1, kind: input, shape index: {}]   ;;  %s250_s2 = inlined_call_operand.vmem [shape: f32[1,32], index: 2, kind: input, shape index: {}]   ;;  %s251_s4 = inlined_call_operand.vmem [shape: f32[1,32], index: 4, kind: input, shape index: {}]   ;;  %s252_s5 = inlined_call_operand.vmem [shape: bf16[12,32], index: 5, kind: output, shape index: {}]  }
   0x1   :  { %v21_v0 = vld [vmem:[%s247_s0] sm:$0xff]  ;;  %v22_v1 = vld [vmem:[%s247_s0 + $0x8] sm:$0xf]  ;;  %166 = vmatprep.subr.bf16.mxu0 %v182_v14  ;;  %170 = vmatprep.mubr.msk.bf16.mxu0 %vm183_vm2, %v182_v14  ;;  %vm147_vm3 = vcmask 254976  }
   0x2   :  { %v24_v2 = vsel %vm23_vm0, %v21_v0, 0.0  ;;  %v28_v3 = vsel %vm27_vm1, %v22_v1, 0.0  ;;  %v176_v15 = vld [vmem:[%s248_s3 + $0x8] sm:$0xff]   ;;  %v177_v16 = vld [vmem:[%s248_s3] sm:$0xff]  }
   0x3   :  { %25 = vadd.xlane.f32.xlu0 %v24_v2  ;;  %167 = vmatpush3.bf16.msra.mxu0 %v176_v15  ;;  %v153_v25 = vld [vmem:[%s249_s1] ss:$0 sm:$0xff] }
   0x4   :  { %168 = vmatprep.subr.bf16.mxu0 %v182_v14  ;;  %v154_v29 = vld [vmem:[%s250_s2] ss:$0 sm:$0xff] }
   0x5   :  { %v155_v34 = vld [vmem:[%s251_s4] ss:$0 sm:$0xff] }
   0x7   :  { %29 = vadd.xlane.f32.xlu0 %v28_v3  ;;  %169 = vmatpush3.bf16.msra.mxu0 %v177_v16 }
  0x8c   :  { %v26_v4 = vpop.xlane.xlu0 %25 }
  0x8d   :  { %v32_v5 = vmul.f32 0.03125, %v26_v4 }
  0x8f   :  { %v34_v6 = vsub.f32 %v21_v0, %v32_v5 }
  0x90   :  { %v30_v7 = vpop.xlane.xlu0 %29 }
  0x91   :  { %v33_v8 = vmul.f32 0.03125, %v30_v7  ;;  %v36_v9 = vmul.f32 %v34_v6, %v34_v6 }
  0x93   :  { %v35_v10 = vsub.f32 %v22_v1, %v33_v8  ;;  %v38_v11 = vsel %vm23_vm0, %v36_v9, 0.0 }
  0x94   :  { %39 = vadd.xlane.f32.xlu1 %v38_v11 }
  0x95   :  { %v37_v12 = vmul.f32 %v35_v10, %v35_v10 }
  0x97   :  { %v41_v13 = vsel %vm27_vm1, %v37_v12, 0.0 }
  0x98   :  { %42 = vadd.xlane.f32.xlu1 %v41_v13 }
 0x11d   :  { %v40_v17 = vpop.xlane.xlu1 %39 }
 0x11e   :  { %v44_v18 = vmul.f32 0.03125, %v40_v17 }
 0x120   :  { %v46_v19 = vadd.f32 1e-05, %v44_v18 }
 0x121   :  { %v43_v20 = vpop.xlane.xlu1 %42 }
 0x122   :  { %178 = vrsqrt.f32 %v46_v19  ;;  %v45_v21 = vmul.f32 0.03125, %v43_v20 }
 0x124   :  { %v47_v22 = vadd.f32 1e-05, %v45_v21 }
 0x126   :  { %180 = vrsqrt.f32 %v47_v22 }
 0x12f   :  { %v179_v23 = vpop.eup %178 }
 0x130   :  { %v50_v24 = vmul.f32 %v179_v23, %v34_v6 }
 0x132   :  { %v59_v28 = vmul.f32 %v153_v25, %v50_v24 }
 0x133   :  { %v181_v26 = vpop.eup %180 }
 0x134   :  { %v51_v27 = vmul.f32 %v181_v26, %v35_v10  ;;  %v68_v31 = vadd.f32 %v154_v29, %v59_v28 }
 0x136   :  { %v60_v30 = vmul.f32 %v153_v25, %v51_v27 }
 0x138   :  { %v69_v32 = vadd.f32 %v154_v29, %v60_v30 }
 0x13a   :  { %v70_v33 = vpack.c.bf16 %v69_v32, %v68_v31 }
 0x13c   :  { %171 = vmatmul.mubr.msk.bf16.vlgmr.msra.gmra.mxu0 %vm23_vm0, %v70_v33 }
 0x1fc   :  { %v131_v35 = vpop.f32.mrf.mxu0 }
 0x1fd   :  { %v132_v36 = vadd.f32 %v155_v34, %v131_v35 }
 0x1fe   :  { %v172_v37 = vpop.f32.mrf.mxu0 }
 0x1ff   :  { %v161_v38 = vpack.c.bf16 %v132_v36, %v132_v36 }
 0x200   :  { %v134_v39 = vpop.f32.mrf.mxu0 }
 0x201   :  { %146 = vst.msk [vmem:[%s252_s5] sm:$0xf] %vm27_vm1, %v161_v38  ;;  %v135_v40 = vadd.f32 %v155_v34, %v134_v39 }
 0x202   :  { %v173_v41 = vpop.f32.mrf.mxu0 }
 0x203   :  { %v162_v42 = vpack.c.bf16 %v135_v40, %v135_v40 }
 0x205   :  { %148 = vst.msk [vmem:[%s252_s5 + $0x4] sm:$0x3] %vm147_vm3, %v162_v42 }

// kernel: full_conformer_forward.46
= control target key start
LH: loop header
LB: loop body
LE: loop exit
PB: predicated region body
PF: predicated region fallthrough
CT: control target
= control target key end

     0   :  { %s976_s15 = smov 0   ;;  %s1081_s0 = inlined_call_operand.vmem [shape: bf16[2,6,32], index: 0, kind: input, shape index: {}]   ;;  %s1082_s1 = inlined_call_operand.vmem [shape: bf16[2,6,32], index: 1, kind: input, shape index: {}]   ;;  %s1083_s2 = inlined_call_operand.vmem [shape: bf16[2,6,32], index: 2, kind: input, shape index: {}]   ;;  %s1084_s3 = inlined_call_operand.vmem [shape: f32[2,1,6], index: 3, kind: input, shape index: {}]   ;;  %s1085_s4 = inlined_call_operand.vmem [shape: bf16[2,6,32], index: 4, kind: output, shape index: {}]  }
   0x1 LB: > { %s814_s16 = sadd.s32 4294967295, %s941_s15   ;;  %p818_p0 = scmp.ge.s32.totalorder %s941_s15, 1  ;;  %s941_s15 = sphi %s976_s15, %s14_s15  }
   0x2   : > { %p187_p1 = scmp.lt.s32.totalorder %s941_s15, 3 }
   0x4   : > { %p188_p2 = pnand %p818_p0, %p187_p1 }
   0x5   : > { %p222_p3 = scmp.lt.s32.totalorder (!%p188_p2), %s814_s16, 1  ;;  %s945_s27 = smov (!%p188_p2), 120  }
   0x6   : > { %191 = sbr.rel (%p188_p2) target bundleno = 1414 (0x586), region = 36  ;;  %s946_s28 = smov (!%p188_p2), 112  }
   0x7   : > { %s947_s29 = smov (!%p188_p2), 104   ;;  %s948_s7 = smov (!%p188_p2), 8  }
   0x8   : > { %s949_s8 = smov (!%p188_p2), 16   ;;  %s950_s9 = smov (!%p188_p2), 24  }
   0xb   : > { %v943_v0 = vmov 0.0   ;;  %vm944_vm0 = vmmov 0   ;;  %s1087_s16 = smov (!%p222_p3, %s814_s16), 1  ;;  %vm261_vm1 = vcmask 64512   ;;  %v248_v5 = vlaneseq }
   0xc   : > { %853 = vmatprep.subr.bf16.mxu0 %v943_v0  ;;  %855 = vmatprep.mubr.msk.bf16.mxu0 %vm944_vm0, %v943_v0  ;;  %s990_s17 = sshll.u32 %s1087_s16, 2  ;;  %s236_s26 = scalar_lea.vmem %s1084_s3, %s1087_s16  ;;  %vm308_vm3 = vcmask 46080   ;;  %vm325_vm4 = vcmask 1042432   ;;  %vm321_vm5 = vcmask 48128   ;;  %vm721_vm6 = vcmask 130048  }
   0xd   : > { %859 = vmatprep.subr.bf16.mxu1 %v943_v0  ;;  %861 = vmatprep.mubr.msk.bf16.mxu1 %vm944_vm0, %v943_v0  ;;  %s229_s20 = scalar_lea.vmem %s1082_s1, %s990_s17  ;;  %s225_s23 = scalar_lea.vmem %s1081_s0, %s990_s17  ;;  %v249_v6 = vshrl.u32 %v248_v5, 7  ;;  %v251_v7 = vand.u32 127, %v248_v5  ;;  %v823_v8 = vld [vmem:[%s236_s26] ss:$0 sm:$0xff]  ;;  %vm723_vm7 = vcmask 195584   ;;  %vm726_vm8 = vcmask 256000  }
   0xe   : > { %v245_v1 = vld [vmem:[%s229_s20] sm:$0x7]  ;;  %s233_s6 = scalar_lea.vmem %s1083_s2, %s990_s17  ;;  %s240_s12 = scalar_lea.vmem %s1085_s4, %s990_s17 }
   0xf   : > { %v266_v2 = vsel %vm261_vm1, %v245_v1, 0  ;;  %v243_v3 = vld [vmem:[%s225_s23] sm:$0x7]  ;;  %vm252_vm2 = vcmp.gt.s32.totalorder %v251_v7, %v249_v6  ;;  %v827_v17 = vcombine.low %v245_v1, %v245_v1 }
  0x10   : > { %854 = vmatpush3.bf16.xpose.msra.mxu0 %v266_v2  ;;  %v244_v4 = vmul.bf16 1052065461, %v243_v3  ;;  %v253_v9 = vsel %vm252_vm2, -1e+30, %v943_v0  ;;  %v1023_v24 = vld [vmem:[%s233_s6] sm:$0x7] }
  0x11   : > { %871 = vmatprep.subr.bf16.mxu0 %v943_v0  ;;  %v1009_v10 = vadd.f32 %v823_v8, %v253_v9  ;;  %377 = vrot.lane.b32.xlu1 %v827_v17, %s945_s27  ;;  %v327_v25 = vsel %vm325_vm4, %v1023_v24, 0  ;;  %v829_v8 = vcombine.low %v1023_v24, %v1023_v24 }
  0x12   : > { %v826_v18 = vcombine.low %v244_v4, %v244_v4  ;;  %860 = vmatpush3.bf16.msra.mxu1 %v327_v25 }
  0x13   : > { %865 = vmatprep.subr.bf16.mxu1 %v943_v0 }
  0x15   : > { %372 = vrot.lane.b32.xlu1 %v826_v18, %s945_s27 }
  0x17   : > { %856 = vmatmul.mubr.msk.bf16.vlgmr.msra.gmra.mxu0 %vm261_vm1, %v244_v4 }
  0x18   : > { %873 = vmatprep.mubr.msk.bf16.mxu0 %vm944_vm0, %v943_v0 }
  0x19   : > { %488 = vrot.lane.b32.xlu1 %v826_v18, %s946_s28 }
  0x1d   : > { %600 = vrot.lane.b32.xlu1 %v827_v17, %s947_s29 }
  0x21   : > { %598 = vrot.lane.b32.xlu1 %v826_v18, %s947_s29 }
  0x83   : > { %v378_v28 = vpop.permute.xlu1 %377 }
  0x84   : > { %v383_v30 = vsel %vm261_vm1, %v378_v28, 0 }
  0x87   : > { %v373_v32 = vpop.permute.xlu1 %372 }
  0x8b   : > { %v489_v34 = vpop.permute.xlu1 %488 }
  0x8f   : > { %v601_v36 = vpop.permute.xlu1 %600 }
  0x90   : > { %v606_v37 = vsel %vm261_vm1, %v601_v36, 0 }
  0x93   : > { %v599_v38 = vpop.permute.xlu1 %598 }
  0xd7   : > { %v302_v11 = vpop.f32.mrf.mxu0 }
  0xd8   : > { %v303_v12 = vadd.f32 %v302_v11, %v1009_v10 }
  0xd9   : > { %v857_v13 = vpop.f32.mrf.mxu0 }
  0xda   : > { %v309_v14 = vsel %vm308_vm3, %v303_v12, -inf }
  0xdb   : > { %310 = vmax.xlane.f32.xlu0 %v309_v14  ;;  %v305_v15 = vpop.f32.mrf.mxu0 }
  0xdd   : > { %v858_v16 = vpop.f32.mrf.mxu0 }
 0x164   : > { %v311_v19 = vpop.xlane.xlu0 %310 }
 0x165   : > { %v312_v20 = vsub.f32 %v303_v12, %v311_v19 }
 0x167   : > { %v313_v21 = vmul.f32 1.442695, %v312_v20 }
 0x169   : > { %919 = vpow2.f32 %v313_v21 }
 0x176   : > { %v920_v22 = vpop.eup %919 }
 0x177   : > { %v315_v23 = vsel %vm308_vm3, %v920_v22, 0.0 }
 0x178   : > { %316 = vadd.xlane.f32.xlu0 %v315_v23 }
 0x18e   : > { %490 = vrot.lane.b32.xlu0 %v827_v17, %s946_s28 }
 0x201   : > { %v317_v26 = vpop.xlane.xlu0 %316 }
 0x202   : > { %921 = vrcp.f32 %v317_v26 }
 0x205   : > { %v491_v33 = vpop.permute.xlu0 %490 }
 0x206   : > { %v496_v35 = vsel %vm261_vm1, %v491_v33, 0 }
 0x20f   : > { %v922_v27 = vpop.eup %921 }
 0x210   : > { %v319_v29 = vmul.f32 %v922_v27, %v920_v22 }
 0x212   : > { %v320_v31 = vpack.c.bf16 %v319_v29, %v319_v29 }
 0x214   : > { %862 = vmatmul.mubr.msk.bf16.vlgmr.msra.gmra.mxu1 %vm321_vm5, %v320_v31 }
 0x215   : > { %866 = vmatpush3.bf16.xpose.msra.mxu1 %v383_v30  ;;  %867 = vmatprep.mubr.msk.bf16.mxu1 %vm944_vm0, %v943_v0 }
 0x216   : > { %877 = vmatprep.subr.bf16.mxu1 %v943_v0 }
 0x21c   : > { %868 = vmatmul.mubr.msk.bf16.vlgmr.msra.gmra.mxu1 %vm261_vm1, %v373_v32 }
 0x21d   : > { %878 = vmatpush3.bf16.xpose.msra.mxu1 %v496_v35  ;;  %879 = vmatprep.mubr.msk.bf16.mxu1 %vm944_vm0, %v943_v0 }
 0x21e   : > { %889 = vmatprep.subr.bf16.mxu1 %v943_v0 }
 0x224   : > { %880 = vmatmul.mubr.msk.bf16.vlgmr.msra.gmra.mxu1 %vm261_vm1, %v489_v34 }
 0x225   : > { %890 = vmatpush3.bf16.xpose.msra.mxu1 %v606_v37  ;;  %891 = vmatprep.mubr.msk.bf16.mxu1 %vm944_vm0, %v943_v0 }
 0x22c   : > { %892 = vmatmul.mubr.msk.bf16.vlgmr.msra.gmra.mxu1 %vm261_vm1, %v599_v38 }
 0x2d4   : > { %v1044_v39 = vpop.f32.mrf.mxu1 }
 0x2d6   : > { %v863_v40 = vpop.f32.mrf.mxu1 }
 0x2d8   : > { %v366_v41 = vpop.f32.mrf.mxu1 }
 0x2da   : > { %v864_v42 = vpop.f32.mrf.mxu1 }
 0x2dc   : > { %v419_v43 = vpop.f32.mrf.mxu1 }
 0x2dd   : > { %v420_v44 = vadd.f32 %v419_v43, %v1009_v10 }
 0x2de   : > { %v869_v45 = vpop.f32.mrf.mxu1 }
 0x2df   : > { %v425_v46 = vsel %vm308_vm3, %v420_v44, -inf }
 0x2e0   : > { %426 = vmax.xlane.f32.xlu1 %v425_v46  ;;  %v422_v47 = vpop.f32.mrf.mxu1 }
 0x2e2   : > { %v870_v48 = vpop.f32.mrf.mxu1 }
 0x2e4   : > { %v532_v49 = vpop.f32.mrf.mxu1 }
 0x2e5   : > { %v533_v50 = vadd.f32 %v532_v49, %v1009_v10 }
 0x2e6   : > { %v881_v51 = vpop.f32.mrf.mxu1 }
 0x2e7   : > { %v538_v52 = vsel %vm308_vm3, %v533_v50, -inf }
 0x2e8   : > { %539 = vmax.xlane.f32.xlu0 %v538_v52  ;;  %v535_v53 = vpop.f32.mrf.mxu1 }
 0x2ea   : > { %v882_v54 = vpop.f32.mrf.mxu1 }
 0x2ec   : > { %v642_v55 = vpop.f32.mrf.mxu1 }
 0x2ed   : > { %v643_v56 = vadd.f32 %v642_v55, %v1009_v10 }
 0x2ee   : > { %v893_v57 = vpop.f32.mrf.mxu1 }
 0x2ef   : > { %v648_v58 = vsel %vm308_vm3, %v643_v56, -inf }
 0x2f0   : > { %649 = vmax.xlane.f32.xlu1 %v648_v58  ;;  %v645_v59 = vpop.f32.mrf.mxu1 }
 0x2f2   : > { %v894_v60 = vpop.f32.mrf.mxu1 }
 0x369   : > { %v427_v61 = vpop.xlane.xlu1 %426 }
 0x36a   : > { %v428_v62 = vsub.f32 %v420_v44, %v427_v61 }
 0x36c   : > { %v429_v63 = vmul.f32 1.442695, %v428_v62 }
 0x36e   : > { %923 = vpow2.f32 %v429_v63 }
 0x371   : > { %v540_v1 = vpop.xlane.xlu0 %539 }
 0x372   : > { %v541_v2 = vsub.f32 %v533_v50, %v540_v1 }
 0x374   : > { %v542_v3 = vmul.f32 1.442695, %v541_v2 }
 0x376   : > { %925 = vpow2.f32 %v542_v3 }
 0x379   : > { %v650_v9 = vpop.xlane.xlu1 %649 }
 0x37a   : > { %v651_v10 = vsub.f32 %v643_v56, %v650_v9 }
 0x37b   : > { %v924_v4 = vpop.eup %923 }
 0x37c   : > { %v431_v5 = vsel %vm308_vm3, %v924_v4, 0.0  ;;  %v652_v11 = vmul.f32 1.442695, %v651_v10 }
 0x37d   : > { %432 = vadd.xlane.f32.xlu1 %v431_v5 }
 0x37e   : > { %927 = vpow2.f32 %v652_v11 }
 0x383   : > { %v926_v6 = vpop.eup %925 }
 0x384   : > { %v544_v7 = vsel %vm308_vm3, %v926_v6, 0.0 }
 0x385   : > { %545 = vadd.xlane.f32.xlu0 %v544_v7 }
 0x38b   : > { %v928_v12 = vpop.eup %927 }
 0x38c   : > { %v654_v13 = vsel %vm308_vm3, %v928_v12, 0.0 }
 0x38e   : > { %550 = vrot.lane.b32.xlu1 %v829_v8, %s946_s28 }
 0x39b   : > { %440 = vrot.lane.b32.xlu0 %v829_v8, %s945_s27 }
 0x3b2   : > { %655 = vadd.xlane.f32.xlu1 %v654_v13 }
 0x3c3   : > { %660 = vrot.lane.b32.xlu1 %v829_v8, %s947_s29 }
 0x406   : > { %v433_v14 = vpop.xlane.xlu1 %432 }
 0x407   : > { %929 = vrcp.f32 %v433_v14 }
 0x40a   : > { %v551_v20 = vpop.permute.xlu1 %550 }
 0x40b   : > { %v556_v22 = vsel %vm325_vm4, %v551_v20, 0 }
 0x40e   : > { %v546_v15 = vpop.xlane.xlu0 %545 }
 0x40f   : > { %931 = vrcp.f32 %v546_v15 }
 0x412   : > { %v441_v16 = vpop.permute.xlu0 %440 }
 0x413   : > { %v446_v17 = vsel %vm325_vm4, %v441_v16, 0 }
 0x414   : > { %v930_v18 = vpop.eup %929  ;;  %872 = vmatpush3.bf16.msra.mxu0 %v446_v17 }
 0x415   : > { %883 = vmatprep.subr.bf16.mxu0 %v943_v0  ;;  %v435_v19 = vmul.f32 %v930_v18, %v924_v4 }
 0x417   : > { %v436_v21 = vpack.c.bf16 %v435_v19, %v435_v19 }
 0x419   : > { %874 = vmatmul.mubr.msk.bf16.vlgmr.msra.gmra.mxu0 %vm321_vm5, %v436_v21 }
 0x41a   : > { %884 = vmatpush3.bf16.msra.mxu0 %v556_v22  ;;  %885 = vmatprep.mubr.msk.bf16.mxu0 %vm944_vm0, %v943_v0 }
 0x41b   : > { %895 = vmatprep.subr.bf16.mxu0 %v943_v0 }
 0x41c   : > { %v932_v23 = vpop.eup %931 }
 0x41d   : > { %v548_v24 = vmul.f32 %v932_v23, %v926_v6 }
 0x41f   : > { %v549_v25 = vpack.c.bf16 %v548_v24, %v548_v24 }
 0x421   : > { %886 = vmatmul.mubr.msk.bf16.vlgmr.msra.gmra.mxu0 %vm321_vm5, %v549_v25 }
 0x422   : > { %897 = vmatprep.mubr.msk.bf16.mxu0 %vm944_vm0, %v943_v0 }
 0x43b   : > { %v656_v26 = vpop.xlane.xlu1 %655 }
 0x43c   : > { %933 = vrcp.f32 %v656_v26 }
 0x43f   : > { %v661_v27 = vpop.permute.xlu1 %660 }
 0x440   : > { %v666_v28 = vsel %vm325_vm4, %v661_v27, 0 }
 0x441   : > { %896 = vmatpush3.bf16.msra.mxu0 %v666_v28 }
 0x449   : > { %v934_v29 = vpop.eup %933 }
 0x44a   : > { %v658_v30 = vmul.f32 %v934_v29, %v928_v12 }
 0x44c   : > { %v659_v31 = vpack.c.bf16 %v658_v30, %v658_v30 }
 0x44e   : > { %898 = vmatmul.mubr.msk.bf16.vlgmr.msra.gmra.mxu0 %vm321_vm5, %v659_v31 }
 0x4d9   : > { %v482_v32 = vpop.f32.mrf.mxu0 }
 0x4da   : > { %709 = vrot.lane.b32.xlu0 %v482_v32, %s948_s7 }
 0x4db   : > { %v875_v33 = vpop.f32.mrf.mxu0 }
 0x4dd   : > { %v485_v34 = vpop.f32.mrf.mxu0 }
 0x4df   : > { %v876_v35 = vpop.f32.mrf.mxu0 }
 0x4e1   : > { %v592_v36 = vpop.f32.mrf.mxu0 }
 0x4e2   : > { %713 = vrot.lane.b32.xlu1 %v592_v36, %s949_s8 }
 0x4e3   : > { %v887_v0 = vpop.f32.mrf.mxu0 }
 0x4e5   : > { %v595_v37 = vpop.f32.mrf.mxu0 }
 0x4e7   : > { %v888_v38 = vpop.f32.mrf.mxu0 }
 0x50e   : > { %v702_v40 = vpop.f32.mrf.mxu0 }
 0x50f   : > { %717 = vrot.lane.b32.xlu0 %v702_v40, %s950_s9 }
 0x510   : > { %v899_v41 = vpop.f32.mrf.mxu0 }
 0x512   : > { %v705_v42 = vpop.f32.mrf.mxu0 }
 0x514   : > { %v900_v43 = vpop.f32.mrf.mxu0 }
 0x54c   : > { %v710_v44 = vpop.permute.xlu0 %709 }
 0x54d   : > { %v720_v46 = vsel %vm261_vm1, %v1044_v39, %v710_v44 }
 0x554   : > { %v714_v45 = vpop.permute.xlu1 %713 }
 0x555   : > { %v722_v47 = vsel %vm721_vm6, %v720_v46, %v714_v45 }
 0x581   : > { %v718_v48 = vpop.permute.xlu0 %717 }
 0x582   : > { %v724_v49 = vsel %vm723_vm7, %v722_v47, %v718_v48 }
 0x583   : > { %v725_v50 = vpack.c.bf16 %v724_v49, %v724_v49 }
 0x585   : > { %727 = vst.msk [vmem:[%s240_s12] sm:$0x7] %vm726_vm8, %v725_v50 }
 0x586 PF: > { %s14_s15 = sadd.s32 1, %s941_s15  }
 0x587   : > { %p11_p4 = scmp.ge.s32.totalorder %s14_s15, 4  }
 0x589   :  { %13 = sbr.rel (!%p11_p4) target bundleno = 1 (0x1), region = 75 }

// kernel: full_conformer_forward.52
= control target key start
LH: loop header
LB: loop body
LE: loop exit
PB: predicated region body
PF: predicated region fallthrough
CT: control target
= control target key end

     0   :  { %vm35_vm0 = vcmask 261120   ;;  %vm39_vm1 = vcmask 257024   ;;  %v297_v14 = vmov 0.0   ;;  %vm298_vm2 = vmmov 0   ;;  %s408_s0 = inlined_call_operand.vmem [shape: f32[12,32], index: 0, kind: input, shape index: {}]   ;;  %s409_s7 = inlined_call_operand.vmem [shape: f32[1,32], index: 7, kind: input, shape index: {}]   ;;  %s410_s8 = inlined_call_operand.vmem [shape: f32[1,32], index: 8, kind: input, shape index: {}]   ;;  %s411_s3 = inlined_call_operand.vmem [shape: bf16[32,64], index: 3, kind: input, shape index: {}]   ;;  %s412_s5 = inlined_call_operand.vmem [shape: bf16[64,32], index: 5, kind: input, shape index: {}]   ;;  %s413_s1 = inlined_call_operand.vmem [shape: f32[1,32], index: 1, kind: input, shape index: {}]   ;;  %s414_s2 = inlined_call_operand.vmem [shape: f32[1,32], index: 2, kind: input, shape index: {}]   ;;  %s415_s4 = inlined_call_operand.vmem [shape: f32[1,64], index: 4, kind: input, shape index: {}]   ;;  %s416_s6 = inlined_call_operand.vmem [shape: f32[1,32], index: 6, kind: input, shape index: {}]   ;;  %s417_s9 = inlined_call_operand.vmem [shape: f32[12,32], index: 9, kind: output, shape index: {}]  }
   0x1   :  { %v352_v0 = vld [vmem:[%s408_s0] sm:$0xff]  ;;  %v357_v1 = vld [vmem:[%s408_s0 + $0x8] sm:$0xf]  ;;  %265 = vmatprep.subr.bf16.mxu0 %v297_v14  ;;  %269 = vmatprep.mubr.msk.bf16.mxu0 %vm298_vm2, %v297_v14  ;;  %v289_v17 = vld [vmem:[%s412_s5 + $0x18] sm:$0xff]   ;;  %vm192_vm3 = vcmask 523264  }
   0x2   :  { %v36_v2 = vsel %vm35_vm0, %v352_v0, 0.0  ;;  %v40_v3 = vsel %vm39_vm1, %v357_v1, 0.0  ;;  %v287_v15 = vld [vmem:[%s411_s3 + $0x8] sm:$0xff]   ;;  %273 = vmatprep.subr.bf16.mxu1 %v297_v14  ;;  %281 = vmatprep.mubr.msk.bf16.mxu1 %vm298_vm2, %v297_v14  ;;  %v288_v16 = vld [vmem:[%s411_s3] sm:$0xff]   ;;  %v290_v35 = vld [vmem:[%s412_s5 + $0x10] sm:$0xff]  }
   0x3   :  { %37 = vadd.xlane.f32.xlu0 %v36_v2  ;;  %266 = vmatpush3.bf16.msra.mxu0 %v287_v15  ;;  %v245_v26 = vld [vmem:[%s413_s1] ss:$0 sm:$0xff]  ;;  %v291_v36 = vld [vmem:[%s412_s5 + $0x8] sm:$0xff]  }
   0x4   :  { %267 = vmatprep.subr.bf16.mxu0 %v297_v14  ;;  %274 = vmatpush3.bf16.msra.mxu1 %v289_v17  ;;  %v246_v30 = vld [vmem:[%s414_s2] ss:$0 sm:$0xff] }
   0x5   :  { %275 = vmatprep.subr.bf16.mxu1 %v297_v14  ;;  %v292_v37 = vld [vmem:[%s412_s5] sm:$0xff]  }
   0x6   :  { %v247_v38 = vld [vmem:[%s415_s4] ss:$0 sm:$0xff] }
   0x7   :  { %41 = vadd.xlane.f32.xlu0 %v40_v3  ;;  %268 = vmatpush3.bf16.msra.mxu0 %v288_v16  ;;  %v251_v48 = vld [vmem:[%s416_s6] ss:$0 sm:$0xff] }
   0x8   :  { %276 = vmatpush3.bf16.msra.mxu1 %v290_v35 }
   0x9   :  { %277 = vmatprep.subr.bf16.mxu1 %v297_v14 }
   0xc   :  { %278 = vmatpush3.bf16.msra.mxu1 %v291_v36 }
   0xd   :  { %279 = vmatprep.subr.bf16.mxu1 %v297_v14 }
  0x10   :  { %280 = vmatpush3.bf16.msra.mxu1 %v292_v37 }
  0x8c   :  { %v38_v4 = vpop.xlane.xlu0 %37 }
  0x8d   :  { %v44_v5 = vmul.f32 0.03125, %v38_v4 }
  0x8f   :  { %v46_v6 = vsub.f32 %v352_v0, %v44_v5 }
  0x90   :  { %v42_v7 = vpop.xlane.xlu0 %41 }
  0x91   :  { %v45_v8 = vmul.f32 0.03125, %v42_v7  ;;  %v48_v9 = vmul.f32 %v46_v6, %v46_v6 }
  0x93   :  { %v47_v10 = vsub.f32 %v357_v1, %v45_v8  ;;  %v50_v11 = vsel %vm35_vm0, %v48_v9, 0.0 }
  0x94   :  { %51 = vadd.xlane.f32.xlu1 %v50_v11 }
  0x95   :  { %v49_v12 = vmul.f32 %v47_v10, %v47_v10 }
  0x97   :  { %v53_v13 = vsel %vm39_vm1, %v49_v12, 0.0 }
  0x98   :  { %54 = vadd.xlane.f32.xlu1 %v53_v13 }
 0x11d   :  { %v52_v18 = vpop.xlane.xlu1 %51 }
 0x11e   :  { %v56_v19 = vmul.f32 0.03125, %v52_v18 }
 0x120   :  { %v58_v20 = vadd.f32 1e-05, %v56_v19 }
 0x121   :  { %v55_v21 = vpop.xlane.xlu1 %54 }
 0x122   :  { %293 = vrsqrt.f32 %v58_v20  ;;  %v57_v22 = vmul.f32 0.03125, %v55_v21 }
 0x124   :  { %v59_v23 = vadd.f32 1e-05, %v57_v22 }
 0x126   :  { %295 = vrsqrt.f32 %v59_v23 }
 0x12f   :  { %v294_v24 = vpop.eup %293 }
 0x130   :  { %v62_v25 = vmul.f32 %v294_v24, %v46_v6 }
 0x132   :  { %v71_v29 = vmul.f32 %v245_v26, %v62_v25 }
 0x133   :  { %v296_v27 = vpop.eup %295 }
 0x134   :  { %v63_v28 = vmul.f32 %v296_v27, %v47_v10  ;;  %v80_v32 = vadd.f32 %v246_v30, %v71_v29 }
 0x136   :  { %v72_v31 = vmul.f32 %v245_v26, %v63_v28 }
 0x138   :  { %v81_v33 = vadd.f32 %v246_v30, %v72_v31 }
 0x13a   :  { %v82_v34 = vpack.c.bf16 %v81_v33, %v80_v32 }
 0x13c   :  { %270 = vmatmul.mubr.msk.bf16.vlgmr.msra.gmra.mxu0 %vm35_vm0, %v82_v34 }
 0x1fc   :  { %v143_v39 = vpop.f32.mrf.mxu0 }
 0x1fd   :  { %v144_v41 = vadd.f32 %v247_v38, %v143_v39 }
 0x1fe   :  { %v271_v40 = vpop.f32.mrf.mxu0 }
 0x1ff   :  { %v150_v45 = vmax.f32 %v144_v41, 0.0 }
 0x200   :  { %v146_v42 = vpop.f32.mrf.mxu0 }
 0x201   :  { %v147_v43 = vadd.f32 %v247_v38, %v146_v42 }
 0x202   :  { %v272_v44 = vpop.f32.mrf.mxu0 }
 0x203   :  { %v151_v46 = vmax.f32 %v147_v43, 0.0 }
 0x205   :  { %v152_v47 = vpack.c.bf16 %v151_v46, %v150_v45 }
 0x207   :  { %282 = vmatmul.mubr.msk.bf16.vlgmr.msra.gmra.mxu1 %vm192_vm3, %v152_v47 }
 0x2c7   :  { %v230_v49 = vpop.f32.mrf.mxu1 }
 0x2c8   :  { %v231_v50 = vadd.f32 %v251_v48, %v230_v49 }
 0x2c9   :  { %v283_v51 = vpop.f32.mrf.mxu1 }
 0x2ca   :  { %v237_v52 = vadd.f32 %v231_v50, %v352_v0 }
 0x2cb   :  { %v233_v53 = vpop.f32.mrf.mxu1 }
 0x2cc   :  { %239 = vst.msk [vmem:[%s417_s9] sm:$0xff] %vm35_vm0, %v237_v52  ;;  %v234_v54 = vadd.f32 %v251_v48, %v233_v53 }
 0x2cd   :  { %v284_v55 = vpop.f32.mrf.mxu1 }
 0x2ce   :  { %v238_v56 = vadd.f32 %v234_v54, %v357_v1 }
 0x2d0   :  { %240 = vst.msk [vmem:[%s417_s9 + $0x8] sm:$0xf] %vm39_vm1, %v238_v56 }

// kernel: full_conformer_forward.53
= control target key start
LH: loop header
LB: loop body
LE: loop exit
PB: predicated region body
PF: predicated region fallthrough
CT: control target
= control target key end

     0   :  { %vm23_vm0 = vcmask 261120   ;;  %vm27_vm1 = vcmask 257024   ;;  %v169_v14 = vmov 0.0   ;;  %vm170_vm2 = vmmov 0   ;;  %s231_s0 = inlined_call_operand.vmem [shape: f32[12,32], index: 0, kind: input, shape index: {}]   ;;  %s232_s3 = inlined_call_operand.vmem [shape: bf16[32,128], index: 3, kind: input, shape index: {}]   ;;  %s233_s1 = inlined_call_operand.vmem [shape: f32[1,32], index: 1, kind: input, shape index: {}]   ;;  %s234_s2 = inlined_call_operand.vmem [shape: f32[1,32], index: 2, kind: input, shape index: {}]   ;;  %s235_s4 = inlined_call_operand.vmem [shape: f32[1,128], index: 4, kind: input, shape index: {}]   ;;  %s236_s5 = inlined_call_operand.vmem [shape: f32[12,128], index: 5, kind: output, shape index: {}]  }
   0x1   :  { %v21_v0 = vld [vmem:[%s231_s0] sm:$0xff]  ;;  %v22_v1 = vld [vmem:[%s231_s0 + $0x8] sm:$0xf]  ;;  %153 = vmatprep.subr.bf16.mxu0 %v169_v14  ;;  %157 = vmatprep.mubr.msk.bf16.mxu0 %vm170_vm2, %v169_v14 }
   0x2   :  { %v24_v2 = vsel %vm23_vm0, %v21_v0, 0.0  ;;  %v28_v3 = vsel %vm27_vm1, %v22_v1, 0.0  ;;  %v163_v15 = vld [vmem:[%s232_s3 + $0x8] sm:$0xff]   ;;  %v164_v16 = vld [vmem:[%s232_s3] sm:$0xff]  }
   0x3   :  { %25 = vadd.xlane.f32.xlu0 %v24_v2  ;;  %154 = vmatpush3.bf16.msra.mxu0 %v163_v15  ;;  %v144_v25 = vld [vmem:[%s233_s1] ss:$0 sm:$0xff] }
   0x4   :  { %155 = vmatprep.subr.bf16.mxu0 %v169_v14  ;;  %v145_v29 = vld [vmem:[%s234_s2] ss:$0 sm:$0xff] }
   0x5   :  { %v146_v34 = vld [vmem:[%s235_s4] ss:$0 sm:$0xff] }
   0x7   :  { %29 = vadd.xlane.f32.xlu0 %v28_v3  ;;  %156 = vmatpush3.bf16.msra.mxu0 %v164_v16 }
  0x8c   :  { %v26_v4 = vpop.xlane.xlu0 %25 }
  0x8d   :  { %v32_v5 = vmul.f32 0.03125, %v26_v4 }
  0x8f   :  { %v34_v6 = vsub.f32 %v21_v0, %v32_v5 }
  0x90   :  { %v30_v7 = vpop.xlane.xlu0 %29 }
  0x91   :  { %v33_v8 = vmul.f32 0.03125, %v30_v7  ;;  %v36_v9 = vmul.f32 %v34_v6, %v34_v6 }
  0x93   :  { %v35_v10 = vsub.f32 %v22_v1, %v33_v8  ;;  %v38_v11 = vsel %vm23_vm0, %v36_v9, 0.0 }
  0x94   :  { %39 = vadd.xlane.f32.xlu1 %v38_v11 }
  0x95   :  { %v37_v12 = vmul.f32 %v35_v10, %v35_v10 }
  0x97   :  { %v41_v13 = vsel %vm27_vm1, %v37_v12, 0.0 }
  0x98   :  { %42 = vadd.xlane.f32.xlu1 %v41_v13 }
 0x11d   :  { %v40_v17 = vpop.xlane.xlu1 %39 }
 0x11e   :  { %v44_v18 = vmul.f32 0.03125, %v40_v17 }
 0x120   :  { %v46_v19 = vadd.f32 1e-05, %v44_v18 }
 0x121   :  { %v43_v20 = vpop.xlane.xlu1 %42 }
 0x122   :  { %165 = vrsqrt.f32 %v46_v19  ;;  %v45_v21 = vmul.f32 0.03125, %v43_v20 }
 0x124   :  { %v47_v22 = vadd.f32 1e-05, %v45_v21 }
 0x126   :  { %167 = vrsqrt.f32 %v47_v22 }
 0x12f   :  { %v166_v23 = vpop.eup %165 }
 0x130   :  { %v50_v24 = vmul.f32 %v166_v23, %v34_v6 }
 0x132   :  { %v59_v28 = vmul.f32 %v144_v25, %v50_v24 }
 0x133   :  { %v168_v26 = vpop.eup %167 }
 0x134   :  { %v51_v27 = vmul.f32 %v168_v26, %v35_v10  ;;  %v68_v31 = vadd.f32 %v145_v29, %v59_v28 }
 0x136   :  { %v60_v30 = vmul.f32 %v144_v25, %v51_v27 }
 0x138   :  { %v69_v32 = vadd.f32 %v145_v29, %v60_v30 }
 0x13a   :  { %v70_v33 = vpack.c.bf16 %v69_v32, %v68_v31 }
 0x13c   :  { %158 = vmatmul.mubr.msk.bf16.vlgmr.msra.gmra.mxu0 %vm23_vm0, %v70_v33 }
 0x1fc   :  { %v131_v35 = vpop.f32.mrf.mxu0 }
 0x1fd   :  { %v132_v36 = vadd.f32 %v146_v34, %v131_v35 }
 0x1fe   :  { %v159_v37 = vpop.f32.mrf.mxu0 }
 0x1ff   :  { %138 = vst [vmem:[%s236_s5] sm:$0xff] %v132_v36 }
 0x200   :  { %v134_v38 = vpop.f32.mrf.mxu0 }
 0x201   :  { %v135_v39 = vadd.f32 %v146_v34, %v134_v38 }
 0x202   :  { %v160_v40 = vpop.f32.mrf.mxu0 }
 0x203   :  { %139 = vst [vmem:[%s236_s5 + $0x8] sm:$0xf] %v135_v39 }

// kernel: full_conformer_forward.50
= control target key start
LH: loop header
LB: loop body
LE: loop exit
PB: predicated region body
PF: predicated region fallthrough
CT: control target
= control target key end

     0   :  { %s968_s15 = smov 0   ;;  %s1072_s0 = inlined_call_operand.vmem [shape: bf16[2,6,32], index: 0, kind: input, shape index: {}]   ;;  %s1073_s1 = inlined_call_operand.vmem [shape: bf16[2,8,32], index: 1, kind: input, shape index: {}]   ;;  %s1074_s2 = inlined_call_operand.vmem [shape: bf16[2,8,32], index: 2, kind: input, shape index: {}]   ;;  %s1075_s3 = inlined_call_operand.vmem [shape: f32[2,1,8], index: 3, kind: input, shape index: {}]   ;;  %s1076_s4 = inlined_call_operand.vmem [shape: bf16[2,6,32], index: 4, kind: output, shape index: {}]  }
   0x1 LB: > { %s806_s16 = sadd.s32 4294967295, %s933_s15   ;;  %p810_p0 = scmp.ge.s32.totalorder %s933_s15, 1  ;;  %s933_s15 = sphi %s968_s15, %s14_s15  }
   0x2   : > { %p187_p1 = scmp.lt.s32.totalorder %s933_s15, 3 }
   0x4   : > { %p188_p2 = pnand %p810_p0, %p187_p1 }
   0x5   : > { %p222_p3 = scmp.lt.s32.totalorder (!%p188_p2), %s806_s16, 1  ;;  %s937_s27 = smov (!%p188_p2), 120  }
   0x6   : > { %191 = sbr.rel (%p188_p2) target bundleno = 1414 (0x586), region = 36  ;;  %s938_s28 = smov (!%p188_p2), 112  }
   0x7   : > { %s939_s29 = smov (!%p188_p2), 104   ;;  %s940_s7 = smov (!%p188_p2), 8  }
   0x8   : > { %s941_s8 = smov (!%p188_p2), 16   ;;  %s942_s9 = smov (!%p188_p2), 24  }
   0xb   : > { %v935_v0 = vmov 0.0   ;;  %vm936_vm0 = vmmov 0   ;;  %s1078_s16 = smov (!%p222_p3, %s806_s16), 1  ;;  %vm254_vm1 = vcmask 64512   ;;  %vm301_vm2 = vcmask 62464  }
   0xc   : > { %845 = vmatprep.subr.bf16.mxu0 %v935_v0  ;;  %847 = vmatprep.mubr.msk.bf16.mxu0 %vm936_vm0, %v935_v0  ;;  %s982_s17 = sshll.u32 %s1078_s16, 2  ;;  %s236_s26 = scalar_lea.vmem %s1075_s3, %s1078_s16  ;;  %vm317_vm3 = vcmask 1043456   ;;  %vm713_vm4 = vcmask 130048   ;;  %vm715_vm5 = vcmask 195584   ;;  %vm718_vm6 = vcmask 256000  }
   0xd   : > { %851 = vmatprep.subr.bf16.mxu1 %v935_v0  ;;  %853 = vmatprep.mubr.msk.bf16.mxu1 %vm936_vm0, %v935_v0  ;;  %s229_s20 = scalar_lea.vmem %s1073_s1, %s982_s17  ;;  %s225_s23 = scalar_lea.vmem %s1072_s0, %s982_s17  ;;  %v1000_v5 = vld [vmem:[%s236_s26] ss:$0 sm:$0xff] }
   0xe   : > { %v245_v1 = vld [vmem:[%s229_s20] sm:$0xf]  ;;  %s233_s6 = scalar_lea.vmem %s1074_s2, %s982_s17  ;;  %s240_s12 = scalar_lea.vmem %s1076_s4, %s982_s17 }
   0xf   : > { %v259_v2 = vsel %vm254_vm1, %v245_v1, 0  ;;  %v243_v3 = vld [vmem:[%s225_s23] sm:$0x7]  ;;  %v819_v12 = vcombine.low %v245_v1, %v245_v1 }
  0x10   : > { %846 = vmatpush3.bf16.xpose.msra.mxu0 %v259_v2  ;;  %v244_v4 = vmul.bf16 1052065461, %v243_v3  ;;  %v1014_v19 = vld [vmem:[%s233_s6] sm:$0xf] }
  0x11   : > { %863 = vmatprep.subr.bf16.mxu0 %v935_v0  ;;  %369 = vrot.lane.b32.xlu1 %v819_v12, %s937_s27  ;;  %v319_v20 = vsel %vm317_vm3, %v1014_v19, 0  ;;  %v821_v3 = vcombine.low %v1014_v19, %v1014_v19 }
  0x12   : > { %v818_v13 = vcombine.low %v244_v4, %v244_v4  ;;  %852 = vmatpush3.bf16.msra.mxu1 %v319_v20 }
  0x13   : > { %857 = vmatprep.subr.bf16.mxu1 %v935_v0 }
  0x15   : > { %364 = vrot.lane.b32.xlu1 %v818_v13, %s937_s27 }
  0x17   : > { %848 = vmatmul.mubr.msk.bf16.vlgmr.msra.gmra.mxu0 %vm254_vm1, %v244_v4 }
  0x18   : > { %865 = vmatprep.mubr.msk.bf16.mxu0 %vm936_vm0, %v935_v0 }
  0x19   : > { %480 = vrot.lane.b32.xlu1 %v818_v13, %s938_s28 }
  0x1d   : > { %592 = vrot.lane.b32.xlu1 %v819_v12, %s939_s29 }
  0x21   : > { %590 = vrot.lane.b32.xlu1 %v818_v13, %s939_s29 }
  0x83   : > { %v370_v23 = vpop.permute.xlu1 %369 }
  0x84   : > { %v375_v25 = vsel %vm254_vm1, %v370_v23, 0 }
  0x87   : > { %v365_v27 = vpop.permute.xlu1 %364 }
  0x8b   : > { %v481_v29 = vpop.permute.xlu1 %480 }
  0x8f   : > { %v593_v31 = vpop.permute.xlu1 %592 }
  0x90   : > { %v598_v32 = vsel %vm254_vm1, %v593_v31, 0 }
  0x93   : > { %v591_v33 = vpop.permute.xlu1 %590 }
  0xd7   : > { %v295_v6 = vpop.f32.mrf.mxu0 }
  0xd8   : > { %v296_v7 = vadd.f32 %v1000_v5, %v295_v6 }
  0xd9   : > { %v849_v8 = vpop.f32.mrf.mxu0 }
  0xda   : > { %v302_v9 = vsel %vm301_vm2, %v296_v7, -inf }
  0xdb   : > { %303 = vmax.xlane.f32.xlu0 %v302_v9  ;;  %v298_v10 = vpop.f32.mrf.mxu0 }
  0xdd   : > { %v850_v11 = vpop.f32.mrf.mxu0 }
 0x164   : > { %v304_v14 = vpop.xlane.xlu0 %303 }
 0x165   : > { %v305_v15 = vsub.f32 %v296_v7, %v304_v14 }
 0x167   : > { %v306_v16 = vmul.f32 1.442695, %v305_v15 }
 0x169   : > { %911 = vpow2.f32 %v306_v16 }
 0x176   : > { %v912_v17 = vpop.eup %911 }
 0x177   : > { %v308_v18 = vsel %vm301_vm2, %v912_v17, 0.0 }
 0x178   : > { %309 = vadd.xlane.f32.xlu0 %v308_v18 }
 0x18e   : > { %482 = vrot.lane.b32.xlu0 %v819_v12, %s938_s28 }
 0x201   : > { %v310_v21 = vpop.xlane.xlu0 %309 }
 0x202   : > { %913 = vrcp.f32 %v310_v21 }
 0x205   : > { %v483_v28 = vpop.permute.xlu0 %482 }
 0x206   : > { %v488_v30 = vsel %vm254_vm1, %v483_v28, 0 }
 0x20f   : > { %v914_v22 = vpop.eup %913 }
 0x210   : > { %v312_v24 = vmul.f32 %v914_v22, %v912_v17 }
 0x212   : > { %v313_v26 = vpack.c.bf16 %v312_v24, %v312_v24 }
 0x214   : > { %854 = vmatmul.mubr.msk.bf16.vlgmr.msra.gmra.mxu1 %vm254_vm1, %v313_v26 }
 0x215   : > { %858 = vmatpush3.bf16.xpose.msra.mxu1 %v375_v25  ;;  %859 = vmatprep.mubr.msk.bf16.mxu1 %vm936_vm0, %v935_v0 }
 0x216   : > { %869 = vmatprep.subr.bf16.mxu1 %v935_v0 }
 0x21c   : > { %860 = vmatmul.mubr.msk.bf16.vlgmr.msra.gmra.mxu1 %vm254_vm1, %v365_v27 }
 0x21d   : > { %870 = vmatpush3.bf16.xpose.msra.mxu1 %v488_v30  ;;  %871 = vmatprep.mubr.msk.bf16.mxu1 %vm936_vm0, %v935_v0 }
 0x21e   : > { %881 = vmatprep.subr.bf16.mxu1 %v935_v0 }
 0x224   : > { %872 = vmatmul.mubr.msk.bf16.vlgmr.msra.gmra.mxu1 %vm254_vm1, %v481_v29 }
 0x225   : > { %882 = vmatpush3.bf16.xpose.msra.mxu1 %v598_v32  ;;  %883 = vmatprep.mubr.msk.bf16.mxu1 %vm936_vm0, %v935_v0 }
 0x22c   : > { %884 = vmatmul.mubr.msk.bf16.vlgmr.msra.gmra.mxu1 %vm254_vm1, %v591_v33 }
 0x2d4   : > { %v1035_v34 = vpop.f32.mrf.mxu1 }
 0x2d6   : > { %v855_v35 = vpop.f32.mrf.mxu1 }
 0x2d8   : > { %v358_v36 = vpop.f32.mrf.mxu1 }
 0x2da   : > { %v856_v37 = vpop.f32.mrf.mxu1 }
 0x2dc   : > { %v411_v38 = vpop.f32.mrf.mxu1 }
 0x2dd   : > { %v412_v39 = vadd.f32 %v1000_v5, %v411_v38 }
 0x2de   : > { %v861_v40 = vpop.f32.mrf.mxu1 }
 0x2df   : > { %v417_v41 = vsel %vm301_vm2, %v412_v39, -inf }
 0x2e0   : > { %418 = vmax.xlane.f32.xlu1 %v417_v41  ;;  %v414_v42 = vpop.f32.mrf.mxu1 }
 0x2e2   : > { %v862_v43 = vpop.f32.mrf.mxu1 }
 0x2e4   : > { %v524_v44 = vpop.f32.mrf.mxu1 }
 0x2e5   : > { %v525_v45 = vadd.f32 %v1000_v5, %v524_v44 }
 0x2e6   : > { %v873_v46 = vpop.f32.mrf.mxu1 }
 0x2e7   : > { %v530_v47 = vsel %vm301_vm2, %v525_v45, -inf }
 0x2e8   : > { %531 = vmax.xlane.f32.xlu0 %v530_v47  ;;  %v527_v48 = vpop.f32.mrf.mxu1 }
 0x2ea   : > { %v874_v49 = vpop.f32.mrf.mxu1 }
 0x2ec   : > { %v634_v50 = vpop.f32.mrf.mxu1 }
 0x2ed   : > { %v635_v51 = vadd.f32 %v1000_v5, %v634_v50 }
 0x2ee   : > { %v885_v52 = vpop.f32.mrf.mxu1 }
 0x2ef   : > { %v640_v53 = vsel %vm301_vm2, %v635_v51, -inf }
 0x2f0   : > { %641 = vmax.xlane.f32.xlu1 %v640_v53  ;;  %v637_v54 = vpop.f32.mrf.mxu1 }
 0x2f2   : > { %v886_v55 = vpop.f32.mrf.mxu1 }
 0x369   : > { %v419_v56 = vpop.xlane.xlu1 %418 }
 0x36a   : > { %v420_v57 = vsub.f32 %v412_v39, %v419_v56 }
 0x36c   : > { %v421_v58 = vmul.f32 1.442695, %v420_v57 }
 0x36e   : > { %915 = vpow2.f32 %v421_v58 }
 0x371   : > { %v532_v59 = vpop.xlane.xlu0 %531 }
 0x372   : > { %v533_v60 = vsub.f32 %v525_v45, %v532_v59 }
 0x374   : > { %v534_v61 = vmul.f32 1.442695, %v533_v60 }
 0x376   : > { %917 = vpow2.f32 %v534_v61 }
 0x379   : > { %v642_v4 = vpop.xlane.xlu1 %641 }
 0x37a   : > { %v643_v5 = vsub.f32 %v635_v51, %v642_v4 }
 0x37b   : > { %v916_v62 = vpop.eup %915 }
 0x37c   : > { %v423_v63 = vsel %vm301_vm2, %v916_v62, 0.0  ;;  %v644_v6 = vmul.f32 1.442695, %v643_v5 }
 0x37d   : > { %424 = vadd.xlane.f32.xlu1 %v423_v63 }
 0x37e   : > { %919 = vpow2.f32 %v644_v6 }
 0x383   : > { %v918_v1 = vpop.eup %917 }
 0x384   : > { %v536_v2 = vsel %vm301_vm2, %v918_v1, 0.0 }
 0x385   : > { %537 = vadd.xlane.f32.xlu0 %v536_v2 }
 0x38b   : > { %v920_v7 = vpop.eup %919 }
 0x38c   : > { %v646_v8 = vsel %vm301_vm2, %v920_v7, 0.0 }
 0x38e   : > { %542 = vrot.lane.b32.xlu1 %v821_v3, %s938_s28 }
 0x39b   : > { %432 = vrot.lane.b32.xlu0 %v821_v3, %s937_s27 }
 0x3b2   : > { %647 = vadd.xlane.f32.xlu1 %v646_v8 }
 0x3c3   : > { %652 = vrot.lane.b32.xlu1 %v821_v3, %s939_s29 }
 0x406   : > { %v425_v9 = vpop.xlane.xlu1 %424 }
 0x407   : > { %921 = vrcp.f32 %v425_v9 }
 0x40a   : > { %v543_v15 = vpop.permute.xlu1 %542 }
 0x40b   : > { %v548_v17 = vsel %vm317_vm3, %v543_v15, 0 }
 0x40e   : > { %v538_v10 = vpop.xlane.xlu0 %537 }
 0x40f   : > { %923 = vrcp.f32 %v538_v10 }
 0x412   : > { %v433_v11 = vpop.permute.xlu0 %432 }
 0x413   : > { %v438_v12 = vsel %vm317_vm3, %v433_v11, 0 }
 0x414   : > { %v922_v13 = vpop.eup %921  ;;  %864 = vmatpush3.bf16.msra.mxu0 %v438_v12 }
 0x415   : > { %875 = vmatprep.subr.bf16.mxu0 %v935_v0  ;;  %v427_v14 = vmul.f32 %v922_v13, %v916_v62 }
 0x417   : > { %v428_v16 = vpack.c.bf16 %v427_v14, %v427_v14 }
 0x419   : > { %866 = vmatmul.mubr.msk.bf16.vlgmr.msra.gmra.mxu0 %vm254_vm1, %v428_v16 }
 0x41a   : > { %876 = vmatpush3.bf16.msra.mxu0 %v548_v17  ;;  %877 = vmatprep.mubr.msk.bf16.mxu0 %vm936_vm0, %v935_v0 }
 0x41b   : > { %887 = vmatprep.subr.bf16.mxu0 %v935_v0 }
 0x41c   : > { %v924_v18 = vpop.eup %923 }
 0x41d   : > { %v540_v19 = vmul.f32 %v924_v18, %v918_v1 }
 0x41f   : > { %v541_v20 = vpack.c.bf16 %v540_v19, %v540_v19 }
 0x421   : > { %878 = vmatmul.mubr.msk.bf16.vlgmr.msra.gmra.mxu0 %vm254_vm1, %v541_v20 }
 0x422   : > { %889 = vmatprep.mubr.msk.bf16.mxu0 %vm936_vm0, %v935_v0 }
 0x43b   : > { %v648_v21 = vpop.xlane.xlu1 %647 }
 0x43c   : > { %925 = vrcp.f32 %v648_v21 }
 0x43f   : > { %v653_v22 = vpop.permute.xlu1 %652 }
 0x440   : > { %v658_v23 = vsel %vm317_vm3, %v653_v22, 0 }
 0x441   : > { %888 = vmatpush3.bf16.msra.mxu0 %v658_v23 }
 0x449   : > { %v926_v24 = vpop.eup %925 }
 0x44a   : > { %v650_v25 = vmul.f32 %v926_v24, %v920_v7 }
 0x44c   : > { %v651_v26 = vpack.c.bf16 %v650_v25, %v650_v25 }
 0x44e   : > { %890 = vmatmul.mubr.msk.bf16.vlgmr.msra.gmra.mxu0 %vm254_vm1, %v651_v26 }
 0x4d9   : > { %v474_v27 = vpop.f32.mrf.mxu0 }
 0x4da   : > { %701 = vrot.lane.b32.xlu0 %v474_v27, %s940_s7 }
 0x4db   : > { %v867_v28 = vpop.f32.mrf.mxu0 }
 0x4dd   : > { %v477_v29 = vpop.f32.mrf.mxu0 }
 0x4df   : > { %v868_v30 = vpop.f32.mrf.mxu0 }
 0x4e1   : > { %v584_v31 = vpop.f32.mrf.mxu0 }
 0x4e2   : > { %705 = vrot.lane.b32.xlu1 %v584_v31, %s941_s8 }
 0x4e3   : > { %v879_v0 = vpop.f32.mrf.mxu0 }
 0x4e5   : > { %v587_v32 = vpop.f32.mrf.mxu0 }
 0x4e7   : > { %v880_v33 = vpop.f32.mrf.mxu0 }
 0x50e   : > { %v694_v35 = vpop.f32.mrf.mxu0 }
 0x50f   : > { %709 = vrot.lane.b32.xlu0 %v694_v35, %s942_s9 }
 0x510   : > { %v891_v36 = vpop.f32.mrf.mxu0 }
 0x512   : > { %v697_v37 = vpop.f32.mrf.mxu0 }
 0x514   : > { %v892_v38 = vpop.f32.mrf.mxu0 }
 0x54c   : > { %v702_v39 = vpop.permute.xlu0 %701 }
 0x54d   : > { %v712_v41 = vsel %vm254_vm1, %v1035_v34, %v702_v39 }
 0x554   : > { %v706_v40 = vpop.permute.xlu1 %705 }
 0x555   : > { %v714_v42 = vsel %vm713_vm4, %v712_v41, %v706_v40 }
 0x581   : > { %v710_v43 = vpop.permute.xlu0 %709 }
 0x582   : > { %v716_v44 = vsel %vm715_vm5, %v714_v42, %v710_v43 }
 0x583   : > { %v717_v45 = vpack.c.bf16 %v716_v44, %v716_v44 }
 0x585   : > { %719 = vst.msk [vmem:[%s240_s12] sm:$0x7] %vm718_vm6, %v717_v45 }
 0x586 PF: > { %s14_s15 = sadd.s32 1, %s933_s15  }
 0x587   : > { %p11_p4 = scmp.ge.s32.totalorder %s14_s15, 4  }
 0x589   :  { %13 = sbr.rel (!%p11_p4) target bundleno = 1 (0x1), region = 75 }

</bundles_post_ra>
